<compile_context>
chip_gen: v5e
topology: v5e:2x2
jax: 0.10.0
libtpu: 0.0.40
codegen_flags: <defaults>
</compile_context>

<pallas_src>
import math
import numpy as np
import jax
import jax.numpy as jnp
from jax import lax
from jax.experimental import pallas as pl
from jax.experimental.pallas import tpu as pltpu


# ----------------------------------------------------------------------------
# Static mask construction (mirrors MultiDirectionPattern.generate_multi_direction_mask)
# ----------------------------------------------------------------------------
def generate_multi_direction_mask(w, h):
    mask = np.zeros((8, h, w), dtype=np.float32)
    degree_mask = np.zeros((h, w), dtype=np.float32)
    if h % 2 == 0:
        cx, cy = (float(w - 1) / 2.0, float(h - 1) / 2.0)
    else:
        cx, cy = (w // 2, h // 2)
    for i in range(w):
        for j in range(h):
            degree = math.degrees(math.atan2(cy - j, cx - i))
            degree_mask[j, i] = (degree + 180.0) % 360.0
    for i in range(8):
        if i == 7:
            degree_mask[degree_mask == 0] = 360
        sel = (degree_mask >= i * 45) & (degree_mask <= (i + 1) * 45)
        mask[i][sel] = 1
        if h % 2 != 0:
            mask[i, int(cy), int(cx)] = 1
    return mask


def _round_up(x, m):
    return (x + m - 1) // m * m


_LANE_TILE = 1024                      # output lanes (gather columns) per grid step
_HIGH = lax.Precision.HIGHEST          # exact for the 0/1 selector matmuls


# ----------------------------------------------------------------------------
# Kernels
# ----------------------------------------------------------------------------
def _feat_kernel(x_ref, fm_ref, o_ref):
    # x_ref:(M,49) f32   fm_ref:(49,128) f32 = mask/count (zero-padded lanes)
    # o_ref:(M,128)      masked spatial mean == single MXU dot
    o_ref[...] = jnp.dot(x_ref[...], fm_ref[...],
                         precision=_HIGH, preferred_element_type=jnp.float32)


# ----------------------------------------------------------------------------
# Module
# ----------------------------------------------------------------------------
class MultiDirectionPatternPallas:
    P = 8  # number of direction sectors

    def __init__(self, lane_tile=_LANE_TILE):
        feat_mask = generate_multi_direction_mask(7, 7)     # (8, 7, 7)
        sal_mask = generate_multi_direction_mask(56, 56)    # (8, 56, 56)
        self.feat_mask_np = feat_mask
        self.sal_mask_np = sal_mask
        self.Hs, self.Ws = sal_mask.shape[1], sal_mask.shape[2]

        # ---- feat constants: mask^T with 1/count folded in, lanes padded to 128
        fm = feat_mask.reshape(self.P, -1)                               # (8, 49)
        counts = (fm > 0).sum(-1).astype(np.float32)                     # (8,)
        mT = (fm / counts[:, None]).T.astype(np.float32)                 # (49, 8)
        mT_pad = np.zeros((mT.shape[0], 128), dtype=np.float32)
        mT_pad[:, :self.P] = mT
        self._fmaskT = jnp.asarray(mT_pad)                               # (49, 128)

        # ---- sal constants: factored (column-select, row-select) one-hot tables
        flat = sal_mask.reshape(self.P, -1)                              # (8, 3136)
        idx = [np.nonzero(flat[p] > 0)[0] for p in range(self.P)]
        n = len(idx[0])
        # torch.stack in the reference requires equal per-sector counts
        assert all(len(ix) == n for ix in idx), "per-sector counts must match"
        self.N = n
        self._lane_tile = lane_tile
        pn_pad = _round_up(self.P * n, lane_tile)
        self._pn_pad = pn_pad
        csel = np.zeros((self.Ws, pn_pad), dtype=np.float32)             # column selector
        rsel = np.zeros((self.Hs, pn_pad), dtype=np.float32)             # row selector
        for p, ix in enumerate(idx):
            cols = np.arange(n) * self.P + p          # output column ordering: n*P + p
            rsel[ix // self.Ws, cols] = 1.0
            csel[ix % self.Ws, cols] = 1.0
        self._csel = jnp.asarray(csel)                                   # (56, pn_pad) f32
        self._rsel = jnp.asarray(rsel)                                   # (56, pn_pad) f32

        # jitted forwards (constants passed as already-on-device args)
        self._feat_fn = jax.jit(self._feat_impl)
        self._full_fn = jax.jit(self._full_impl)

    # -------------------- feat-only path (s is None) --------------------
    def _feat_impl(self, x, fmaskT):
        B, C, H, W = x.shape
        xf = x.reshape(B * C, H * W).astype(jnp.float32)
        out = pl.pallas_call(
            _feat_kernel,
            out_shape=jax.ShapeDtypeStruct((B * C, 128), jnp.float32),
            grid=(1,),
            in_specs=[
                pl.BlockSpec((B * C, H * W), lambda g: (0, 0)),
                pl.BlockSpec((H * W, 128), lambda g: (0, 0)),
            ],
            out_specs=pl.BlockSpec((B * C, 128), lambda g: (0, 0)),
            compiler_params=pltpu.CompilerParams(dimension_semantics=("arbitrary",)),
        )(xf, fmaskT)
        return out[:, :self.P].reshape(B, C, 2, 4)

    # -------------------- fused feat + sal path --------------------
    def _full_impl(self, x, s, fmaskT, csel, rsel):
        B, C, Hx, Wx = x.shape
        Bs, Cs, Hs, Ws = s.shape
        assert Hs == self.Hs and Ws == self.Ws
        Mx = B * C
        Ms = Bs * Cs
        TN = self._lane_tile
        pn_pad = self._pn_pad
        n_strips = pn_pad // TN

        xf = x.reshape(Mx, Hx * Wx).astype(jnp.float32)                  # (Mx, 49)
        sflat = s.reshape(Ms * Hs, Ws).astype(jnp.float32)               # (Ms*56, 56)

        def kernel(x_ref, fm_ref, s_ref, c_ref, r_ref, feat_ref, sal_ref):
            # ---- saliency gather: column-select matmul + row-select masked reduce
            # s_ref:(Ms*Hs, Ws) resident f32; c_ref/r_ref:(Ws|Hs, TN) selector strips
            t = jnp.dot(s_ref[...], c_ref[...],
                        precision=_HIGH,
                        preferred_element_type=jnp.float32)              # (Ms*Hs, TN)
            t3 = t.reshape(Ms, Hs, TN)                                   # split leading dim
            sal_ref[...] = jnp.sum(t3 * r_ref[...][None, :, :], axis=1)  # (Ms, TN)

            # ---- feat path fused: one tiny MXU dot, only on the first strip
            @pl.when(pl.program_id(0) == 0)
            def _():
                feat_ref[...] = jnp.dot(x_ref[...], fm_ref[...],
                                        precision=_HIGH,
                                        preferred_element_type=jnp.float32)

        feat_pad, sal_pad = pl.pallas_call(
            kernel,
            out_shape=(
                jax.ShapeDtypeStruct((Mx, 128), jnp.float32),
                jax.ShapeDtypeStruct((Ms, pn_pad), jnp.float32),
            ),
            grid=(n_strips,),
            in_specs=[
                pl.BlockSpec((Mx, Hx * Wx), lambda g: (0, 0)),           # resident
                pl.BlockSpec((Hx * Wx, 128), lambda g: (0, 0)),          # resident
                pl.BlockSpec((Ms * Hs, Ws), lambda g: (0, 0)),           # resident (25 KB)
                pl.BlockSpec((Ws, TN), lambda g: (0, g)),                # column-select strip
                pl.BlockSpec((Hs, TN), lambda g: (0, g)),                # row-select strip
            ],
            out_specs=(
                pl.BlockSpec((Mx, 128), lambda g: (0, 0)),               # resident feat
                pl.BlockSpec((Ms, TN), lambda g: (0, g)),                # lane-dense sal strip
            ),
            compiler_params=pltpu.CompilerParams(
                dimension_semantics=("arbitrary",)),
        )(xf, fmaskT, sflat, csel, rsel)

        feat = feat_pad[:, :self.P].reshape(B, C, 2, 4)
        # columns already ordered n*P + p -> pure reshape, no transpose
        sal_feat = sal_pad[:, :self.P * self.N].reshape(Bs, Cs * self.N, 2, 4)
        return feat, sal_feat

    def __call__(self, x, s=None):
        if s is None:
            return self._feat_fn(x, self._fmaskT)
        return self._full_fn(x, s, self._fmaskT, self._csel, self._rsel)


# ----------------------------------------------------------------------------
# Pure-JAX reference (mirror of the PyTorch forward) for a correctness check
# ----------------------------------------------------------------------------
def _ref_forward(x, s, feat_mask_np, sal_mask_np):
    fm = jnp.asarray(feat_mask_np)
    mask = fm[None, None]                                    # (1,1,8,7,7)
    count = jnp.count_nonzero(mask.reshape(1, 1, 8, -1), axis=-1)
    part = (x[:, :, None] * mask).sum(-1).sum(-1)            # (B,C,8)
    feat = (part / count).reshape(x.shape[0], x.shape[1], 2, 4)
    sal = []
    for i in range(8):
        idx = np.nonzero(sal_mask_np[i].reshape(-1) > 0)[0]
        sal.append(
            s.reshape(s.shape[0], s.shape[1], -1)[:, :, idx].reshape(s.shape[0], -1)
        )
    salf = jnp.stack(sal, axis=2).reshape(s.shape[0], -1, 2, 4)
    return feat, salf


if __name__ == "__main__":
    key = jax.random.PRNGKey(0)
    kx, ks = jax.random.split(key)
    B, C = 2, 4
    x = jax.random.normal(kx, (B, C, 7, 7), dtype=jnp.float32)
    s = jax.random.normal(ks, (B, 1, 56, 56), dtype=jnp.float32)

    mod = MultiDirectionPatternPallas()
    feat, sal_feat = mod(x, s)
    jax.block_until_ready((feat, sal_feat))

    feat_ref, sal_ref = _ref_forward(x, s, mod.feat_mask_np, mod.sal_mask_np)
    np.testing.assert_allclose(np.asarray(feat), np.asarray(feat_ref), rtol=1e-5, atol=1e-5)
    np.testing.assert_allclose(np.asarray(sal_feat), np.asarray(sal_ref), rtol=1e-5, atol=1e-5)

    # s=None path (feat only)
    feat_only = mod(x, None)
    jax.block_until_ready(feat_only)
    np.testing.assert_allclose(np.asarray(feat_only), np.asarray(feat_ref), rtol=1e-5, atol=1e-5)

    print("KERNEL_OK")
</pallas_src>

<mosaic_0001>
module attributes {stable_mosaic.version = 11 : i64} {
  func.func @kernel(%arg0: i32, %arg1: memref<8x49xf32, #tpu.memory_space<vmem>>, %arg2: memref<49x128xf32, #tpu.memory_space<vmem>>, %arg3: memref<112x56xf32, #tpu.memory_space<vmem>>, %arg4: memref<56x1024xf32, #tpu.memory_space<vmem>>, %arg5: memref<56x1024xf32, #tpu.memory_space<vmem>>, %arg6: memref<8x128xf32, #tpu.memory_space<vmem>>, %arg7: memref<2x1024xf32, #tpu.memory_space<vmem>>) attributes {dimension_semantics = [#tpu.dimension_semantics<arbitrary>], iteration_bounds = array<i64: 4>, scalar_prefetch = 0 : i64, scratch_operands = 0 : i64, tpu.core_type = #tpu.core_type<tc>, window_params = [{pipeline_mode = #tpu.pipeline_mode<synchronous>, transform_indices = @transform_0, window_bounds = array<i64: 8, 49>}, {pipeline_mode = #tpu.pipeline_mode<synchronous>, transform_indices = @transform_1, window_bounds = array<i64: 49, 128>}, {pipeline_mode = #tpu.pipeline_mode<synchronous>, transform_indices = @transform_2, window_bounds = array<i64: 112, 56>}, {transform_indices = @transform_3, window_bounds = array<i64: 56, 1024>}, {transform_indices = @transform_4, window_bounds = array<i64: 56, 1024>}, {pipeline_mode = #tpu.pipeline_mode<synchronous>, transform_indices = @transform_5, window_bounds = array<i64: 8, 128>}, {transform_indices = @transform_6, window_bounds = array<i64: 2, 1024>}]} {
    %c0 = arith.constant 0 : index
    %c0_0 = arith.constant 0 : index
    %0 = vector.load %arg3[%c0, %c0_0] : memref<112x56xf32, #tpu.memory_space<vmem>>, vector<112x56xf32>
    %c0_1 = arith.constant 0 : index
    %c0_2 = arith.constant 0 : index
    %1 = vector.load %arg4[%c0_1, %c0_2] : memref<56x1024xf32, #tpu.memory_space<vmem>>, vector<56x1024xf32>
    %cst = arith.constant dense<0.000000e+00> : vector<112x1024xf32>
    %2 = tpu.matmul %0, %1, %cst {dimension_numbers = #tpu.dot_dimension_numbers<[1], [0], [0], [1], [0, 0, 1, 1], [], []>, precision = #tpu.contract_precision<fp32>} : vector<112x56xf32>, vector<56x1024xf32>, vector<112x1024xf32> -> vector<112x1024xf32>
    %3 = vector.shape_cast %2 : vector<112x1024xf32> to vector<2x56x1024xf32>
    %c0_3 = arith.constant 0 : index
    %c0_4 = arith.constant 0 : index
    %4 = vector.load %arg5[%c0_3, %c0_4] : memref<56x1024xf32, #tpu.memory_space<vmem>>, vector<56x1024xf32>
    %5 = vector.shape_cast %4 : vector<56x1024xf32> to vector<1x56x1024xf32>
    %6 = vector.broadcast %5 : vector<1x56x1024xf32> to vector<2x56x1024xf32>
    %7 = arith.mulf %3, %6 : vector<2x56x1024xf32>
    %cst_5 = arith.constant dense<0.000000e+00> : vector<2x1024xf32>
    %8 = vector.multi_reduction <add>, %7, %cst_5 [1] : vector<2x56x1024xf32> to vector<2x1024xf32>
    %c0_6 = arith.constant 0 : index
    %c0_7 = arith.constant 0 : index
    %9 = vector.load %arg7[%c0_6, %c0_7] : memref<2x1024xf32, #tpu.memory_space<vmem>>, vector<2x1024xf32>
    tpu.vector_store %arg7[%c0_6, %c0_7], %8 {strides = array<i32>} : memref<2x1024xf32, #tpu.memory_space<vmem>>, vector<2x1024xf32>,
    %c0_i32 = arith.constant 0 : i32
    %10 = arith.cmpi eq, %arg0, %c0_i32 : i32
    %11 = arith.extui %10 : i1 to i32
    %c0_i32_8 = arith.constant 0 : i32
    %12 = arith.cmpi ne, %11, %c0_i32_8 : i32
    scf.if %12 {
      %c0_9 = arith.constant 0 : index
      %c0_10 = arith.constant 0 : index
      %13 = vector.load %arg1[%c0_9, %c0_10] : memref<8x49xf32, #tpu.memory_space<vmem>>, vector<8x49xf32>
      %c0_11 = arith.constant 0 : index
      %c0_12 = arith.constant 0 : index
      %14 = vector.load %arg2[%c0_11, %c0_12] : memref<49x128xf32, #tpu.memory_space<vmem>>, vector<49x128xf32>
      %cst_13 = arith.constant dense<0.000000e+00> : vector<8x128xf32>
      %15 = tpu.matmul %13, %14, %cst_13 {dimension_numbers = #tpu.dot_dimension_numbers<[1], [0], [0], [1], [0, 0, 1, 1], [], []>, precision = #tpu.contract_precision<fp32>} : vector<8x49xf32>, vector<49x128xf32>, vector<8x128xf32> -> vector<8x128xf32>
      %c0_14 = arith.constant 0 : index
      %c0_15 = arith.constant 0 : index
      %16 = vector.load %arg6[%c0_14, %c0_15] : memref<8x128xf32, #tpu.memory_space<vmem>>, vector<8x128xf32>
      tpu.vector_store %arg6[%c0_14, %c0_15], %15 {strides = array<i32>} : memref<8x128xf32, #tpu.memory_space<vmem>>, vector<8x128xf32>,
    } else {
    }
    return
  }
  func.func @transform_0(%arg0: i32) -> (i32, i32) {
    %c0_i32 = arith.constant 0 : i32
    %c0_i32_0 = arith.constant 0 : i32
    %c0_i32_1 = arith.constant 0 : i32
    return %c0_i32, %c0_i32_0 : i32, i32
  }
  func.func @transform_1(%arg0: i32) -> (i32, i32) {
    %c0_i32 = arith.constant 0 : i32
    %c0_i32_0 = arith.constant 0 : i32
    %c0_i32_1 = arith.constant 0 : i32
    return %c0_i32, %c0_i32_0 : i32, i32
  }
  func.func @transform_2(%arg0: i32) -> (i32, i32) {
    %c0_i32 = arith.constant 0 : i32
    %c0_i32_0 = arith.constant 0 : i32
    %c0_i32_1 = arith.constant 0 : i32
    return %c0_i32, %c0_i32_0 : i32, i32
  }
  func.func @transform_3(%arg0: i32) -> (i32, i32) {
    %c0_i32 = arith.constant 0 : i32
    %c0_i32_0 = arith.constant 0 : i32
    return %c0_i32, %arg0 : i32, i32
  }
  func.func @transform_4(%arg0: i32) -> (i32, i32) {
    %c0_i32 = arith.constant 0 : i32
    %c0_i32_0 = arith.constant 0 : i32
    return %c0_i32, %arg0 : i32, i32
  }
  func.func @transform_5(%arg0: i32) -> (i32, i32) {
    %c0_i32 = arith.constant 0 : i32
    %c0_i32_0 = arith.constant 0 : i32
    %c0_i32_1 = arith.constant 0 : i32
    return %c0_i32, %c0_i32_0 : i32, i32
  }
  func.func @transform_6(%arg0: i32) -> (i32, i32) {
    %c0_i32 = arith.constant 0 : i32
    %c0_i32_0 = arith.constant 0 : i32
    return %c0_i32, %arg0 : i32, i32
  }
}

</mosaic_0001>

<bundles_post_ra>
// kernel: _full_impl.1
= control target key start
LH: loop header
LB: loop body
LE: loop exit
PB: predicated region body
PF: predicated region fallthrough
CT: control target
= control target key end

     0   :  { %s9021_s0 = inlined_call_operand.vmem [shape: f32[8,49], index: 0, kind: input, shape index: {}]   ;;  %s9022_s1 = inlined_call_operand.vmem [shape: f32[49,128], index: 1, kind: input, shape index: {}]   ;;  %s9023_s2 = inlined_call_operand.vmem [shape: f32[112,56], index: 2, kind: input, shape index: {}]   ;;  %s9024_s3 = inlined_call_operand.hbm [shape: f32[56,4096], index: 3, kind: input, shape index: {}]   ;;  %s9025_s4 = inlined_call_operand.hbm [shape: f32[56,4096], index: 4, kind: input, shape index: {}]   ;;  %s9026_s5 = inlined_call_operand.vmem [shape: f32[8,128], index: 5, kind: output, shape index: {0}]   ;;  %s9027_s6 = inlined_call_operand.vmem [shape: f32[2,4096], index: 6, kind: output, shape index: {1}]  }
   0x1   :  { %9196 = sst [smem:[#allocation59_spill]] %s9024_s3 }
   0x2   :  { %12 = vsyncpa [#allocation3], 0 }
   0x3   :  { %14 = vsyncpa [#allocation3 + $0x1], 0 }
   0x4   :  { %15 = vsyncpa [#allocation5], 0 }
   0x5   :  { %17 = vsyncpa [#allocation5 + $0x1], 0  ;;  %s6418_s21 = smov 0   ;;  %s6420_s22 = smov 0  }
   0x6   :  { %s6422_s23 = smov 0   ;;  %s6424_s24 = smov 0  }
   0x7 LB: > { %s6437_s25 = sadd.s32 4294967295, %s6378_s24   ;;  %s6440_s26 = sadd.s32 1, %s6378_s24   ;;  %s6378_s24 = sphi %s6424_s24, %s9530_s24   ;;  %s6374_s23 = sphi %s6422_s23, %s9529_s23   ;;  %s6370_s22 = sphi %s6420_s22, %s9528_s22   ;;  %s6366_s21 = sphi %s6418_s21, %s9527_s21  }
   0x8   : > { %s90_s27 = ssub.s32 %s6378_s24, %s6440_s26  ;;  %s93_s28 = sadd.s32 1, %s6374_s23 }
   0x9   : > { %p91_p0 = scmp.eq.s32.totalorder %s90_s27, 0  ;;  %p100_p1 = scmp.ne.s32.totalorder %s6374_s23, %s6370_s22 }
   0xa   : > { %p101_p2 = scmp.eq.s32.totalorder %s6378_s24, 0  ;;  %p106_p3 = scmp.ne.s32.totalorder %s6370_s22, %s6366_s21 }
   0xb   : > { %s6450_s29 = scalar_select %p91_p0, %s6374_s23, %s93_s28  }
   0xc   : > { %p102_p4 = por %p101_p2, %p100_p1  ;;  %p107_p5 = scmp.eq.s32.totalorder %s6437_s25, 0 }
   0xd   : > { %9197 = sst [smem:[#allocation8_spill]] %s6450_s29  ;;  %p6244_p6 = scmp.lt.s32.totalorder %s6378_s24, 4 }
   0xe   : > { %p6454_p7 = por %p107_p5, %p106_p3  ;;  %s6459_s7 = sand.u32 1, %s6374_s23  }
   0xf   : > { %s6230_s8 = smul.u32 448, %s6459_s7  ;;  %s6228_s9 = sshll.u32 %s6378_s24, 6 }
  0x10   : > { %p6463_p8 = pnand %p6244_p6, %p102_p4  ;;  %s9200_s3 = sld [smem:[#allocation59_spill]] }
  0x11   : > { %s216_s15 = scalar_lea.vmem [#allocation2], %s6230_s8  ;;  %s213_s17 = scalar_lea.sflag [#allocation3], %s6459_s7 }
  0x12   : > { %s224_s16 = sshll.u32 %s216_s15, 4  ;;  %p6284_p10 = pneg %p6463_p8  ;;  %s225_s16 = int_to_ptr.vmem [resolvable:$true] %s224_s16 }
  0x16   : > { %s221_s13 = scalar_lea.hbm %s9200_s3, %s6228_s9  ;;  %s6287_s27 = scalar_lea.hbm %s9200_s3, 1792 }
  0x17   : > { %s222_s14 = sshll.u32 %s221_s13, 4  ;;  %s223_s14 = int_to_ptr.hbm [resolvable:$true] %s222_s14 }
  0x18   : > { %s6280_s18 = sshra.s32 %s223_s14, 4  ;;  %s6281_s18 = int_to_ptr.hbm [resolvable:$true] %s6280_s18 }
  0x19   : > { %s6282_s19 = scalar_lea.hbm %s6281_s18, 448  ;;  %p6288_p13 = scmp.lt.s32.totalorder %s6281_s18, %s9200_s3 }
  0x1a   : > { %p6283_p9 = scmp.ne.s32.totalorder %s6281_s18, %s6282_s19  ;;  %p6289_p0 = scmp.lt.s32.totalorder %s6287_s27, %s6282_s19 }
  0x1c   : > { %p6285_p11 = pnand %p6284_p10, %p6283_p9  ;;  %p6290_p1 = por %p6289_p0, %p6288_p13 }
  0x1e   : > { %p6286_p12 = pneg %p6285_p11 }
  0x20   : > { %p6291_p2 = pnand %p6290_p1, %p6286_p12 }
  0x22   : > { %6294 = shalt.err (!%p6291_p2)
}
  0x23   : > { %s6380_s12 = smov 4096   ;;  %s6381_s13 = smov 1024  }
  0x24   : > { %s6382_s15 = smov 64   ;;  %p6222_p3 = scmp.ge.s32.totalorder %s6378_s24, 1 }
  0x25   : > { %6240 = dma.hbm_to_vmem [thread:$0]  (!%p6463_p8), %s223_s14, 7168, %s225_s16, %s213_s17, %s6380_s12, %s6381_s13, %s6382_s15  }
  0x26   : > { %p254_p4 = scmp.lt.s32.totalorder %s6378_s24, 5  ;;  %s243_s21 = scalar_lea.hbm %s9025_s4, %s6228_s9 }
  0x27   : > { %s244_s27 = sshll.u32 %s243_s21, 4  ;;  %s238_s28 = scalar_lea.vmem [#allocation4], %s6230_s8  ;;  %s245_s27 = int_to_ptr.hbm [resolvable:$true] %s244_s27 }
  0x28   : > { %p6492_p5 = pnand %p6222_p3, %p254_p4  ;;  %s246_s11 = sshll.u32 %s238_s28, 4  ;;  %s247_s11 = int_to_ptr.vmem [resolvable:$true] %s246_s11 }
  0x29   : > { %s235_s3 = scalar_lea.sflag [#allocation5], %s6459_s7  ;;  %s6310_s29 = sshra.s32 %s245_s27, 4  ;;  %s6311_s29 = int_to_ptr.hbm [resolvable:$true] %s6310_s29 }
  0x2a   : > { %s6312_s14 = scalar_lea.hbm %s6311_s29, 448  ;;  %s6317_s17 = scalar_lea.hbm %s9025_s4, 1792 }
  0x2b   : > { %p6313_p6 = scmp.ne.s32.totalorder %s6311_s29, %s6312_s14  ;;  %p6318_p12 = scmp.lt.s32.totalorder %s6311_s29, %s9025_s4 }
  0x2c   : > { %p6319_p13 = scmp.lt.s32.totalorder %s6317_s17, %s6312_s14 }
  0x2d   : > { %p6315_p9 = pnand %p6313_p6, %p6284_p10 }
  0x2e   : > { %p6320_p0 = por %p6319_p13, %p6318_p12 }
  0x2f   : > { %p6316_p11 = pneg %p6315_p9 }
  0x31   : > { %p6321_p1 = pnand %p6320_p0, %p6316_p11 }
  0x33   : > { %6324 = shalt.err (!%p6321_p1)
}
  0x34   : > { %6243 = dma.hbm_to_vmem [thread:$0]  (!%p6463_p8), %s245_s27, 7168, %s247_s11, %s235_s3, %s6380_s12, %s6381_s13, %s6382_s15  }
  0x35   : > { %258 = sbr.rel (%p6492_p5) target bundleno = 1753 (0x6d9), region = 40 }
  0x3a   : > { %s260_s7 = sand.u32 1, %s6370_s22  }
  0x3b   : > { %s6232_s8 = smul.u32 448, %s260_s7  ;;  %s261_s20 = scalar_lea.sflag [#allocation3], %s260_s7 }
  0x3d   : > { %s6520_s21 = scalar_lea.vmem [#allocation2], %s6232_s8 }
  0x3e   : > { %6357 = dma.done.wait (%p6454_p7), %s261_s20, 7168  }
  0x3f   : > { %6359 = vsyncadd (%p6454_p7), %s261_s20, 4294960128  ;;  %s271_s29 = scalar_lea.sflag [#allocation5], %s260_s7  ;;  %s6526_s10 = scalar_lea.vmem [#allocation4], %s6232_s8 }
  0x40   : > { %6361 = dma.done.wait (%p6454_p7), %s271_s29, 7168  }
  0x41   : > { %6363 = vsyncadd (%p6454_p7), %s271_s29, 4294960128  ;;  %v379_v0 = vld [vmem:[%s6520_s21 + $0x180] sm:$0xff]  ;;  %vm387_vm0 = vcmask 457728   ;;  %v380_v18 = vld [vmem:[%s6520_s21 + $0x188] sm:$0xff]  ;;  %vm5834_vm1 = vcmask 1041408   ;;  %vm5836_vm2 = vcmask 1045508  }
  0x42   : > { %v371_v1 = vld [vmem:[%s6520_s21 + $0x140] sm:$0xff]  ;;  %v6535_v3 = vand.u32 4294901760, %v379_v0  ;;  %v6591_v30 = vand.u32 4294901760, %v380_v18  ;;  %v318_v36 = vld [vmem:[%s9023_s2 + $0x8] sm:$0xff]  ;;  %v319_v37 = vld [vmem:[%s9023_s2 + $0x10] sm:$0xff]  ;;  %vm5838_vm3 = vcmask 1043456  }
  0x43   : > { %v363_v2 = vld [vmem:[%s6520_s21 + $0x100] sm:$0xff]  ;;  %v6537_v4 = vand.u32 4294901760, %v371_v1  ;;  %v372_v45 = vld [vmem:[%s6520_s21 + $0x148] sm:$0xff]  ;;  %v392_v48 = vsel %vm387_vm0, %v318_v36, 0  ;;  %v395_v49 = vsel %vm387_vm0, %v319_v37, 0  ;;  %v320_v59 = vld [vmem:[%s9023_s2 + $0x18] sm:$0xff] }
  0x44   : > { %v6539_v5 = vand.u32 4294901760, %v363_v2  ;;  %v355_v6 = vld [vmem:[%s6520_s21 + $0xc0] sm:$0xff]  ;;  %440 = vmatpush.msra.mxu0 %v6535_v3  ;;  %v6556_v14 = vsub.f32 %v379_v0, %v6535_v3  ;;  %785 = vmatpush.msra.mxu3 %v6535_v3  ;;  %v6609_v35 = vsub.f32 %v380_v18, %v6591_v30  ;;  %v6640_v51 = vand.u32 4294901760, %v392_v48  ;;  %v364_v18 = vld [vmem:[%s6520_s21 + $0x108] sm:$0xff]  ;;  %s6223_s14 = sshll.u32 %s6437_s25, 3  ;;  %p6225_p8 = scmp.ne.s32.totalorder %s6437_s25, 0 }
  0x45   : > { %v347_v7 = vld [vmem:[%s6520_s21 + $0x80] sm:$0xff]  ;;  %v6544_v9 = vand.u32 4294901760, %v355_v6  ;;  %v6560_v15 = vsub.f32 %v371_v1, %v6537_v4  ;;  %v6642_v52 = vand.u32 4294901760, %v395_v49  ;;  %v6651_v56 = vand.u32 4294901760, %v372_v45  ;;  %p312_p7 = scmp.lt.s32.totalorder %s6223_s14, 31 }
  0x46   : > { %v339_v8 = vld [vmem:[%s6520_s21 + $0x40] sm:$0xff]  ;;  %v6546_v10 = vand.u32 4294901760, %v347_v7  ;;  %v6563_v16 = vsub.f32 %v363_v2, %v6539_v5  ;;  %442 = vmatpush.msra.mxu0 %v6537_v4  ;;  %685 = vmatpush.msra.mxu2 %v6556_v14  ;;  %v577_v23 = vand.u32 4294901760, %v6556_v14  ;;  %v1204_v44 = vand.u32 4294901760, %v6609_v35  ;;  %9205 = vst [vmem:[#allocation12_spill] sm:$0xff] %v6640_v51 }
  0x47   : > { %v6548_v11 = vand.u32 4294901760, %v339_v8  ;;  %v331_v12 = vld [vmem:[%s6520_s21] sm:$0xff]  ;;  %v6569_v19 = vsub.f32 %v355_v6, %v6544_v9  ;;  %v583_v24 = vand.u32 4294901760, %v6560_v15  ;;  %787 = vmatpush.msra.mxu3 %v6537_v4  ;;  %9206 = vst [vmem:[#allocation13_spill] sm:$0xff] %v6642_v52  ;;  %v6658_v58 = vsub.f32 %v392_v48, %v6640_v51  ;;  %s9532_s14 = smov (!%p312_p7, %s6223_s14), 31 }
  0x48   : > { %v317_v13 = vld [vmem:[%s9023_s2] sm:$0xff]  ;;  %v6565_v17 = vand.u32 4294901760, %v331_v12  ;;  %v6572_v20 = vsub.f32 %v347_v7, %v6546_v10  ;;  %v589_v25 = vand.u32 4294901760, %v6563_v16  ;;  %444 = vmatpush.msra.mxu0 %v6539_v5  ;;  %688 = vmatpush.msra.mxu2 %v6560_v15  ;;  %v578_v31 = vsub.f32 %v6556_v14, %v577_v23  ;;  %s6224_s24 = sshll.u32 %s9532_s14, 1 }
  0x49   : > { %v389_v21 = vsel %vm387_vm0, %v317_v13, 0  ;;  %v6576_v22 = vsub.f32 %v339_v8, %v6548_v11  ;;  %v595_v27 = vand.u32 4294901760, %v6569_v19  ;;  %v584_v32 = vsub.f32 %v6560_v15, %v583_v24  ;;  %789 = vmatpush.msra.mxu3 %v6539_v5  ;;  %9208 = vst [vmem:[#allocation15_spill] sm:$0xff] %v6658_v58  ;;  %v321_v14 = vld [vmem:[%s9023_s2 + $0x20] sm:$0xff]  ;;  %s8120_s9 = scalar_lea.vmem %s9027_s6, %s6224_s24 }
  0x4a   : > { %v6583_v26 = vand.u32 4294901760, %v389_v21  ;;  %v601_v28 = vand.u32 4294901760, %v6572_v20  ;;  %v6589_v29 = vsub.f32 %v331_v12, %v6565_v17  ;;  %v590_v33 = vsub.f32 %v6563_v16, %v589_v25  ;;  %446 = vmatpush.msra.mxu0 %v6544_v9  ;;  %691 = vmatpush.msra.mxu2 %v6563_v16  ;;  %v322_v16 = vld [vmem:[%s9023_s2 + $0x28] sm:$0xff] }
  0x4b   : > { %v579_v38 = vand.u32 4294901760, %v578_v31  ;;  %v585_v39 = vand.u32 4294901760, %v584_v32  ;;  %v596_v40 = vsub.f32 %v6569_v19, %v595_v27  ;;  %v607_v41 = vand.u32 4294901760, %v6576_v22  ;;  %791 = vmatpush.msra.mxu3 %v6544_v9 }
  0x4c   : > { %9202 = vst [vmem:[#allocation9_spill] sm:$0xff] %v6583_v26  ;;  %v6606_v34 = vsub.f32 %v389_v21, %v6583_v26  ;;  %v602_v43 = vsub.f32 %v6572_v20, %v601_v28  ;;  %448 = vmatpush.msra.mxu0 %v6546_v10  ;;  %v591_v46 = vand.u32 4294901760, %v590_v33  ;;  %v613_v47 = vand.u32 4294901760, %v6589_v29  ;;  %694 = vmatpush.msra.mxu2 %v6569_v19 }
  0x4d   : > { %580 = vmatpush.msra.mxu1 %v579_v38  ;;  %793 = vmatpush.msra.mxu3 %v6546_v10  ;;  %v597_v53 = vand.u32 4294901760, %v596_v40  ;;  %v608_v54 = vsub.f32 %v6576_v22, %v607_v41  ;;  %v1205_v55 = vsub.f32 %v6609_v35, %v1204_v44  ;;  %v6668_v62 = vsub.f32 %v372_v45, %v6651_v56 }
  0x4e   : > { %9203 = vst [vmem:[#allocation10_spill] sm:$0xff] %v6606_v34  ;;  %v6625_v42 = vand.u32 4294901760, %v6606_v34  ;;  %450 = vmatpush.msra.mxu0 %v6548_v11  ;;  %697 = vmatpush.msra.mxu2 %v6572_v20  ;;  %v603_v60 = vand.u32 4294901760, %v602_v43  ;;  %v614_v61 = vsub.f32 %v6589_v29, %v613_v47  ;;  %v6673_v63 = vand.u32 4294901760, %v6658_v58 }
  0x4f   : > { %586 = vmatpush.msra.mxu1 %v585_v39  ;;  %795 = vmatpush.msra.mxu3 %v6548_v11  ;;  %v6676_v0 = vsub.f32 %v395_v49, %v6642_v52  ;;  %v609_v1 = vand.u32 4294901760, %v608_v54  ;;  %v1206_v2 = vand.u32 4294901760, %v1205_v55  ;;  %v9031_v6 = vand.u32 4294901760, %v6668_v62 }
  0x50   : > { %9204 = vst [vmem:[#allocation11_spill] sm:$0xff] %v6625_v42  ;;  %v456_v50 = vsub.f32 %v6606_v34, %v6625_v42  ;;  %452 = vmatpush.msra.mxu0 %v6565_v17  ;;  %700 = vmatpush.msra.mxu2 %v6576_v22  ;;  %v398_v7 = vsel %vm387_vm0, %v320_v59, 0  ;;  %v464_v8 = vsub.f32 %v6658_v58, %v6673_v63  ;;  %v615_v12 = vand.u32 4294901760, %v614_v61 }
  0x51   : > { %592 = vmatpush.msra.mxu1 %v591_v46  ;;  %9209 = vst [vmem:[#allocation16_spill] sm:$0xff] %v6673_v63  ;;  %797 = vmatpush.msra.mxu3 %v6565_v17  ;;  %v1211_v13 = vsub.f32 %v6668_v62, %v9031_v6  ;;  %v6696_v31 = vand.u32 4294901760, %v6676_v0  ;;  %v6698_v32 = vand.u32 4294901760, %v398_v7  ;;  %v6700_v33 = vand.u32 4294901760, %v364_v18 }
  0x52   : > { %v6654_v57 = vand.u32 4294901760, %v456_v50  ;;  %9210 = vst [vmem:[#allocation17_spill] sm:$0xff] %v6676_v0  ;;  %703 = vmatpush.msra.mxu2 %v6589_v29  ;;  %801 = vmatmul.f32.vlgmr.msra.gmra.mxu3 %v6625_v42  ;;  %v6693_v21 = vand.u32 4294901760, %v464_v8  ;;  %v325_v8 = vld [vmem:[%s9023_s2 + $0x40] sm:$0xff]  ;;  %vm5854_vm4 = vcmask 1041409   ;;  %vm5856_vm5 = vcmask 1043459  }
  0x53   : > { %598 = vmatpush.msra.mxu1 %v597_v53  ;;  %706 = vmatmul.f32.vlgmr.msra.gmra.mxu2 %v6606_v34  ;;  %9212 = vst [vmem:[#allocation19_spill] sm:$0xff] %v6696_v31  ;;  %v1212_v36 = vand.u32 4294901760, %v1211_v13  ;;  %v472_v37 = vsub.f32 %v6676_v0, %v6696_v31  ;;  %v6716_v38 = vsub.f32 %v398_v7, %v6698_v32  ;;  %v324_v53 = vld [vmem:[%s9023_s2 + $0x38] sm:$0xff]  ;;  %vm5858_vm6 = vcmask 1045509  }
  0x54   : > { %9207 = vst [vmem:[#allocation14_spill] sm:$0xff] %v6654_v57  ;;  %458 = vmatmul.f32.vlgmr.msra.gmra.mxu0 %v6654_v57  ;;  %1067 = vmatpush.msrb.mxu2 %v6591_v30  ;;  %v410_v59 = vsel %vm387_vm0, %v324_v53, 0  ;;  %vm5860_vm7 = vcmask 1047559  }
  0x55   : > { %604 = vmatpush.msra.mxu1 %v603_v60  ;;  %895 = vmatpush.msrb.mxu0 %v577_v23  ;;  %9211 = vst [vmem:[#allocation18_spill] sm:$0xff] %v6693_v21  ;;  %v6709_v23 = vsub.f32 %v364_v18, %v6700_v33  ;;  %v6730_v40 = vand.u32 4294901760, %v472_v37  ;;  %v348_v60 = vld [vmem:[%s6520_s21 + $0x88] sm:$0xff] }
  0x56   : > { %9213 = vst [vmem:[#allocation20_spill] sm:$0xff] %v6698_v32  ;;  %1207 = vmatpush.msrb.mxu3 %v1206_v2  ;;  %1069 = vmatpush.msrb.mxu2 %v6651_v56  ;;  %v6828_v2 = vand.u32 4294901760, %v410_v59  ;;  %v6830_v7 = vand.u32 4294901760, %v348_v60 }
  0x57   : > { %610 = vmatpush.msra.mxu1 %v609_v1  ;;  %899 = vmatpush.msrb.mxu0 %v583_v24  ;;  %9214 = vst [vmem:[#allocation21_spill] sm:$0xff] %v6716_v38  ;;  %v9030_v15 = vand.u32 4294901760, %v6709_v23  ;;  %v401_v24 = vsel %vm387_vm0, %v321_v14, 0  ;;  %v413_v14 = vsel %vm387_vm0, %v325_v8, 0 }
  0x58   : > { %1213 = vmatpush.msrb.mxu3 %v1212_v36  ;;  %1071 = vmatpush.msrb.mxu2 %v6700_v33  ;;  %9215 = vst [vmem:[#allocation22_spill] sm:$0xff] %v6730_v40  ;;  %v6735_v43 = vand.u32 4294901760, %v401_v24  ;;  %v6845_v18 = vsub.f32 %v410_v59, %v6828_v2 }
  0x59   : > { %616 = vmatpush.msra.mxu1 %v615_v12  ;;  %903 = vmatpush.msrb.mxu0 %v589_v25  ;;  %v1217_v39 = vsub.f32 %v6709_v23, %v9030_v15  ;;  %9229 = vst [vmem:[#allocation36_spill] sm:$0xff] %v6828_v2  ;;  %v6837_v12 = vsub.f32 %v348_v60, %v6830_v7 }
  0x5a   : > { %618 = vmatmul.f32.vlgmr.msra.gmra.mxu1 %v6583_v26  ;;  %807 = vmatmul.f32.gmra.mxu3 %v6673_v63  ;;  %9217 = vst [vmem:[#allocation24_spill] sm:$0xff] %v6735_v43  ;;  %v6751_v19 = vsub.f32 %v401_v24, %v6735_v43 }
  0x5b   : > { %987 = vmatpush.msrb.mxu1 %v6535_v3  ;;  %711 = vmatmul.f32.gmra.mxu2 %v6658_v58  ;;  %v6733_v3 = vand.u32 4294901760, %v6716_v38  ;;  %v1218_v45 = vand.u32 4294901760, %v1217_v39  ;;  %9230 = vst [vmem:[#allocation37_spill] sm:$0xff] %v6845_v18  ;;  %v9028_v36 = vand.u32 4294901760, %v6837_v12  ;;  %v6858_v39 = vand.u32 4294901760, %v6845_v18 }
  0x5c   : > { %466 = vmatmul.f32.gmra.mxu0 %v6693_v21  ;;  %9218 = vst [vmem:[#allocation25_spill] sm:$0xff] %v6751_v19  ;;  %v6764_v25 = vand.u32 4294901760, %v6751_v19 }
  0x5d   : > { %989 = vmatpush.msrb.mxu1 %v6537_v4  ;;  %9216 = vst [vmem:[#allocation23_spill] sm:$0xff] %v6733_v3  ;;  %907 = vmatpush.msrb.mxu0 %v595_v27  ;;  %v480_v4 = vsub.f32 %v6716_v38, %v6733_v3  ;;  %v1229_v37 = vsub.f32 %v6837_v12, %v9028_v36 }
  0x5e   : > { %1219 = vmatpush.msrb.mxu3 %v1218_v45  ;;  %9220 = vst [vmem:[#allocation27_spill] sm:$0xff] %v6764_v25  ;;  %v6860_v45 = vand.u32 4294901760, %v413_v14 }
  0x5f   : > { %991 = vmatpush.msrb.mxu1 %v6539_v5  ;;  %911 = vmatpush.msrb.mxu0 %v601_v28  ;;  %v404_v5 = vsel %vm387_vm0, %v322_v16, 0  ;;  %v6761_v20 = vand.u32 4294901760, %v480_v4  ;;  %9232 = vst [vmem:[#allocation39_spill] sm:$0xff] %v6858_v39  ;;  %v1230_v16 = vand.u32 4294901760, %v1229_v37  ;;  %v326_v4 = vld [vmem:[%s9023_s2 + $0x48] sm:$0xff] }
  0x60   : > { %v6766_v27 = vand.u32 4294901760, %v404_v5  ;;  %9233 = vst [vmem:[#allocation40_spill] sm:$0xff] %v6860_v45 }
  0x61   : > { %993 = vmatpush.msrb.mxu1 %v6544_v9  ;;  %915 = vmatpush.msrb.mxu0 %v607_v41  ;;  %v356_v9 = vld [vmem:[%s6520_s21 + $0xc8] sm:$0xff]  ;;  %9219 = vst [vmem:[#allocation26_spill] sm:$0xff] %v6761_v20 }
  0x62   : > { %622 = vmatmul.f32.gmra.mxu1 %v6640_v51  ;;  %813 = vmatmul.f32.gmra.mxu3 %v6696_v31  ;;  %9221 = vst [vmem:[#allocation28_spill] sm:$0xff] %v6766_v27  ;;  %v6768_v28 = vand.u32 4294901760, %v356_v9  ;;  %v6788_v22 = vsub.f32 %v404_v5, %v6766_v27  ;;  %v512_v5 = vsub.f32 %v6845_v18, %v6858_v39 }
  0x63   : > { %995 = vmatpush.msrb.mxu1 %v6546_v10  ;;  %716 = vmatmul.f32.gmra.mxu2 %v6676_v0  ;;  %v323_v10 = vld [vmem:[%s9023_s2 + $0x30] sm:$0xff] }
  0x64   : > { %474 = vmatmul.f32.gmra.mxu0 %v6730_v40  ;;  %1073 = vmatpush.msrb.mxu2 %v6768_v28  ;;  %9222 = vst [vmem:[#allocation29_spill] sm:$0xff] %v6788_v22  ;;  %v407_v41 = vsel %vm387_vm0, %v323_v10, 0  ;;  %v6803_v48 = vand.u32 4294901760, %v6788_v22  ;;  %v416_v10 = vsel %vm387_vm0, %v326_v4, 0 }
  0x65   : > { %997 = vmatpush.msrb.mxu1 %v6548_v11  ;;  %919 = vmatpush.msrb.mxu0 %v613_v47  ;;  %v6779_v11 = vsub.f32 %v356_v9, %v6768_v28  ;;  %v6805_v49 = vand.u32 4294901760, %v407_v41  ;;  %v6870_v9 = vsub.f32 %v413_v14, %v6860_v45 }
  0x66   : > { %9224 = vst [vmem:[#allocation31_spill] sm:$0xff] %v6803_v48  ;;  %v496_v54 = vsub.f32 %v6788_v22, %v6803_v48  ;;  %1075 = vmatpush.msrb.mxu2 %v6830_v7 }
  0x67   : > { %999 = vmatpush.msrb.mxu1 %v6565_v17  ;;  %1312 = vmatpush.msra.mxu0 %v6609_v35  ;;  %v488_v17 = vsub.f32 %v6751_v19, %v6764_v25  ;;  %v9029_v29 = vand.u32 4294901760, %v6779_v11  ;;  %9225 = vst [vmem:[#allocation32_spill] sm:$0xff] %v6805_v49  ;;  %v6817_v55 = vsub.f32 %v407_v41, %v6805_v49  ;;  %v6876_v41 = vand.u32 4294901760, %v512_v5 }
  0x68   : > { %v6823_v61 = vand.u32 4294901760, %v496_v54  ;;  %9234 = vst [vmem:[#allocation41_spill] sm:$0xff] %v6870_v9  ;;  %v327_v54 = vld [vmem:[%s9023_s2 + $0x50] sm:$0xff] }
  0x69   : > { %1412 = vmatpush.msra.mxu1 %v6591_v30  ;;  %1315 = vmatpush.msra.mxu0 %v6668_v62  ;;  %v1223_v46 = vsub.f32 %v6779_v11, %v9029_v29  ;;  %v6800_v47 = vand.u32 4294901760, %v488_v17  ;;  %9226 = vst [vmem:[#allocation33_spill] sm:$0xff] %v6817_v55  ;;  %v6826_v1 = vand.u32 4294901760, %v6817_v55  ;;  %v340_v17 = vld [vmem:[%s6520_s21 + $0x48] sm:$0xff]  ;;  %v419_v14 = vsel %vm387_vm0, %v327_v54, 0 }
  0x6a   : > { %626 = vmatmul.f32.gmra.mxu1 %v6642_v52  ;;  %819 = vmatmul.f32.gmra.mxu3 %v6733_v3  ;;  %9227 = vst [vmem:[#allocation34_spill] sm:$0xff] %v6823_v61  ;;  %v6883_v53 = vand.u32 4294901760, %v340_v17  ;;  %v6911_v5 = vand.u32 4294901760, %v419_v14 }
  0x6b   : > { %1414 = vmatpush.msra.mxu1 %v6651_v56  ;;  %1318 = vmatpush.msra.mxu0 %v6709_v23  ;;  %9223 = vst [vmem:[#allocation30_spill] sm:$0xff] %v6800_v47  ;;  %v1224_v50 = vand.u32 4294901760, %v1223_v46  ;;  %v504_v13 = vsub.f32 %v6817_v55, %v6826_v1  ;;  %v6879_v46 = vand.u32 4294901760, %v6870_v9 }
  0x6c   : > { %482 = vmatmul.f32.gmra.mxu0 %v6761_v20  ;;  %721 = vmatmul.f32.gmra.mxu2 %v6716_v38  ;;  %9228 = vst [vmem:[#allocation35_spill] sm:$0xff] %v6826_v1  ;;  %v6890_v59 = vsub.f32 %v340_v17, %v6883_v53  ;;  %v328_v17 = vld [vmem:[%s9023_s2 + $0x58] sm:$0xff] }
  0x6d   : > { %1416 = vmatpush.msra.mxu1 %v6700_v33  ;;  %1321 = vmatpush.msra.mxu0 %v6779_v11  ;;  %v6855_v24 = vand.u32 4294901760, %v504_v13  ;;  %9235 = vst [vmem:[#allocation42_spill] sm:$0xff] %v6876_v41  ;;  %v520_v60 = vsub.f32 %v6870_v9, %v6879_v46 }
  0x6e   : > { %1225 = vmatpush.msrb.mxu3 %v1224_v50  ;;  %9236 = vst [vmem:[#allocation43_spill] sm:$0xff] %v6879_v46  ;;  %v6881_v50 = vand.u32 4294901760, %v416_v10  ;;  %1077 = vmatpush.msrb.mxu2 %v6883_v53  ;;  %v1234_v13 = vand.u32 4294901760, %v6890_v59 }
  0x6f   : > { %1418 = vmatpush.msra.mxu1 %v6768_v28  ;;  %1324 = vmatpush.msra.mxu0 %v6837_v12  ;;  %9231 = vst [vmem:[#allocation38_spill] sm:$0xff] %v6855_v24 }
  0x70   : > { %1231 = vmatpush.msrb.mxu3 %v1230_v16  ;;  %9237 = vst [vmem:[#allocation44_spill] sm:$0xff] %v6881_v50  ;;  %v6898_v8 = vsub.f32 %v416_v10, %v6881_v50  ;;  %v1235_v37 = vsub.f32 %v6890_v59, %v1234_v13  ;;  %v6906_v16 = vand.u32 4294901760, %v520_v60  ;;  %v422_v60 = vsel %vm387_vm0, %v328_v17, 0 }
  0x71   : > { %1420 = vmatpush.msra.mxu1 %v6830_v7  ;;  %1327 = vmatpush.msra.mxu0 %v6890_v59  ;;  %v6921_v59 = vsub.f32 %v419_v14, %v6911_v5  ;;  %v6932_v29 = vand.u32 4294901760, %v422_v60  ;;  %v329_v14 = vld [vmem:[%s9023_s2 + $0x60] sm:$0xff] }
  0x72   : > { %630 = vmatmul.f32.gmra.mxu1 %v6698_v32  ;;  %825 = vmatmul.f32.gmra.mxu3 %v6764_v25  ;;  %9238 = vst [vmem:[#allocation45_spill] sm:$0xff] %v6898_v8  ;;  %v6909_v4 = vand.u32 4294901760, %v6898_v8  ;;  %v1236_v10 = vand.u32 4294901760, %v1235_v37  ;;  %v332_v37 = vld [vmem:[%s6520_s21 + $0x8] sm:$0xff] }
  0x73   : > { %1422 = vmatpush.msra.mxu1 %v6883_v53  ;;  %9239 = vst [vmem:[#allocation46_spill] sm:$0xff] %v6906_v16  ;;  %v6930_v36 = vand.u32 4294901760, %v6921_v59  ;;  %v1078_v15 = vand.u32 4294901760, %v332_v37 }
  0x74   : > { %490 = vmatmul.f32.gmra.mxu0 %v6800_v47  ;;  %726 = vmatmul.f32.gmra.mxu2 %v6751_v19  ;;  %9240 = vst [vmem:[#allocation47_spill] sm:$0xff] %v6909_v4  ;;  %v528_v54 = vsub.f32 %v6898_v8, %v6909_v4 }
  0x75   : > { %1237 = vmatpush.msrb.mxu3 %v1236_v10  ;;  %1079 = vmatpush.msrb.mxu2 %v1078_v15  ;;  %v1239_v6 = vsub.f32 %v332_v37, %v1078_v15  ;;  %v536_v17 = vsub.f32 %v6921_v59, %v6930_v36 }
  0x76   : > { %v6927_v10 = vand.u32 4294901760, %v528_v54  ;;  %1424 = vmatpush.msra.mxu1 %v1078_v15  ;;  %v6944_v54 = vsub.f32 %v422_v60, %v6932_v29 }
  0x77   : > { %1522 = vmatpush.msra.mxu2 %v1204_v44  ;;  %1330 = vmatpush.msra.mxu0 %v1239_v6  ;;  %v6951_v44 = vand.u32 4294901760, %v536_v17 }
  0x78   : > { %9241 = vst [vmem:[#allocation48_spill] sm:$0xff] %v6927_v10  ;;  %v6954_v37 = vand.u32 4294901760, %v6944_v54 }
  0x79   : > { %9243 = vst [vmem:[#allocation49_spill] sm:$0xff] %v6951_v44 }
  0x7a   : > { %634 = vmatmul.f32.gmra.mxu1 %v6735_v43  ;;  %831 = vmatmul.f32.gmra.mxu3 %v6803_v48 }
  0x7c   : > { %498 = vmatmul.f32.gmra.mxu0 %v6823_v61  ;;  %731 = vmatmul.f32.gmra.mxu2 %v6788_v22 }
  0x82   : > { %638 = vmatmul.f32.gmra.mxu1 %v6766_v27  ;;  %837 = vmatmul.f32.gmra.mxu3 %v6826_v1 }
  0x84   : > { %506 = vmatmul.f32.gmra.mxu0 %v6855_v24  ;;  %736 = vmatmul.f32.gmra.mxu2 %v6817_v55 }
  0x8a   : > { %642 = vmatmul.f32.gmra.mxu1 %v6805_v49  ;;  %843 = vmatmul.f32.gmra.mxu3 %v6858_v39  ;;  %v425_v39 = vsel %vm387_vm0, %v329_v14, 0  ;;  %v9246_v14 = vand.u32 4294901760, %v6837_v12 }
  0x8b   : > { %v6956_v1 = vand.u32 4294901760, %v425_v39 }
  0x8c   : > { %514 = vmatmul.f32.gmra.mxu0 %v6876_v41  ;;  %741 = vmatmul.f32.gmra.mxu2 %v6845_v18  ;;  %v9244_v18 = vand.u32 4294901760, %v6709_v23 }
  0x8d   : > { %v6971_v23 = vsub.f32 %v425_v39, %v6956_v1 }
  0x92   : > { %646 = vmatmul.f32.gmra.mxu1 %v6828_v2  ;;  %849 = vmatmul.f32.gmra.mxu3 %v6879_v46  ;;  %v1240_v46 = vand.u32 4294901760, %v1239_v6 }
  0x94   : > { %522 = vmatmul.f32.gmra.mxu0 %v6906_v16  ;;  %746 = vmatmul.f32.gmra.mxu2 %v6870_v9  ;;  %v9242_v9 = vand.u32 4294901760, %v6668_v62  ;;  %v1241_v35 = vsub.f32 %v1239_v6, %v1240_v46  ;;  %v330_v62 = vld [vmem:[%s9023_s2 + $0x68] sm:$0xff]  ;;  %v9245_v6 = vand.u32 4294901760, %v6779_v11  ;;  %v6983_v11 = vand.u32 4294901760, %v6971_v23 }
  0x96   : > { %1526 = vmatpush.msra.mxu2 %v9242_v9  ;;  %v1242_v60 = vand.u32 4294901760, %v1241_v35  ;;  %v544_v9 = vsub.f32 %v6944_v54, %v6954_v37  ;;  %9248 = vst [vmem:[#allocation51_spill] sm:$0xff] %v6983_v11 }
  0x98   : > { %1530 = vmatpush.msra.mxu2 %v9244_v18  ;;  %1243 = vmatpush.msrb.mxu3 %v1242_v60  ;;  %v428_v18 = vsel %vm387_vm0, %v330_v62, 0 }
  0x99   : > { %v6985_v39 = vand.u32 4294901760, %v428_v18 }
  0x9a   : > { %650 = vmatmul.f32.gmra.mxu1 %v6860_v45  ;;  %855 = vmatmul.f32.gmra.mxu3 %v6909_v4 }
  0x9b   : > { %1534 = vmatpush.msra.mxu2 %v9245_v6  ;;  %1614 = vmatpush.msra.mxu3 %v6591_v30  ;;  %v6980_v30 = vand.u32 4294901760, %v544_v9 }
  0x9c   : > { %530 = vmatmul.f32.gmra.mxu0 %v6927_v10  ;;  %751 = vmatmul.f32.gmra.mxu2 %v6898_v8 }
  0x9d   : > { %1616 = vmatpush.msra.mxu3 %v6651_v56  ;;  %1538 = vmatpush.msra.mxu2 %v9246_v14  ;;  %9247 = vst [vmem:[#allocation50_spill] sm:$0xff] %v6980_v30  ;;  %v552_v56 = vsub.f32 %v6971_v23, %v6983_v11 }
  0x9f   : > { %1618 = vmatpush.msra.mxu3 %v6700_v33  ;;  %1542 = vmatpush.msra.mxu2 %v1234_v13  ;;  %v6994_v33 = vsub.f32 %v428_v18, %v6985_v39 }
  0xa1   : > { %1620 = vmatpush.msra.mxu3 %v6768_v28  ;;  %1546 = vmatpush.msra.mxu2 %v1240_v46  ;;  %v6999_v28 = vand.u32 4294901760, %v552_v56 }
  0xa2   : > { %654 = vmatmul.f32.gmra.mxu1 %v6881_v50  ;;  %861 = vmatmul.f32.gmra.mxu3 %v6930_v36 }
  0xa3   : > { %1622 = vmatpush.msra.mxu3 %v6830_v7  ;;  %9249 = vst [vmem:[#allocation52_spill] sm:$0xff] %v6999_v28  ;;  %v7002_v7 = vand.u32 4294901760, %v6994_v33 }
  0xa4   : > { %538 = vmatmul.f32.gmra.mxu0 %v6951_v44  ;;  %756 = vmatmul.f32.gmra.mxu2 %v6921_v59 }
  0xa5   : > { %1624 = vmatpush.msra.mxu3 %v6883_v53  ;;  %9250 = vst [vmem:[#allocation53_spill] sm:$0xff] %v7002_v7  ;;  %v560_v12 = vsub.f32 %v6994_v33, %v7002_v7 }
  0xa7   : > { %1626 = vmatpush.msra.mxu3 %v1078_v15  ;;  %v7010_v46 = vand.u32 4294901760, %v560_v12 }
  0xa9   : > { %9251 = vst [vmem:[#allocation54_spill] sm:$0xff] %v7010_v46 }
  0xaa   : > { %658 = vmatmul.f32.gmra.mxu1 %v6911_v5  ;;  %867 = vmatmul.f32.gmra.mxu3 %v6954_v37 }
  0xac   : > { %546 = vmatmul.f32.gmra.mxu0 %v6980_v30  ;;  %761 = vmatmul.f32.gmra.mxu2 %v6944_v54 }
  0xb2   : > { %662 = vmatmul.f32.gmra.mxu1 %v6932_v29  ;;  %873 = vmatmul.f32.gmra.mxu3 %v6983_v11 }
  0xb4   : > { %554 = vmatmul.f32.gmra.mxu0 %v6999_v28  ;;  %766 = vmatmul.f32.gmra.mxu2 %v6971_v23 }
  0xba   : > { %666 = vmatmul.f32.gmra.mxu1 %v6956_v1  ;;  %879 = vmatmul.f32.gmra.mxu3 %v7002_v7 }
  0xbc   : > { %562 = vmatmul.f32.gmra.mxu0 %v7010_v46  ;;  %771 = vmatmul.f32.gmra.mxu2 %v6994_v33 }
  0xc2   : > { %670 = vmatmul.f32.gmra.mxu1 %v6985_v39  ;;  %1245 = vmatmul.f32.vlgmr.msrb.gmra.mxu3 %v6583_v26 }
  0xc4   : > { %921 = vmatmul.f32.vlgmr.msrb.gmra.mxu0 %v6583_v26  ;;  %1085 = vmatmul.f32.vlgmr.msrb.gmra.mxu2 %v6654_v57 }
  0xca   : > { %1001 = vmatmul.f32.vlgmr.msrb.gmra.mxu1 %v6583_v26  ;;  %1249 = vmatmul.f32.gmra.mxu3 %v6640_v51 }
  0xcc   : > { %925 = vmatmul.f32.gmra.mxu0 %v6640_v51  ;;  %1093 = vmatmul.f32.gmra.mxu2 %v6693_v21 }
  0xd1   : > { %v459_v15 = vpop.f32.mrf.mxu0 }
  0xd2   : > { %1005 = vmatmul.f32.gmra.mxu1 %v6640_v51  ;;  %1253 = vmatmul.f32.gmra.mxu3 %v6642_v52 }
  0xd4   : > { %929 = vmatmul.f32.gmra.mxu0 %v6642_v52  ;;  %1101 = vmatmul.f32.gmra.mxu2 %v6730_v40 }
  0xd5   : > { %v802_v60 = vpop.f32.mrf.mxu3 }
  0xd6   : > { %v707_v35 = vpop.f32.mrf.mxu2 }
  0xd7   : > { %v619_v13 = vpop.f32.mrf.mxu1 }
  0xd8   : > { %v620_v17 = vadd.f32 %v619_v13, %v459_v15 }
  0xd9   : > { %v467_v53 = vpop.f32.mrf.mxu0 }
  0xda   : > { %v708_v62 = vadd.f32 %v707_v35, %v620_v17  ;;  %1009 = vmatmul.f32.gmra.mxu1 %v6642_v52  ;;  %1257 = vmatmul.f32.gmra.mxu3 %v6698_v32 }
  0xdc   : > { %933 = vmatmul.f32.gmra.mxu0 %v6698_v32  ;;  %v7030_v6 = vadd.f32 %v802_v60, %v708_v62  ;;  %1109 = vmatmul.f32.gmra.mxu2 %v6761_v20 }
  0xdd   : > { %v808_v12 = vpop.f32.mrf.mxu3 }
  0xde   : > { %v712_v56 = vpop.f32.mrf.mxu2 }
  0xdf   : > { %v623_v18 = vpop.f32.mrf.mxu1 }
  0xe0   : > { %v624_v14 = vadd.f32 %v623_v18, %v467_v53 }
  0xe1   : > { %v475_v9 = vpop.f32.mrf.mxu0 }
  0xe2   : > { %v713_v40 = vadd.f32 %v712_v56, %v624_v14  ;;  %1013 = vmatmul.f32.gmra.mxu1 %v6698_v32  ;;  %1261 = vmatmul.f32.gmra.mxu3 %v6735_v43 }
  0xe4   : > { %937 = vmatmul.f32.gmra.mxu0 %v6735_v43  ;;  %v7036_v15 = vadd.f32 %v808_v12, %v713_v40  ;;  %1117 = vmatmul.f32.gmra.mxu2 %v6800_v47 }
  0xe5   : > { %v814_v62 = vpop.f32.mrf.mxu3 }
  0xe6   : > { %v717_v60 = vpop.f32.mrf.mxu2 }
  0xe7   : > { %v627_v17 = vpop.f32.mrf.mxu1 }
  0xe8   : > { %v628_v35 = vadd.f32 %v627_v17, %v475_v9 }
  0xe9   : > { %v483_v13 = vpop.f32.mrf.mxu0 }
  0xea   : > { %v718_v20 = vadd.f32 %v717_v60, %v628_v35  ;;  %1017 = vmatmul.f32.gmra.mxu1 %v6735_v43  ;;  %1265 = vmatmul.f32.gmra.mxu3 %v6766_v27 }
  0xec   : > { %941 = vmatmul.f32.gmra.mxu0 %v6766_v27  ;;  %v7042_v53 = vadd.f32 %v814_v62, %v718_v20  ;;  %1125 = vmatmul.f32.gmra.mxu2 %v6823_v61 }
  0xed   : > { %v820_v12 = vpop.f32.mrf.mxu3 }
  0xef   : > { %v631_v18 = vpop.f32.mrf.mxu1  ;;  %v722_v56 = vpop.f32.mrf.mxu2 }
  0xf0   : > { %v632_v14 = vadd.f32 %v631_v18, %v483_v13 }
  0xf1   : > { %v491_v40 = vpop.f32.mrf.mxu0 }
  0xf2   : > { %v723_v47 = vadd.f32 %v722_v56, %v632_v14  ;;  %1021 = vmatmul.f32.gmra.mxu1 %v6766_v27  ;;  %1269 = vmatmul.f32.gmra.mxu3 %v6805_v49 }
  0xf4   : > { %945 = vmatmul.f32.gmra.mxu0 %v6805_v49  ;;  %v7048_v9 = vadd.f32 %v820_v12, %v723_v47  ;;  %1133 = vmatmul.f32.gmra.mxu2 %v6855_v24 }
  0xf5   : > { %v826_v62 = vpop.f32.mrf.mxu3 }
  0xf7   : > { %v635_v17 = vpop.f32.mrf.mxu1  ;;  %v727_v60 = vpop.f32.mrf.mxu2 }
  0xf8   : > { %v636_v35 = vadd.f32 %v635_v17, %v491_v40 }
  0xf9   : > { %v499_v20 = vpop.f32.mrf.mxu0 }
  0xfa   : > { %v728_v61 = vadd.f32 %v727_v60, %v636_v35  ;;  %1025 = vmatmul.f32.gmra.mxu1 %v6805_v49  ;;  %1273 = vmatmul.f32.gmra.mxu3 %v6828_v2 }
  0xfc   : > { %949 = vmatmul.f32.gmra.mxu0 %v6828_v2  ;;  %v7054_v13 = vadd.f32 %v826_v62, %v728_v61  ;;  %1141 = vmatmul.f32.gmra.mxu2 %v6876_v41 }
  0xfd   : > { %v832_v12 = vpop.f32.mrf.mxu3 }
  0xff   : > { %v639_v18 = vpop.f32.mrf.mxu1  ;;  %v732_v56 = vpop.f32.mrf.mxu2 }
 0x100   : > { %v640_v14 = vadd.f32 %v639_v18, %v499_v20 }
 0x101   : > { %v507_v47 = vpop.f32.mrf.mxu0 }
 0x102   : > { %v733_v24 = vadd.f32 %v732_v56, %v640_v14  ;;  %1029 = vmatmul.f32.gmra.mxu1 %v6828_v2  ;;  %1277 = vmatmul.f32.gmra.mxu3 %v6860_v45 }
 0x104   : > { %953 = vmatmul.f32.gmra.mxu0 %v6860_v45  ;;  %v7060_v40 = vadd.f32 %v832_v12, %v733_v24  ;;  %1149 = vmatmul.f32.gmra.mxu2 %v6906_v16 }
 0x105   : > { %v838_v62 = vpop.f32.mrf.mxu3 }
 0x107   : > { %v643_v17 = vpop.f32.mrf.mxu1  ;;  %v737_v60 = vpop.f32.mrf.mxu2 }
 0x108   : > { %v644_v35 = vadd.f32 %v643_v17, %v507_v47 }
 0x109   : > { %v515_v61 = vpop.f32.mrf.mxu0 }
 0x10a   : > { %v738_v41 = vadd.f32 %v737_v60, %v644_v35  ;;  %1033 = vmatmul.f32.gmra.mxu1 %v6860_v45  ;;  %1281 = vmatmul.f32.gmra.mxu3 %v6881_v50 }
 0x10c   : > { %957 = vmatmul.f32.gmra.mxu0 %v6881_v50  ;;  %v7066_v20 = vadd.f32 %v838_v62, %v738_v41  ;;  %1157 = vmatmul.f32.gmra.mxu2 %v6927_v10  ;;  %v381_v41 = vld [vmem:[%s6520_s21 + $0x190] sm:$0xff] }
 0x10d   : > { %v844_v12 = vpop.f32.mrf.mxu3  ;;  %v7077_v35 = vand.u32 4294901760, %v381_v41 }
 0x10f   : > { %v647_v18 = vpop.f32.mrf.mxu1  ;;  %v742_v56 = vpop.f32.mrf.mxu2  ;;  %1694 = vmatpush.msrb.mxu0 %v7077_v35  ;;  %2039 = vmatpush.msrb.mxu3 %v7077_v35 }
 0x110   : > { %v648_v14 = vadd.f32 %v647_v18, %v515_v61 }
 0x111   : > { %v523_v24 = vpop.f32.mrf.mxu0 }
 0x112   : > { %v743_v47 = vadd.f32 %v742_v56, %v648_v14  ;;  %1037 = vmatmul.f32.gmra.mxu1 %v6881_v50  ;;  %1285 = vmatmul.f32.gmra.mxu3 %v6911_v5  ;;  %v7080_v14 = vsub.f32 %v381_v41, %v7077_v35 }
 0x114   : > { %961 = vmatmul.f32.gmra.mxu0 %v6911_v5  ;;  %v7072_v17 = vadd.f32 %v844_v12, %v743_v47  ;;  %1165 = vmatmul.f32.gmra.mxu2 %v6951_v44 }
 0x115   : > { %v850_v18 = vpop.f32.mrf.mxu3  ;;  %1939 = vmatpush.msrb.mxu2 %v7080_v14 }
 0x117   : > { %v651_v62 = vpop.f32.mrf.mxu1  ;;  %v747_v61 = vpop.f32.mrf.mxu2 }
 0x118   : > { %v652_v10 = vadd.f32 %v651_v62, %v523_v24  ;;  %v9062_v24 = vand.u32 4294901760, %v7080_v14 }
 0x119   : > { %v531_v60 = vpop.f32.mrf.mxu0 }
 0x11a   : > { %v748_v56 = vadd.f32 %v747_v61, %v652_v10  ;;  %1041 = vmatmul.f32.gmra.mxu1 %v6911_v5  ;;  %1289 = vmatmul.f32.gmra.mxu3 %v6932_v29  ;;  %v1832_v47 = vsub.f32 %v7080_v14, %v9062_v24 }
 0x11c   : > { %965 = vmatmul.f32.gmra.mxu0 %v6932_v29  ;;  %v7087_v12 = vadd.f32 %v850_v18, %v748_v56  ;;  %1173 = vmatmul.f32.gmra.mxu2 %v6980_v30  ;;  %v1833_v16 = vand.u32 4294901760, %v1832_v47  ;;  %v373_v56 = vld [vmem:[%s6520_s21 + $0x150] sm:$0xff] }
 0x11d   : > { %v856_v44 = vpop.f32.mrf.mxu3  ;;  %v7102_v24 = vand.u32 4294901760, %v373_v56 }
 0x11e   : > { %1834 = vmatpush.msrb.mxu1 %v1833_v16 }
 0x11f   : > { %v655_v41 = vpop.f32.mrf.mxu1  ;;  %v752_v61 = vpop.f32.mrf.mxu2  ;;  %1696 = vmatpush.msrb.mxu0 %v7102_v24  ;;  %2041 = vmatpush.msrb.mxu3 %v7102_v24 }
 0x120   : > { %v656_v62 = vadd.f32 %v655_v41, %v531_v60 }
 0x121   : > { %v539_v10 = vpop.f32.mrf.mxu0 }
 0x122   : > { %v753_v21 = vadd.f32 %v752_v61, %v656_v62  ;;  %1045 = vmatmul.f32.gmra.mxu1 %v6932_v29  ;;  %1293 = vmatmul.f32.gmra.mxu3 %v6956_v1  ;;  %v7105_v62 = vsub.f32 %v373_v56, %v7102_v24 }
 0x124   : > { %969 = vmatmul.f32.gmra.mxu0 %v6956_v1  ;;  %v7097_v18 = vadd.f32 %v856_v44, %v753_v21  ;;  %1181 = vmatmul.f32.gmra.mxu2 %v6999_v28  ;;  %v9071_v16 = vand.u32 4294901760, %v7105_v62 }
 0x125   : > { %v862_v47 = vpop.f32.mrf.mxu3  ;;  %1942 = vmatpush.msrb.mxu2 %v7105_v62 }
 0x127   : > { %v659_v60 = vpop.f32.mrf.mxu1  ;;  %v757_v57 = vpop.f32.mrf.mxu2 }
 0x128   : > { %v660_v41 = vadd.f32 %v659_v60, %v539_v10  ;;  %v1838_v10 = vsub.f32 %v7105_v62, %v9071_v16 }
 0x129   : > { %v547_v30 = vpop.f32.mrf.mxu0 }
 0x12a   : > { %v758_v21 = vadd.f32 %v757_v57, %v660_v41  ;;  %1049 = vmatmul.f32.gmra.mxu1 %v6956_v1  ;;  %1297 = vmatmul.f32.gmra.mxu3 %v6985_v39  ;;  %v1839_v57 = vand.u32 4294901760, %v1838_v10 }
 0x12c   : > { %973 = vmatmul.f32.gmra.mxu0 %v6985_v39  ;;  %v7113_v44 = vadd.f32 %v862_v47, %v758_v21  ;;  %1189 = vmatmul.f32.gmra.mxu2 %v7010_v46  ;;  %v365_v21 = vld [vmem:[%s6520_s21 + $0x110] sm:$0xff] }
 0x12d   : > { %v868_v28 = vpop.f32.mrf.mxu3  ;;  %1840 = vmatpush.msrb.mxu1 %v1839_v57  ;;  %v7127_v16 = vand.u32 4294901760, %v365_v21 }
 0x12f   : > { %v663_v56 = vpop.f32.mrf.mxu1  ;;  %v762_v41 = vpop.f32.mrf.mxu2  ;;  %v7130_v57 = vsub.f32 %v365_v21, %v7127_v16  ;;  %1698 = vmatpush.msrb.mxu0 %v7127_v16  ;;  %2043 = vmatpush.msrb.mxu3 %v7127_v16 }
 0x130   : > { %v664_v60 = vadd.f32 %v663_v56, %v547_v30 }
 0x131   : > { %v555_v61 = vpop.f32.mrf.mxu0  ;;  %1945 = vmatpush.msrb.mxu2 %v7130_v57 }
 0x132   : > { %v763_v7 = vadd.f32 %v762_v41, %v664_v60  ;;  %1053 = vmatmul.f32.gmra.mxu1 %v6985_v39  ;;  %1628 = vmatmul.f32.vlgmr.msra.gmra.mxu3 %v6583_v26 }
 0x134   : > { %1333 = vmatmul.f32.vlgmr.msra.gmra.mxu0 %v6606_v34  ;;  %v7122_v47 = vadd.f32 %v868_v28, %v763_v7  ;;  %1548 = vmatmul.f32.vlgmr.msra.gmra.mxu2 %v6583_v26 }
 0x135   : > { %v874_v11 = vpop.f32.mrf.mxu3 }
 0x137   : > { %v667_v46 = vpop.f32.mrf.mxu1  ;;  %v767_v56 = vpop.f32.mrf.mxu2 }
 0x138   : > { %v668_v30 = vadd.f32 %v667_v46, %v555_v61  ;;  %v9080_v46 = vand.u32 4294901760, %v7130_v57 }
 0x139   : > { %v563_v10 = vpop.f32.mrf.mxu0 }
 0x13a   : > { %v768_v28 = vadd.f32 %v767_v56, %v668_v30  ;;  %1428 = vmatmul.f32.vlgmr.msra.gmra.mxu1 %v6625_v42  ;;  %1632 = vmatmul.f32.gmra.mxu3 %v6640_v51  ;;  %v1844_v61 = vsub.f32 %v7130_v57, %v9080_v46 }
 0x13c   : > { %1338 = vmatmul.f32.gmra.mxu0 %v6658_v58  ;;  %v7137_v7 = vadd.f32 %v874_v11, %v768_v28  ;;  %1552 = vmatmul.f32.gmra.mxu2 %v6640_v51  ;;  %v1845_v58 = vand.u32 4294901760, %v1844_v61  ;;  %v357_v28 = vld [vmem:[%s6520_s21 + $0xd0] sm:$0xff] }
 0x13d   : > { %v880_v56 = vpop.f32.mrf.mxu3  ;;  %v7152_v46 = vand.u32 4294901760, %v357_v28 }
 0x13e   : > { %1846 = vmatpush.msrb.mxu1 %v1845_v58 }
 0x13f   : > { %v671_v60 = vpop.f32.mrf.mxu1  ;;  %v772_v30 = vpop.f32.mrf.mxu2  ;;  %1700 = vmatpush.msrb.mxu0 %v7152_v46  ;;  %2045 = vmatpush.msrb.mxu3 %v7152_v46 }
 0x140   : > { %v672_v21 = vadd.f32 %v671_v60, %v563_v10 }
 0x141   : > { %v922_v41 = vpop.f32.mrf.mxu0 }
 0x142   : > { %v773_v26 = vadd.f32 %v772_v30, %v672_v21  ;;  %1434 = vmatmul.f32.gmra.mxu1 %v6673_v63  ;;  %1636 = vmatmul.f32.gmra.mxu3 %v6642_v52  ;;  %v7155_v21 = vsub.f32 %v357_v28, %v7152_v46  ;;  %v923_v58 = vadd.f32 %v922_v41, %v7030_v6 }
 0x144   : > { %1343 = vmatmul.f32.gmra.mxu0 %v6676_v0  ;;  %v7147_v11 = vadd.f32 %v880_v56, %v773_v26  ;;  %1556 = vmatmul.f32.gmra.mxu2 %v6642_v52  ;;  %v9093_v30 = vand.u32 4294901760, %v7155_v21 }
 0x145   : > { %v1246_v61 = vpop.f32.mrf.mxu3  ;;  %1948 = vmatpush.msrb.mxu2 %v7155_v21 }
 0x147   : > { %v1002_v10 = vpop.f32.mrf.mxu1  ;;  %v1086_v60 = vpop.f32.mrf.mxu2 }
 0x148   : > { %v7159_v26 = vadd.f32 %v1246_v61, %v1086_v60  ;;  %v1003_v28 = vadd.f32 %v1002_v10, %v923_v58  ;;  %v1850_v60 = vsub.f32 %v7155_v21, %v9093_v30  ;;  %v7173_v61 = vld [vmem:[%s6526_s10] sm:$0xff] }
 0x149   : > { %v926_v51 = vpop.f32.mrf.mxu0 }
 0x14a   : > { %9252 = vst [vmem:[#allocation55_spill] sm:$0xff] %v7159_v26  ;;  %1440 = vmatmul.f32.gmra.mxu1 %v6696_v31  ;;  %1640 = vmatmul.f32.gmra.mxu3 %v6698_v32  ;;  %v927_v56 = vadd.f32 %v926_v51, %v7036_v15  ;;  %v7176_v26 = vld [vmem:[%s6526_s10 + $0x40] sm:$0xff]  ;;  %v1851_v31 = vand.u32 4294901760, %v1850_v60  ;;  %v5502_v51 = vmul.f32 %v7173_v61, %v1003_v28 }
 0x14b   : > { %v7191_v28 = vld [vmem:[%s6526_s10 + $0x80] sm:$0xff] }
 0x14c   : > { %1348 = vmatmul.f32.gmra.mxu0 %v6716_v38  ;;  %1560 = vmatmul.f32.gmra.mxu2 %v6698_v32 }
 0x14d   : > { %v1250_v0 = vpop.f32.mrf.mxu3  ;;  %1852 = vmatpush.msrb.mxu1 %v1851_v31 }
 0x14f   : > { %v1006_v52 = vpop.f32.mrf.mxu1  ;;  %v1094_v41 = vpop.f32.mrf.mxu2 }
 0x150   : > { %v1007_v6 = vadd.f32 %v1006_v52, %v927_v56  ;;  %v7178_v32 = vadd.f32 %v1250_v0, %v1094_v41  ;;  %v349_v52 = vld [vmem:[%s6520_s21 + $0x90] sm:$0xff] }
 0x151   : > { %v930_v38 = vpop.f32.mrf.mxu0  ;;  %v7188_v56 = vand.u32 4294901760, %v349_v52 }
 0x152   : > { %v5510_v15 = vmul.f32 %v7176_v26, %v1007_v6  ;;  %1446 = vmatmul.f32.gmra.mxu1 %v6733_v3  ;;  %1644 = vmatmul.f32.gmra.mxu3 %v6735_v43  ;;  %v931_v58 = vadd.f32 %v930_v38, %v7042_v53 }
 0x153   : > { %1702 = vmatpush.msrb.mxu0 %v7188_v56  ;;  %2047 = vmatpush.msrb.mxu3 %v7188_v56 }
 0x154   : > { %1353 = vmatmul.f32.gmra.mxu0 %v6751_v19  ;;  %v5614_v10 = vadd.f32 %v5510_v15, %v5502_v51  ;;  %1564 = vmatmul.f32.gmra.mxu2 %v6735_v43  ;;  %v7198_v51 = vsub.f32 %v349_v52, %v7188_v56  ;;  %v7208_v52 = vld [vmem:[%s6526_s10 + $0xc0] sm:$0xff] }
 0x155   : > { %v1254_v30 = vpop.f32.mrf.mxu3 }
 0x156   : > { %1951 = vmatpush.msrb.mxu2 %v7198_v51 }
 0x157   : > { %v1010_v60 = vpop.f32.mrf.mxu1  ;;  %v1102_v41 = vpop.f32.mrf.mxu2 }
 0x158   : > { %v1011_v6 = vadd.f32 %v1010_v60, %v931_v58  ;;  %v7195_v31 = vadd.f32 %v1254_v30, %v1102_v41 }
 0x159   : > { %v934_v0 = vpop.f32.mrf.mxu0 }
 0x15a   : > { %v5518_v38 = vmul.f32 %v7191_v28, %v1011_v6  ;;  %1452 = vmatmul.f32.gmra.mxu1 %v6764_v25  ;;  %1648 = vmatmul.f32.gmra.mxu3 %v6766_v27  ;;  %v935_v15 = vadd.f32 %v934_v0, %v7048_v9 }
 0x15c   : > { %1358 = vmatmul.f32.gmra.mxu0 %v6788_v22  ;;  %v5615_v53 = vadd.f32 %v5614_v10, %v5518_v38  ;;  %1568 = vmatmul.f32.gmra.mxu2 %v6766_v27  ;;  %v341_v27 = vld [vmem:[%s6520_s21 + $0x50] sm:$0xff] }
 0x15d   : > { %v1258_v41 = vpop.f32.mrf.mxu3 }
 0x15f   : > { %v1014_v58 = vpop.f32.mrf.mxu1  ;;  %v1110_v6 = vpop.f32.mrf.mxu2 }
 0x160   : > { %v1015_v60 = vadd.f32 %v1014_v58, %v935_v15  ;;  %v7210_v22 = vadd.f32 %v1258_v41, %v1110_v6  ;;  %v7219_v15 = vld [vmem:[%s6526_s10 + $0x100] sm:$0xff] }
 0x161   : > { %v938_v30 = vpop.f32.mrf.mxu0 }
 0x162   : > { %9253 = vst [vmem:[#allocation56_spill] sm:$0xff] %v7210_v22  ;;  %v5526_v43 = vmul.f32 %v7208_v52, %v1015_v60  ;;  %1458 = vmatmul.f32.gmra.mxu1 %v6803_v48  ;;  %1652 = vmatmul.f32.gmra.mxu3 %v6805_v49  ;;  %v939_v9 = vadd.f32 %v938_v30, %v7054_v13  ;;  %v9104_v60 = vand.u32 4294901760, %v7198_v51  ;;  %v7225_v22 = vand.u32 4294901760, %v341_v27 }
 0x164   : > { %1363 = vmatmul.f32.gmra.mxu0 %v6817_v55  ;;  %v5616_v10 = vadd.f32 %v5615_v53, %v5526_v43  ;;  %1572 = vmatmul.f32.gmra.mxu2 %v6805_v49  ;;  %v9255_v53 = vld [vmem:[#allocation37_spill] sm:$0xff]  ;;  %v9256_v49 = vld [vmem:[#allocation35_spill] sm:$0xff]  ;;  %v1856_v13 = vsub.f32 %v7198_v51, %v9104_v60  ;;  %v7234_v30 = vsub.f32 %v341_v27, %v7225_v22 }
 0x165   : > { %v1262_v41 = vpop.f32.mrf.mxu3  ;;  %1704 = vmatpush.msrb.mxu0 %v7225_v22  ;;  %2049 = vmatpush.msrb.mxu3 %v7225_v22  ;;  %v7244_v60 = vld [vmem:[%s6526_s10 + $0x140] sm:$0xff] }
 0x166   : > { %1954 = vmatpush.msrb.mxu2 %v7234_v30 }
 0x167   : > { %v1018_v38 = vpop.f32.mrf.mxu1  ;;  %v1118_v6 = vpop.f32.mrf.mxu2 }
 0x168   : > { %v1019_v58 = vadd.f32 %v1018_v38, %v939_v9  ;;  %v7223_v55 = vadd.f32 %v1262_v41, %v1118_v6  ;;  %v1857_v38 = vand.u32 4294901760, %v1856_v13 }
 0x169   : > { %v942_v0 = vpop.f32.mrf.mxu0 }
 0x16a   : > { %9254 = vst [vmem:[#allocation57_spill] sm:$0xff] %v7223_v55  ;;  %v5534_v43 = vmul.f32 %v7219_v15, %v1019_v58  ;;  %1464 = vmatmul.f32.gmra.mxu1 %v9256_v49  ;;  %1656 = vmatmul.f32.gmra.mxu3 %v6828_v2  ;;  %v1861_v58 = vand.u32 4294901760, %v7234_v30  ;;  %v943_v6 = vadd.f32 %v942_v0, %v7060_v40  ;;  %v9258_v40 = vld [vmem:[#allocation41_spill] sm:$0xff]  ;;  %v9259_v0 = vld [vmem:[#allocation39_spill] sm:$0xff] }
 0x16b   : > { %1858 = vmatpush.msrb.mxu1 %v1857_v38 }
 0x16c   : > { %1368 = vmatmul.f32.gmra.mxu0 %v9255_v53  ;;  %v5617_v9 = vadd.f32 %v5616_v10, %v5534_v43  ;;  %1576 = vmatmul.f32.gmra.mxu2 %v6828_v2  ;;  %v1862_v53 = vsub.f32 %v7234_v30, %v1861_v58  ;;  %v333_v30 = vld [vmem:[%s6520_s21 + $0x10] sm:$0xff] }
 0x16d   : > { %v1266_v13 = vpop.f32.mrf.mxu3 }
 0x16e   : > { %v1863_v2 = vand.u32 4294901760, %v1862_v53  ;;  %v7259_v53 = vld [vmem:[%s6526_s10 + $0x180] sm:$0xff] }
 0x16f   : > { %v1022_v27 = vpop.f32.mrf.mxu1  ;;  %v1126_v43 = vpop.f32.mrf.mxu2 }
 0x170   : > { %v1023_v10 = vadd.f32 %v1022_v27, %v943_v6  ;;  %v7247_v55 = vadd.f32 %v1266_v13, %v1126_v43  ;;  %1864 = vmatpush.msrb.mxu1 %v1863_v2  ;;  %v7256_v27 = vand.u32 4294901760, %v333_v30  ;;  %v9260_v2 = vand.u32 4294901760, %v7080_v14 }
 0x171   : > { %v946_v41 = vpop.f32.mrf.mxu0 }
 0x172   : > { %9257 = vst [vmem:[#allocation58_spill] sm:$0xff] %v7247_v55  ;;  %v5542_v49 = vmul.f32 %v7244_v60, %v1023_v10  ;;  %1470 = vmatmul.f32.gmra.mxu1 %v9259_v0  ;;  %1660 = vmatmul.f32.gmra.mxu3 %v6860_v45  ;;  %v947_v6 = vadd.f32 %v946_v41, %v7066_v20  ;;  %v9262_v41 = vand.u32 4294901760, %v7105_v62 }
 0x173   : > { %v1866_v0 = vsub.f32 %v333_v30, %v7256_v27  ;;  %1706 = vmatpush.msrb.mxu0 %v7256_v27  ;;  %2051 = vmatpush.msrb.mxu3 %v7256_v27 }
 0x174   : > { %1373 = vmatmul.f32.gmra.mxu0 %v9258_v40  ;;  %v5618_v38 = vadd.f32 %v5617_v9, %v5542_v49  ;;  %1580 = vmatmul.f32.gmra.mxu2 %v6860_v45  ;;  %v9261_v9 = vld [vmem:[#allocation43_spill] sm:$0xff] }
 0x175   : > { %v1270_v40 = vpop.f32.mrf.mxu3  ;;  %2149 = vmatpush.msra.mxu0 %v9260_v2  ;;  %1957 = vmatpush.msrb.mxu2 %v1866_v0 }
 0x177   : > { %v1026_v13 = vpop.f32.mrf.mxu1  ;;  %v1134_v55 = vpop.f32.mrf.mxu2  ;;  %2153 = vmatpush.msra.mxu0 %v9262_v41 }
 0x178   : > { %v1027_v10 = vadd.f32 %v1026_v13, %v947_v6  ;;  %v7264_v49 = vadd.f32 %v1270_v40, %v1134_v55  ;;  %v1867_v6 = vand.u32 4294901760, %v1866_v0  ;;  %v9263_v55 = vand.u32 4294901760, %v7130_v57 }
 0x179   : > { %v950_v43 = vpop.f32.mrf.mxu0 }
 0x17a   : > { %v5550_v20 = vmul.f32 %v7259_v53, %v1027_v10  ;;  %1476 = vmatmul.f32.gmra.mxu1 %v9261_v9  ;;  %1664 = vmatmul.f32.gmra.mxu3 %v6881_v50  ;;  %v1868_v14 = vsub.f32 %v1866_v0, %v1867_v6  ;;  %v9264_v10 = vand.u32 4294901760, %v7155_v21  ;;  %v951_v57 = vadd.f32 %v950_v43, %v7072_v17  ;;  %v382_v21 = vld [vmem:[%s6520_s21 + $0x198] sm:$0xff] }
 0x17b   : > { %2157 = vmatpush.msra.mxu0 %v9263_v55  ;;  %v7293_v55 = vand.u32 4294901760, %v382_v21 }
 0x17c   : > { %1378 = vmatmul.f32.gmra.mxu0 %v6898_v8  ;;  %v7273_v30 = vadd.f32 %v5618_v38, %v5550_v20  ;;  %1584 = vmatmul.f32.gmra.mxu2 %v6881_v50  ;;  %v1869_v41 = vand.u32 4294901760, %v1868_v14  ;;  %v9265_v20 = vand.u32 4294901760, %v7198_v51 }
 0x17d   : > { %2161 = vmatpush.msra.mxu0 %v9264_v10  ;;  %v1274_v62 = vpop.f32.mrf.mxu3  ;;  %2321 = vmatpush.msra.mxu2 %v7293_v55 }
 0x17e   : > { %1870 = vmatpush.msrb.mxu1 %v1869_v41 }
 0x17f   : > { %v1030_v13 = vpop.f32.mrf.mxu1  ;;  %v1142_v2 = vpop.f32.mrf.mxu2  ;;  %2165 = vmatpush.msra.mxu0 %v9265_v20 }
 0x180   : > { %v7281_v38 = vadd.f32 %v1274_v62, %v1142_v2  ;;  %2241 = vmatpush.msra.mxu1 %v7077_v35  ;;  %v1031_v51 = vadd.f32 %v1030_v13, %v951_v57  ;;  %v7298_v35 = vsub.f32 %v382_v21, %v7293_v55 }
 0x181   : > { %v954_v40 = vpop.f32.mrf.mxu0  ;;  %2169 = vmatpush.msra.mxu0 %v1861_v58 }
 0x182   : > { %1482 = vmatmul.f32.gmra.mxu1 %v6909_v4  ;;  %1668 = vmatmul.f32.gmra.mxu3 %v6911_v5  ;;  %v955_v0 = vadd.f32 %v954_v40, %v7087_v12  ;;  %v5558_v12 = vmul.f32 %v7173_v61, %v1031_v51  ;;  %v9109_v40 = vand.u32 4294901760, %v7298_v35 }
 0x183   : > { %2173 = vmatpush.msra.mxu0 %v1867_v6  ;;  %2243 = vmatpush.msra.mxu1 %v7102_v24 }
 0x184   : > { %1383 = vmatmul.f32.gmra.mxu0 %v6921_v59  ;;  %1588 = vmatmul.f32.gmra.mxu2 %v6911_v5 }
 0x185   : > { %v1278_v17 = vpop.f32.mrf.mxu3  ;;  %2245 = vmatpush.msra.mxu1 %v7127_v16 }
 0x187   : > { %v1034_v10 = vpop.f32.mrf.mxu1  ;;  %v1150_v2 = vpop.f32.mrf.mxu2  ;;  %2247 = vmatpush.msra.mxu1 %v7152_v46 }
 0x188   : > { %v1035_v58 = vadd.f32 %v1034_v10, %v955_v0  ;;  %v7300_v43 = vadd.f32 %v1278_v17, %v1150_v2 }
 0x189   : > { %v958_v14 = vpop.f32.mrf.mxu0  ;;  %2249 = vmatpush.msra.mxu1 %v7188_v56 }
 0x18a   : > { %v5566_v6 = vmul.f32 %v7176_v26, %v1035_v58  ;;  %1488 = vmatmul.f32.gmra.mxu1 %v6930_v36  ;;  %1672 = vmatmul.f32.gmra.mxu3 %v6932_v29  ;;  %v959_v16 = vadd.f32 %v958_v14, %v7097_v18  ;;  %v2459_v26 = vsub.f32 %v7298_v35, %v9109_v40  ;;  %v9266_v58 = vld [vmem:[#allocation51_spill] sm:$0xff]  ;;  %v358_v40 = vld [vmem:[%s6520_s21 + $0xd8] sm:$0xff] }
 0x18b   : > { %2251 = vmatpush.msra.mxu1 %v7225_v22 }
 0x18c   : > { %1388 = vmatmul.f32.gmra.mxu0 %v6944_v54  ;;  %v5710_v24 = vadd.f32 %v5566_v6, %v5558_v12  ;;  %1592 = vmatmul.f32.gmra.mxu2 %v6932_v29  ;;  %v2460_v20 = vand.u32 4294901760, %v2459_v26  ;;  %v374_v26 = vld [vmem:[%s6520_s21 + $0x158] sm:$0xff] }
 0x18d   : > { %v1282_v41 = vpop.f32.mrf.mxu3  ;;  %2253 = vmatpush.msra.mxu1 %v7256_v27 }
 0x18e   : > { %2461 = vmatpush.msra.mxu3 %v2460_v20 }
 0x18f   : > { %v1038_v13 = vpop.f32.mrf.mxu1  ;;  %v1158_v62 = vpop.f32.mrf.mxu2 }
 0x190   : > { %v1039_v46 = vadd.f32 %v1038_v13, %v959_v16  ;;  %v7317_v57 = vadd.f32 %v1282_v41, %v1158_v62  ;;  %v9268_v62 = vld [vmem:[#allocation14_spill] sm:$0xff] }
 0x191   : > { %v962_v61 = vpop.f32.mrf.mxu0 }
 0x192   : > { %v5574_v56 = vmul.f32 %v7191_v28, %v1039_v46  ;;  %1494 = vmatmul.f32.gmra.mxu1 %v6954_v37  ;;  %1676 = vmatmul.f32.gmra.mxu3 %v6956_v1  ;;  %v963_v22 = vadd.f32 %v962_v61, %v7113_v44  ;;  %v9267_v46 = vld [vmem:[#allocation53_spill] sm:$0xff] }
 0x194   : > { %1393 = vmatmul.f32.gmra.mxu0 %v6971_v23  ;;  %v5711_v18 = vadd.f32 %v5710_v24, %v5574_v56  ;;  %1596 = vmatmul.f32.gmra.mxu2 %v6956_v1 }
 0x195   : > { %v1286_v27 = vpop.f32.mrf.mxu3 }
 0x197   : > { %v1042_v0 = vpop.f32.mrf.mxu1  ;;  %v1166_v14 = vpop.f32.mrf.mxu2 }
 0x198   : > { %v1043_v51 = vadd.f32 %v1042_v0, %v963_v22  ;;  %v7326_v10 = vadd.f32 %v1286_v27, %v1166_v14  ;;  %v366_v14 = vld [vmem:[%s6520_s21 + $0x118] sm:$0xff] }
 0x199   : > { %v966_v21 = vpop.f32.mrf.mxu0 }
 0x19a   : > { %v5582_v28 = vmul.f32 %v7208_v52, %v1043_v51  ;;  %1500 = vmatmul.f32.gmra.mxu1 %v9266_v58  ;;  %1680 = vmatmul.f32.gmra.mxu3 %v6985_v39  ;;  %v967_v44 = vadd.f32 %v966_v21, %v7122_v47  ;;  %v7337_v52 = vand.u32 4294901760, %v374_v26 }
 0x19c   : > { %1398 = vmatmul.f32.gmra.mxu0 %v6994_v33  ;;  %v5712_v2 = vadd.f32 %v5711_v18, %v5582_v28  ;;  %1600 = vmatmul.f32.gmra.mxu2 %v6985_v39  ;;  %v7344_v47 = vsub.f32 %v374_v26, %v7337_v52 }
 0x19d   : > { %v1290_v16 = vpop.f32.mrf.mxu3  ;;  %2323 = vmatpush.msra.mxu2 %v7337_v52 }
 0x19e   : > { %v9108_v20 = vand.u32 4294901760, %v7344_v47 }
 0x19f   : > { %v1046_v12 = vpop.f32.mrf.mxu1  ;;  %v1174_v24 = vpop.f32.mrf.mxu2 }
 0x1a0   : > { %v1047_v6 = vadd.f32 %v1046_v12, %v967_v44  ;;  %v7335_v61 = vadd.f32 %v1290_v16, %v1174_v24  ;;  %v2465_v22 = vsub.f32 %v7344_v47, %v9108_v20  ;;  %v9269_v12 = vld [vmem:[#allocation18_spill] sm:$0xff]  ;;  %v9271_v24 = vld [vmem:[#allocation15_spill] sm:$0xff] }
 0x1a1   : > { %v970_v17 = vpop.f32.mrf.mxu0 }
 0x1a2   : > { %v5590_v13 = vmul.f32 %v7219_v15, %v1047_v6  ;;  %1506 = vmatmul.f32.gmra.mxu1 %v9267_v46  ;;  %2055 = vmatmul.f32.vlgmr.msrb.gmra.mxu3 %v6625_v42  ;;  %v971_v15 = vadd.f32 %v970_v17, %v7137_v7  ;;  %v2466_v28 = vand.u32 4294901760, %v2465_v22  ;;  %v9270_v7 = vld [vmem:[#allocation9_spill] sm:$0xff]  ;;  %v7409_v42 = vld [vmem:[%s6526_s10 + $0x8] sm:$0xff] }
 0x1a4   : > { %1712 = vmatmul.f32.vlgmr.msrb.gmra.mxu0 %v9268_v62  ;;  %v5713_v41 = vadd.f32 %v5712_v2, %v5590_v13  ;;  %1960 = vmatmul.f32.vlgmr.msrb.gmra.mxu2 %v6606_v34  ;;  %v7358_v2 = vand.u32 4294901760, %v366_v14 }
 0x1a5   : > { %2566 = vmatpush.msrb.mxu0 %v7298_v35  ;;  %v1294_v51 = vpop.f32.mrf.mxu3  ;;  %2467 = vmatpush.msra.mxu3 %v2466_v28  ;;  %v9275_v28 = vld [vmem:[#allocation19_spill] sm:$0xff] }
 0x1a6   : > { %2325 = vmatpush.msra.mxu2 %v7358_v2  ;;  %v7365_v17 = vsub.f32 %v366_v14, %v7358_v2 }
 0x1a7   : > { %2569 = vmatpush.msrb.mxu0 %v7344_v47  ;;  %v1050_v18 = vpop.f32.mrf.mxu1  ;;  %v1182_v0 = vpop.f32.mrf.mxu2 }
 0x1a8   : > { %v1051_v21 = vadd.f32 %v1050_v18, %v971_v15  ;;  %v7356_v27 = vadd.f32 %v1294_v51, %v1182_v0  ;;  %v9107_v16 = vand.u32 4294901760, %v7365_v17 }
 0x1a9   : > { %v974_v56 = vpop.f32.mrf.mxu0  ;;  %2572 = vmatpush.msrb.mxu0 %v7365_v17 }
 0x1aa   : > { %v5598_v44 = vmul.f32 %v7244_v60, %v1051_v21  ;;  %1872 = vmatmul.f32.vlgmr.msrb.gmra.mxu1 %v9270_v7  ;;  %2061 = vmatmul.f32.gmra.mxu3 %v6673_v63  ;;  %v975_v60 = vadd.f32 %v974_v56, %v7147_v11  ;;  %v9272_v11 = vld [vmem:[#allocation22_spill] sm:$0xff]  ;;  %v9273_v56 = vld [vmem:[#allocation12_spill] sm:$0xff] }
 0x1ab   : > { %2666 = vmatpush.msrb.mxu1 %v7293_v55  ;;  %v9278_v63 = vld [vmem:[#allocation26_spill] sm:$0xff] }
 0x1ac   : > { %1720 = vmatmul.f32.gmra.mxu0 %v9269_v12  ;;  %v5714_v6 = vadd.f32 %v5713_v41, %v5598_v44  ;;  %1965 = vmatmul.f32.gmra.mxu2 %v9271_v24  ;;  %v2471_v41 = vsub.f32 %v7365_v17, %v9107_v16  ;;  %v9276_v44 = vld [vmem:[#allocation17_spill] sm:$0xff]  ;;  %v7412_v24 = vld [vmem:[%s6526_s10 + $0x48] sm:$0xff] }
 0x1ad   : > { %2668 = vmatpush.msrb.mxu1 %v7337_v52  ;;  %v1298_v22 = vpop.f32.mrf.mxu3 }
 0x1ae   : > { %v2472_v0 = vand.u32 4294901760, %v2471_v41 }
 0x1af   : > { %v1054_v26 = vpop.f32.mrf.mxu1  ;;  %v1190_v18 = vpop.f32.mrf.mxu2  ;;  %2670 = vmatpush.msrb.mxu1 %v7358_v2 }
 0x1b0   : > { %v1055_v15 = vadd.f32 %v1054_v26, %v975_v60  ;;  %v7378_v21 = vadd.f32 %v1298_v22, %v1190_v18  ;;  %2473 = vmatpush.msra.mxu3 %v2472_v0  ;;  %v9277_v60 = vld [vmem:[#allocation55_spill] sm:$0xff]  ;;  %v9279_v0 = vld [vmem:[#allocation13_spill] sm:$0xff] }
 0x1b1   : > { %v1334_v13 = vpop.f32.mrf.mxu0 }
 0x1b2   : > { %v5606_v51 = vmul.f32 %v7259_v53, %v1055_v15  ;;  %1876 = vmatmul.f32.gmra.mxu1 %v9273_v56  ;;  %2067 = vmatmul.f32.gmra.mxu3 %v9275_v28  ;;  %v1335_v26 = vadd.f32 %v1334_v13, %v9277_v60  ;;  %v7389_v53 = vand.u32 4294901760, %v358_v40 }
 0x1b4   : > { %1728 = vmatmul.f32.gmra.mxu0 %v9272_v11  ;;  %v7383_v14 = vadd.f32 %v5714_v6, %v5606_v51  ;;  %1970 = vmatmul.f32.gmra.mxu2 %v9276_v44  ;;  %v7395_v6 = vsub.f32 %v358_v40, %v7389_v53  ;;  %v9281_v44 = vld [vmem:[#allocation30_spill] sm:$0xff] }
 0x1b5   : > { %v1629_v41 = vpop.f32.mrf.mxu3  ;;  %2327 = vmatpush.msra.mxu2 %v7389_v53  ;;  %2672 = vmatpush.msrb.mxu1 %v7389_v53  ;;  %v7444_v11 = vld [vmem:[%s6526_s10 + $0xc8] sm:$0xff] }
 0x1b6   : > { %9274 = vst [vmem:[#allocation51_spill] sm:$0xff] %v7383_v14  ;;  %v9116_v51 = vand.u32 4294901760, %v7395_v6  ;;  %2575 = vmatpush.msrb.mxu0 %v7395_v6 }
 0x1b7   : > { %v1429_v20 = vpop.f32.mrf.mxu1  ;;  %v1549_v22 = vpop.f32.mrf.mxu2 }
 0x1b8   : > { %v1430_v18 = vadd.f32 %v1429_v20, %v1335_v26  ;;  %v9280_v20 = vld [vmem:[#allocation21_spill] sm:$0xff]  ;;  %v2477_v40 = vsub.f32 %v7395_v6, %v9116_v51 }
 0x1b9   : > { %v1339_v16 = vpop.f32.mrf.mxu0 }
 0x1ba   : > { %v1550_v15 = vadd.f32 %v1549_v22, %v1430_v18  ;;  %1880 = vmatmul.f32.gmra.mxu1 %v9279_v0  ;;  %2073 = vmatmul.f32.gmra.mxu3 %v6733_v3  ;;  %v1340_v60 = vadd.f32 %v1339_v16, %v7178_v32  ;;  %v2478_v28 = vand.u32 4294901760, %v2477_v40  ;;  %v9292_v0 = vld [vmem:[#allocation42_spill] sm:$0xff] }
 0x1bc   : > { %1736 = vmatmul.f32.gmra.mxu0 %v9278_v63  ;;  %v1630_v13 = vadd.f32 %v1629_v41, %v1550_v15  ;;  %1975 = vmatmul.f32.gmra.mxu2 %v9280_v20  ;;  %v9282_v20 = vld [vmem:[#allocation20_spill] sm:$0xff] }
 0x1bd   : > { %v1633_v15 = vpop.f32.mrf.mxu3  ;;  %2479 = vmatpush.msra.mxu3 %v2478_v28  ;;  %v350_v63 = vld [vmem:[%s6520_s21 + $0x98] sm:$0xff] }
 0x1be   : > { %v5503_v16 = vmul.f32 %v7409_v42, %v1630_v13  ;;  %v7420_v28 = vand.u32 4294901760, %v350_v63 }
 0x1bf   : > { %v1435_v18 = vpop.f32.mrf.mxu1  ;;  %v1553_v41 = vpop.f32.mrf.mxu2 }
 0x1c0   : > { %v1436_v22 = vadd.f32 %v1435_v18, %v1340_v60  ;;  %2329 = vmatpush.msra.mxu2 %v7420_v28  ;;  %2674 = vmatpush.msrb.mxu1 %v7420_v28 }
 0x1c1   : > { %v1344_v26 = vpop.f32.mrf.mxu0 }
 0x1c2   : > { %v1554_v3 = vadd.f32 %v1553_v41, %v1436_v22  ;;  %1884 = vmatmul.f32.gmra.mxu1 %v9282_v20  ;;  %2079 = vmatmul.f32.gmra.mxu3 %v6764_v25  ;;  %v1345_v60 = vadd.f32 %v1344_v26, %v7195_v31  ;;  %v9284_v25 = vld [vmem:[#allocation24_spill] sm:$0xff]  ;;  %v7429_v31 = vsub.f32 %v350_v63, %v7420_v28  ;;  %v9285_v26 = vld [vmem:[#allocation29_spill] sm:$0xff] }
 0x1c3   : > { %v9288_v20 = vld [vmem:[#allocation28_spill] sm:$0xff] }
 0x1c4   : > { %1744 = vmatmul.f32.gmra.mxu0 %v9281_v44  ;;  %v1634_v32 = vadd.f32 %v1633_v15, %v1554_v3  ;;  %1980 = vmatmul.f32.gmra.mxu2 %v6751_v19  ;;  %v9283_v15 = vld [vmem:[#allocation34_spill] sm:$0xff] }
 0x1c5   : > { %v1637_v44 = vpop.f32.mrf.mxu3  ;;  %v7425_v19 = vld [vmem:[%s6526_s10 + $0x88] sm:$0xff]  ;;  %2578 = vmatpush.msrb.mxu0 %v7429_v31 }
 0x1c6   : > { %v5511_v18 = vmul.f32 %v7412_v24, %v1634_v32 }
 0x1c7   : > { %v1441_v22 = vpop.f32.mrf.mxu1  ;;  %v1557_v34 = vpop.f32.mrf.mxu2 }
 0x1c8   : > { %v5626_v41 = vadd.f32 %v5511_v18, %v5503_v16  ;;  %v1442_v51 = vadd.f32 %v1441_v22, %v1345_v60 }
 0x1c9   : > { %v1349_v40 = vpop.f32.mrf.mxu0 }
 0x1ca   : > { %v1558_v3 = vadd.f32 %v1557_v34, %v1442_v51  ;;  %1888 = vmatmul.f32.gmra.mxu1 %v9284_v25  ;;  %2085 = vmatmul.f32.gmra.mxu3 %v6803_v48  ;;  %v9125_v34 = vand.u32 4294901760, %v7429_v31  ;;  %v9286_v51 = vld [vmem:[#allocation56_spill] sm:$0xff]  ;;  %v9287_v25 = vld [vmem:[#allocation38_spill] sm:$0xff] }
 0x1cb   : > { %v1350_v32 = vadd.f32 %v1349_v40, %v9286_v51  ;;  %v9290_v51 = vld [vmem:[#allocation33_spill] sm:$0xff] }
 0x1cc   : > { %1752 = vmatmul.f32.gmra.mxu0 %v9283_v15  ;;  %v1638_v13 = vadd.f32 %v1637_v44, %v1558_v3  ;;  %1985 = vmatmul.f32.gmra.mxu2 %v9285_v26  ;;  %v2483_v63 = vsub.f32 %v7429_v31, %v9125_v34  ;;  %v9291_v34 = vld [vmem:[#allocation57_spill] sm:$0xff] }
 0x1cd   : > { %v1641_v48 = vpop.f32.mrf.mxu3 }
 0x1ce   : > { %v5519_v16 = vmul.f32 %v7425_v19, %v1638_v13  ;;  %v2484_v26 = vand.u32 4294901760, %v2483_v63  ;;  %v9289_v13 = vld [vmem:[#allocation35_spill] sm:$0xff] }
 0x1cf   : > { %v1447_v18 = vpop.f32.mrf.mxu1  ;;  %v1561_v3 = vpop.f32.mrf.mxu2 }
 0x1d0   : > { %v5627_v44 = vadd.f32 %v5626_v41, %v5519_v16  ;;  %v1448_v22 = vadd.f32 %v1447_v18, %v1350_v32  ;;  %2485 = vmatpush.msra.mxu3 %v2484_v26  ;;  %v9293_v26 = vld [vmem:[#allocation32_spill] sm:$0xff] }
 0x1d1   : > { %v1354_v60 = vpop.f32.mrf.mxu0 }
 0x1d2   : > { %v1562_v15 = vadd.f32 %v1561_v3, %v1448_v22  ;;  %1892 = vmatmul.f32.gmra.mxu1 %v9288_v20  ;;  %2091 = vmatmul.f32.gmra.mxu3 %v9289_v13  ;;  %v1355_v41 = vadd.f32 %v1354_v60, %v9291_v34  ;;  %v9294_v13 = vld [vmem:[#allocation39_spill] sm:$0xff]  ;;  %v9295_v34 = vld [vmem:[#allocation37_spill] sm:$0xff]  ;;  %v9296_v60 = vld [vmem:[#allocation58_spill] sm:$0xff] }
 0x1d4   : > { %1760 = vmatmul.f32.gmra.mxu0 %v9287_v25  ;;  %v1642_v40 = vadd.f32 %v1641_v48, %v1562_v15  ;;  %1990 = vmatmul.f32.gmra.mxu2 %v9290_v51  ;;  %v7453_v48 = vld [vmem:[%s6526_s10 + $0x108] sm:$0xff] }
 0x1d5   : > { %v1645_v25 = vpop.f32.mrf.mxu3 }
 0x1d6   : > { %v5527_v32 = vmul.f32 %v7444_v11, %v1642_v40 }
 0x1d7   : > { %v1453_v18 = vpop.f32.mrf.mxu1  ;;  %v1565_v3 = vpop.f32.mrf.mxu2 }
 0x1d8   : > { %v5628_v63 = vadd.f32 %v5627_v44, %v5527_v32  ;;  %v1454_v22 = vadd.f32 %v1453_v18, %v1355_v41 }
 0x1d9   : > { %v1359_v16 = vpop.f32.mrf.mxu0 }
 0x1da   : > { %v1566_v20 = vadd.f32 %v1565_v3, %v1454_v22  ;;  %1896 = vmatmul.f32.gmra.mxu1 %v9293_v26  ;;  %2097 = vmatmul.f32.gmra.mxu3 %v9294_v13  ;;  %v1360_v40 = vadd.f32 %v1359_v16, %v9296_v60  ;;  %v7465_v13 = vld [vmem:[%s6526_s10 + $0x148] sm:$0xff] }
 0x1dc   : > { %1768 = vmatmul.f32.gmra.mxu0 %v9292_v0  ;;  %v1646_v15 = vadd.f32 %v1645_v25, %v1566_v20  ;;  %1995 = vmatmul.f32.gmra.mxu2 %v9295_v34  ;;  %v342_v0 = vld [vmem:[%s6520_s21 + $0x58] sm:$0xff]  ;;  %v9297_v25 = vld [vmem:[#allocation46_spill] sm:$0xff]  ;;  %v5620_v34 = vrot.slane %v7273_v30, 4 }
 0x1dd   : > { %v1649_v51 = vpop.f32.mrf.mxu3  ;;  %v7460_v26 = vand.u32 4294901760, %v342_v0  ;;  %v9298_v20 = vld [vmem:[#allocation36_spill] sm:$0xff] }
 0x1de   : > { %v5535_v44 = vmul.f32 %v7453_v48, %v1646_v15  ;;  %v9299_v15 = vld [vmem:[#allocation41_spill] sm:$0xff] }
 0x1df   : > { %v1459_v32 = vpop.f32.mrf.mxu1  ;;  %v1569_v3 = vpop.f32.mrf.mxu2  ;;  %2331 = vmatpush.msra.mxu2 %v7460_v26  ;;  %v7469_v16 = vsub.f32 %v342_v0, %v7460_v26  ;;  %2676 = vmatpush.msrb.mxu1 %v7460_v26 }
 0x1e0   : > { %v5629_v18 = vadd.f32 %v5628_v63, %v5535_v44  ;;  %v1460_v22 = vadd.f32 %v1459_v32, %v1360_v40 }
 0x1e1   : > { %v1364_v41 = vpop.f32.mrf.mxu0  ;;  %v9128_v60 = vand.u32 4294901760, %v7469_v16  ;;  %2581 = vmatpush.msrb.mxu0 %v7469_v16 }
 0x1e2   : > { %v1570_v14 = vadd.f32 %v1569_v3, %v1460_v22  ;;  %1900 = vmatmul.f32.gmra.mxu1 %v9298_v20  ;;  %2103 = vmatmul.f32.gmra.mxu3 %v9261_v9  ;;  %v1365_v40 = vadd.f32 %v1364_v41, %v7264_v49  ;;  %v9300_v41 = vld [vmem:[#allocation48_spill] sm:$0xff] }
 0x1e3   : > { %v2489_v22 = vsub.f32 %v7469_v16, %v9128_v60 }
 0x1e4   : > { %1776 = vmatmul.f32.gmra.mxu0 %v9297_v25  ;;  %v1650_v63 = vadd.f32 %v1649_v51, %v1570_v14  ;;  %2000 = vmatmul.f32.gmra.mxu2 %v9299_v15  ;;  %v334_v15 = vld [vmem:[%s6520_s21 + $0x18] sm:$0xff] }
 0x1e5   : > { %v1653_v9 = vpop.f32.mrf.mxu3  ;;  %v2490_v25 = vand.u32 4294901760, %v2489_v22  ;;  %v7483_v20 = vand.u32 4294901760, %v334_v15 }
 0x1e6   : > { %v5543_v44 = vmul.f32 %v7465_v13, %v1650_v63  ;;  %v7488_v63 = vld [vmem:[%s6526_s10 + $0x188] sm:$0xff] }
 0x1e7   : > { %v1465_v0 = vpop.f32.mrf.mxu1  ;;  %v1573_v3 = vpop.f32.mrf.mxu2  ;;  %2491 = vmatpush.msra.mxu3 %v2490_v25  ;;  %2333 = vmatpush.msra.mxu2 %v7483_v20 }
 0x1e8   : > { %v5630_v14 = vadd.f32 %v5629_v18, %v5543_v44  ;;  %v1466_v51 = vadd.f32 %v1465_v0, %v1365_v40  ;;  %v2493_v18 = vsub.f32 %v334_v15, %v7483_v20  ;;  %v9301_v44 = vand.u32 4294901760, %v7298_v35  ;;  %2678 = vmatpush.msrb.mxu1 %v7483_v20 }
 0x1e9   : > { %v1369_v32 = vpop.f32.mrf.mxu0  ;;  %v5621_v0 = vadd.f32 %v5620_v34, %v7273_v30  ;;  %v9303_v34 = vand.u32 4294901760, %v7365_v17 }
 0x1ea   : > { %v1574_v49 = vadd.f32 %v1573_v3, %v1466_v51  ;;  %1904 = vmatmul.f32.gmra.mxu1 %v6860_v45  ;;  %2109 = vmatmul.f32.gmra.mxu3 %v6909_v4  ;;  %v2494_v22 = vand.u32 4294901760, %v2493_v18  ;;  %v1370_v51 = vadd.f32 %v1369_v32, %v7281_v38  ;;  %v9302_v3 = vand.u32 4294901760, %v7344_v47 }
 0x1eb   : > { %2776 = vmatpush.msrb.mxu2 %v9301_v44  ;;  %2584 = vmatpush.msrb.mxu0 %v2493_v18  ;;  %v5622_v4 = vrot.slane %v5621_v0, 2  ;;  %v9305_v47 = vand.u32 4294901760, %v7395_v6 }
 0x1ec   : > { %1784 = vmatmul.f32.gmra.mxu0 %v9300_v41  ;;  %v1654_v40 = vadd.f32 %v1653_v9, %v1574_v49  ;;  %2005 = vmatmul.f32.gmra.mxu2 %v6898_v8  ;;  %v2495_v49 = vsub.f32 %v2493_v18, %v2494_v22 }
 0x1ed   : > { %2780 = vmatpush.msrb.mxu2 %v9302_v3  ;;  %v1657_v30 = vpop.f32.mrf.mxu3 }
 0x1ee   : > { %v5551_v25 = vmul.f32 %v7488_v63, %v1654_v40  ;;  %v2496_v8 = vand.u32 4294901760, %v2495_v49  ;;  %v9304_v40 = vld [vmem:[#allocation49_spill] sm:$0xff] }
 0x1ef   : > { %v1471_v15 = vpop.f32.mrf.mxu1  ;;  %v1577_v60 = vpop.f32.mrf.mxu2  ;;  %2784 = vmatpush.msrb.mxu2 %v9303_v34 }
 0x1f0   : > { %v5631_v35 = vadd.f32 %v5630_v14, %v5551_v25  ;;  %v1472_v44 = vadd.f32 %v1471_v15, %v1370_v51  ;;  %2497 = vmatpush.msra.mxu3 %v2496_v8  ;;  %v5623_v51 = vadd.f32 %v5622_v4, %v5621_v0  ;;  %v9306_v25 = vand.u32 4294901760, %v7429_v31 }
 0x1f1   : > { %v1374_v9 = vpop.f32.mrf.mxu0  ;;  %2788 = vmatpush.msrb.mxu2 %v9305_v47  ;;  %v9307_v4 = vand.u32 4294901760, %v7469_v16 }
 0x1f2   : > { %v5632_v38 = vrot.slane %v5631_v35, 4  ;;  %v1578_v32 = vadd.f32 %v1577_v60, %v1472_v44  ;;  %1908 = vmatmul.f32.gmra.mxu1 %v6881_v50  ;;  %2115 = vmatmul.f32.gmra.mxu3 %v6930_v36  ;;  %v1375_v60 = vadd.f32 %v1374_v9, %v7300_v43  ;;  %v5624_v0 = vrot.slane %v5623_v51, 1  ;;  %v9308_v43 = vld [vmem:[#allocation50_spill] sm:$0xff] }
 0x1f3   : > { %2868 = vmatpush.msrb.mxu3 %v7293_v55  ;;  %2792 = vmatpush.msrb.mxu2 %v9306_v25 }
 0x1f4   : > { %1792 = vmatmul.f32.gmra.mxu0 %v9304_v40  ;;  %v5633_v18 = vadd.f32 %v5632_v38, %v5631_v35  ;;  %v1658_v14 = vadd.f32 %v1657_v30, %v1578_v32  ;;  %2010 = vmatmul.f32.gmra.mxu2 %v6921_v59  ;;  %v5625_v9 = vadd.f32 %v5624_v0, %v5623_v51 }
 0x1f5   : > { %2870 = vmatpush.msrb.mxu3 %v7337_v52  ;;  %v1661_v35 = vpop.f32.mrf.mxu3  ;;  %2796 = vmatpush.msrb.mxu2 %v9307_v4 }
 0x1f6   : > { %v5634_v17 = vrot.slane %v5633_v18, 2  ;;  %v5559_v16 = vmul.f32 %v7409_v42, %v1658_v14 }
 0x1f7   : > { %v1477_v8 = vpop.f32.mrf.mxu1  ;;  %v1581_v49 = vpop.f32.mrf.mxu2  ;;  %2872 = vmatpush.msrb.mxu3 %v7358_v2  ;;  %2800 = vmatpush.msrb.mxu2 %v2494_v22 }
 0x1f8   : > { %v5635_v6 = vadd.f32 %v5634_v17, %v5633_v18  ;;  %v1478_v15 = vadd.f32 %v1477_v8, %v1375_v60  ;;  %v9310_v17 = vld [vmem:[#allocation52_spill] sm:$0xff] }
 0x1f9   : > { %v1379_v3 = vpop.f32.mrf.mxu0  ;;  %2874 = vmatpush.msrb.mxu3 %v7389_v53 }
 0x1fa   : > { %v5636_v55 = vrot.slane %v5635_v6, 1  ;;  %v1582_v44 = vadd.f32 %v1581_v49, %v1478_v15  ;;  %1912 = vmatmul.f32.gmra.mxu1 %v6911_v5  ;;  %2121 = vmatmul.f32.gmra.mxu3 %v6954_v37  ;;  %v1380_v30 = vadd.f32 %v1379_v3, %v7317_v57 }
 0x1fb   : > { %2876 = vmatpush.msrb.mxu3 %v7420_v28 }
 0x1fc   : > { %1800 = vmatmul.f32.gmra.mxu0 %v9308_v43  ;;  %v5637_v52 = vadd.f32 %v5636_v55, %v5635_v6  ;;  %v1662_v31 = vadd.f32 %v1661_v35, %v1582_v44  ;;  %2015 = vmatmul.f32.gmra.mxu2 %v6944_v54  ;;  %v9311_v6 = vld [vmem:[#allocation54_spill] sm:$0xff] }
 0x1fd   : > { %2878 = vmatpush.msrb.mxu3 %v7460_v26  ;;  %v1665_v51 = vpop.f32.mrf.mxu3 }
 0x1fe   : > { %v5822_v2 = vrot.slane %v5637_v52, 6  ;;  %v5567_v34 = vmul.f32 %v7412_v24, %v1662_v31 }
 0x1ff   : > { %v1483_v53 = vpop.f32.mrf.mxu1  ;;  %v1585_v18 = vpop.f32.mrf.mxu2  ;;  %2880 = vmatpush.msrb.mxu3 %v7483_v20 }
 0x200   : > { %v7529_v22 = vsel %vm5834_vm1, %v5625_v9, %v5822_v2  ;;  %v5722_v32 = vadd.f32 %v5567_v34, %v5559_v16  ;;  %v1484_v47 = vadd.f32 %v1483_v53, %v1380_v30 }
 0x201   : > { %v1384_v38 = vpop.f32.mrf.mxu0  ;;  %9309 = vst [vmem:[#allocation53_spill] sm:$0xff] %v7529_v22 }
 0x202   : > { %v1586_v28 = vadd.f32 %v1585_v18, %v1484_v47  ;;  %1916 = vmatmul.f32.gmra.mxu1 %v6932_v29  ;;  %2127 = vmatmul.f32.gmra.mxu3 %v9266_v58  ;;  %v1385_v57 = vadd.f32 %v1384_v38, %v7326_v10 }
 0x204   : > { %1808 = vmatmul.f32.gmra.mxu0 %v9310_v17  ;;  %v1666_v42 = vadd.f32 %v1665_v51, %v1586_v28  ;;  %2020 = vmatmul.f32.gmra.mxu2 %v6971_v23 }
 0x205   : > { %v1669_v20 = vpop.f32.mrf.mxu3 }
 0x206   : > { %v5575_v24 = vmul.f32 %v7425_v19, %v1666_v42 }
 0x207   : > { %v1489_v14 = vpop.f32.mrf.mxu1  ;;  %v1589_v3 = vpop.f32.mrf.mxu2 }
 0x208   : > { %v5723_v60 = vadd.f32 %v5722_v32, %v5575_v24  ;;  %v1490_v25 = vadd.f32 %v1489_v14, %v1385_v57  ;;  %v9312_v24 = vld [vmem:[#allocation51_spill] sm:$0xff] }
 0x209   : > { %v1389_v26 = vpop.f32.mrf.mxu0 }
 0x20a   : > { %v1590_v8 = vadd.f32 %v1589_v3, %v1490_v25  ;;  %1920 = vmatmul.f32.gmra.mxu1 %v6956_v1  ;;  %2133 = vmatmul.f32.gmra.mxu3 %v9267_v46  ;;  %v1390_v10 = vadd.f32 %v1389_v26, %v7335_v61  ;;  %v5716_v26 = vrot.slane %v9312_v24, 4  ;;  %v9314_v3 = vld [vmem:[#allocation22_spill] sm:$0xff] }
 0x20c   : > { %1816 = vmatmul.f32.gmra.mxu0 %v9311_v6  ;;  %v1670_v15 = vadd.f32 %v1669_v20, %v1590_v8  ;;  %2025 = vmatmul.f32.gmra.mxu2 %v6994_v33 }
 0x20d   : > { %v1673_v44 = vpop.f32.mrf.mxu3 }
 0x20e   : > { %v5583_v19 = vmul.f32 %v7444_v11, %v1670_v15 }
 0x20f   : > { %v1495_v35 = vpop.f32.mrf.mxu1  ;;  %v1593_v55 = vpop.f32.mrf.mxu2 }
 0x210   : > { %v5724_v4 = vadd.f32 %v5723_v60, %v5583_v19  ;;  %v1496_v0 = vadd.f32 %v1495_v35, %v1390_v10  ;;  %v9313_v60 = vld [vmem:[#allocation13_spill] sm:$0xff] }
 0x211   : > { %v1394_v49 = vpop.f32.mrf.mxu0 }
 0x212   : > { %v1594_v52 = vadd.f32 %v1593_v55, %v1496_v0  ;;  %1924 = vmatmul.f32.gmra.mxu1 %v6985_v39  ;;  %2499 = vmatmul.f32.vlgmr.msra.gmra.mxu3 %v9270_v7  ;;  %v1395_v61 = vadd.f32 %v1394_v49, %v7356_v27  ;;  %v9315_v55 = vld [vmem:[#allocation20_spill] sm:$0xff] }
 0x214   : > { %2175 = vmatmul.f32.vlgmr.msra.gmra.mxu0 %v9270_v7  ;;  %v1674_v31 = vadd.f32 %v1673_v44, %v1594_v52  ;;  %2339 = vmatmul.f32.vlgmr.msra.gmra.mxu2 %v9268_v62 }
 0x215   : > { %v1677_v38 = vpop.f32.mrf.mxu3 }
 0x216   : > { %v5591_v11 = vmul.f32 %v7453_v48, %v1674_v31  ;;  %v9316_v31 = vld [vmem:[#allocation26_spill] sm:$0xff] }
 0x217   : > { %v1501_v2 = vpop.f32.mrf.mxu1  ;;  %v1597_v34 = vpop.f32.mrf.mxu2 }
 0x218   : > { %v5725_v16 = vadd.f32 %v5724_v4, %v5591_v11  ;;  %v1502_v30 = vadd.f32 %v1501_v2, %v1395_v61 }
 0x219   : > { %v1399_v9 = vpop.f32.mrf.mxu0 }
 0x21a   : > { %v1598_v53 = vadd.f32 %v1597_v34, %v1502_v30  ;;  %2255 = vmatmul.f32.vlgmr.msra.gmra.mxu1 %v9270_v7  ;;  %2503 = vmatmul.f32.gmra.mxu3 %v9273_v56  ;;  %v1400_v27 = vadd.f32 %v1399_v9, %v7378_v21  ;;  %v5717_v21 = vadd.f32 %v5716_v26, %v9312_v24 }
 0x21c   : > { %2179 = vmatmul.f32.gmra.mxu0 %v9273_v56  ;;  %v1678_v32 = vadd.f32 %v1677_v38, %v1598_v53  ;;  %2347 = vmatmul.f32.gmra.mxu2 %v9269_v12  ;;  %v5718_v35 = vrot.slane %v5717_v21, 2 }
 0x21d   : > { %v1681_v57 = vpop.f32.mrf.mxu3 }
 0x21e   : > { %v5599_v48 = vmul.f32 %v7465_v13, %v1678_v32 }
 0x21f   : > { %v1507_v47 = vpop.f32.mrf.mxu1  ;;  %v1601_v42 = vpop.f32.mrf.mxu2 }
 0x220   : > { %v5726_v51 = vadd.f32 %v5725_v16, %v5599_v48  ;;  %v1508_v28 = vadd.f32 %v1507_v47, %v1400_v27  ;;  %v9317_v27 = vld [vmem:[#allocation24_spill] sm:$0xff] }
 0x221   : > { %v1713_v18 = vpop.f32.mrf.mxu0 }
 0x222   : > { %v1602_v14 = vadd.f32 %v1601_v42, %v1508_v28  ;;  %2259 = vmatmul.f32.gmra.mxu1 %v9273_v56  ;;  %2507 = vmatmul.f32.gmra.mxu3 %v9313_v60 }
 0x224   : > { %2183 = vmatmul.f32.gmra.mxu0 %v9313_v60  ;;  %v1682_v25 = vadd.f32 %v1681_v57, %v1602_v14  ;;  %2355 = vmatmul.f32.gmra.mxu2 %v9314_v3 }
 0x225   : > { %v2056_v49 = vpop.f32.mrf.mxu3 }
 0x226   : > { %v5607_v13 = vmul.f32 %v7488_v63, %v1682_v25  ;;  %v5719_v63 = vadd.f32 %v5718_v35, %v5717_v21 }
 0x227   : > { %v1873_v8 = vpop.f32.mrf.mxu1  ;;  %v1961_v19 = vpop.f32.mrf.mxu2 }
 0x228   : > { %v5727_v15 = vadd.f32 %v5726_v51, %v5607_v13  ;;  %v1874_v10 = vadd.f32 %v1873_v8, %v1713_v18  ;;  %v5720_v38 = vrot.slane %v5719_v63, 1  ;;  %v9318_v18 = vld [vmem:[#allocation30_spill] sm:$0xff]  ;;  %v9320_v13 = vld [vmem:[#allocation28_spill] sm:$0xff] }
 0x229   : > { %v1721_v20 = vpop.f32.mrf.mxu0  ;;  %v9321_v8 = vld [vmem:[#allocation34_spill] sm:$0xff] }
 0x22a   : > { %v5728_v4 = vrot.slane %v5727_v15, 4  ;;  %v1962_v0 = vadd.f32 %v1961_v19, %v1874_v10  ;;  %2263 = vmatmul.f32.gmra.mxu1 %v9313_v60  ;;  %2511 = vmatmul.f32.gmra.mxu3 %v9315_v55  ;;  %v5721_v51 = vadd.f32 %v5720_v38, %v5719_v63  ;;  %v9323_v63 = vld [vmem:[#allocation38_spill] sm:$0xff] }
 0x22c   : > { %2187 = vmatmul.f32.gmra.mxu0 %v9315_v55  ;;  %v5729_v44 = vadd.f32 %v5728_v4, %v5727_v15  ;;  %v7565_v52 = vadd.f32 %v2056_v49, %v1962_v0  ;;  %2363 = vmatmul.f32.gmra.mxu2 %v9316_v31  ;;  %v9322_v0 = vld [vmem:[#allocation32_spill] sm:$0xff] }
 0x22d   : > { %v2062_v34 = vpop.f32.mrf.mxu3 }
 0x22e   : > { %v5730_v61 = vrot.slane %v5729_v44, 2 }
 0x22f   : > { %v1877_v9 = vpop.f32.mrf.mxu1  ;;  %v1966_v30 = vpop.f32.mrf.mxu2 }
 0x230   : > { %v5731_v2 = vadd.f32 %v5730_v61, %v5729_v44  ;;  %v1878_v16 = vadd.f32 %v1877_v9, %v1721_v20 }
 0x231   : > { %v1729_v11 = vpop.f32.mrf.mxu0 }
 0x232   : > { %v5732_v53 = vrot.slane %v5731_v2, 1  ;;  %v1967_v32 = vadd.f32 %v1966_v30, %v1878_v16  ;;  %2267 = vmatmul.f32.gmra.mxu1 %v9315_v55  ;;  %2515 = vmatmul.f32.gmra.mxu3 %v9317_v27 }
 0x234   : > { %2191 = vmatmul.f32.gmra.mxu0 %v9317_v27  ;;  %v5733_v48 = vadd.f32 %v5732_v53, %v5731_v2  ;;  %v7571_v47 = vadd.f32 %v2062_v34, %v1967_v32  ;;  %2371 = vmatmul.f32.gmra.mxu2 %v9318_v18  ;;  %v9324_v34 = vld [vmem:[#allocation36_spill] sm:$0xff]  ;;  %v9325_v53 = vld [vmem:[#allocation42_spill] sm:$0xff] }
 0x235   : > { %v2068_v25 = vpop.f32.mrf.mxu3 }
 0x236   : > { %v5828_v28 = vrot.slane %v5733_v48, 6 }
 0x237   : > { %v1881_v57 = vpop.f32.mrf.mxu1  ;;  %v1971_v14 = vpop.f32.mrf.mxu2 }
 0x238   : > { %v7576_v24 = vsel %vm5834_vm1, %v5721_v51, %v5828_v28  ;;  %v1882_v26 = vadd.f32 %v1881_v57, %v1729_v11 }
 0x239   : > { %v1737_v42 = vpop.f32.mrf.mxu0  ;;  %9319 = vst [vmem:[#allocation14_spill] sm:$0xff] %v7576_v24 }
 0x23a   : > { %v1972_v21 = vadd.f32 %v1971_v14, %v1882_v26  ;;  %2271 = vmatmul.f32.gmra.mxu1 %v9317_v27  ;;  %2519 = vmatmul.f32.gmra.mxu3 %v9320_v13  ;;  %v9326_v14 = vld [vmem:[#allocation46_spill] sm:$0xff] }
 0x23c   : > { %2195 = vmatmul.f32.gmra.mxu0 %v9320_v13  ;;  %v7580_v20 = vadd.f32 %v2068_v25, %v1972_v21  ;;  %2379 = vmatmul.f32.gmra.mxu2 %v9321_v8 }
 0x23d   : > { %v2074_v35 = vpop.f32.mrf.mxu3 }
 0x23f   : > { %v1885_v10 = vpop.f32.mrf.mxu1  ;;  %v1976_v49 = vpop.f32.mrf.mxu2 }
 0x240   : > { %v1886_v19 = vadd.f32 %v1885_v10, %v1737_v42 }
 0x241   : > { %v1745_v15 = vpop.f32.mrf.mxu0 }
 0x242   : > { %v1977_v4 = vadd.f32 %v1976_v49, %v1886_v19  ;;  %2275 = vmatmul.f32.gmra.mxu1 %v9320_v13  ;;  %2523 = vmatmul.f32.gmra.mxu3 %v9322_v0 }
 0x244   : > { %2199 = vmatmul.f32.gmra.mxu0 %v9322_v0  ;;  %v7586_v44 = vadd.f32 %v2074_v35, %v1977_v4  ;;  %2387 = vmatmul.f32.gmra.mxu2 %v9323_v63  ;;  %v359_v63 = vld [vmem:[%s6520_s21 + $0xe0] sm:$0xff] }
 0x245   : > { %v2080_v16 = vpop.f32.mrf.mxu3 }
 0x247   : > { %v1889_v11 = vpop.f32.mrf.mxu1  ;;  %v1981_v2 = vpop.f32.mrf.mxu2 }
 0x248   : > { %v1890_v9 = vadd.f32 %v1889_v11, %v1745_v15 }
 0x249   : > { %v1753_v61 = vpop.f32.mrf.mxu0 }
 0x24a   : > { %v1982_v30 = vadd.f32 %v1981_v2, %v1890_v9  ;;  %2279 = vmatmul.f32.gmra.mxu1 %v9322_v0  ;;  %2527 = vmatmul.f32.gmra.mxu3 %v9324_v34 }
 0x24c   : > { %2203 = vmatmul.f32.gmra.mxu0 %v9324_v34  ;;  %v7592_v38 = vadd.f32 %v2080_v16, %v1982_v30  ;;  %2395 = vmatmul.f32.gmra.mxu2 %v9325_v53 }
 0x24d   : > { %v2086_v42 = vpop.f32.mrf.mxu3 }
 0x24f   : > { %v1893_v48 = vpop.f32.mrf.mxu1  ;;  %v1986_v28 = vpop.f32.mrf.mxu2 }
 0x250   : > { %v1894_v51 = vadd.f32 %v1893_v48, %v1753_v61 }
 0x251   : > { %v1761_v32 = vpop.f32.mrf.mxu0 }
 0x252   : > { %v1987_v57 = vadd.f32 %v1986_v28, %v1894_v51  ;;  %2283 = vmatmul.f32.gmra.mxu1 %v9324_v34  ;;  %2531 = vmatmul.f32.gmra.mxu3 %v6860_v45 }
 0x254   : > { %2207 = vmatmul.f32.gmra.mxu0 %v6860_v45  ;;  %v7598_v26 = vadd.f32 %v2086_v42, %v1987_v57  ;;  %2403 = vmatmul.f32.gmra.mxu2 %v9326_v14 }
 0x255   : > { %v2092_v19 = vpop.f32.mrf.mxu3 }
 0x257   : > { %v1897_v21 = vpop.f32.mrf.mxu1  ;;  %v1991_v10 = vpop.f32.mrf.mxu2 }
 0x258   : > { %v1898_v15 = vadd.f32 %v1897_v21, %v1761_v32  ;;  %v383_v32 = vld [vmem:[%s6520_s21 + $0x1a0] sm:$0xff] }
 0x259   : > { %v1769_v25 = vpop.f32.mrf.mxu0  ;;  %v7615_v48 = vand.u32 4294901760, %v383_v32 }
 0x25a   : > { %v1992_v49 = vadd.f32 %v1991_v10, %v1898_v15  ;;  %2287 = vmatmul.f32.gmra.mxu1 %v6860_v45  ;;  %2535 = vmatmul.f32.gmra.mxu3 %v6881_v50 }
 0x25b   : > { %v7618_v21 = vsub.f32 %v383_v32, %v7615_v48  ;;  %2948 = vmatpush.msra.mxu0 %v7615_v48  ;;  %3293 = vmatpush.msra.mxu3 %v7615_v48 }
 0x25c   : > { %2211 = vmatmul.f32.gmra.mxu0 %v6881_v50  ;;  %v7604_v35 = vadd.f32 %v2092_v19, %v1992_v49  ;;  %2411 = vmatmul.f32.gmra.mxu2 %v9300_v41 }
 0x25d   : > { %v2098_v2 = vpop.f32.mrf.mxu3  ;;  %3193 = vmatpush.msra.mxu2 %v7618_v21  ;;  %v9133_v19 = vand.u32 4294901760, %v7618_v21 }
 0x25f   : > { %v1901_v61 = vpop.f32.mrf.mxu1  ;;  %v1996_v9 = vpop.f32.mrf.mxu2  ;;  %v3086_v49 = vsub.f32 %v7618_v21, %v9133_v19 }
 0x260   : > { %v1902_v11 = vadd.f32 %v1901_v61, %v1769_v25 }
 0x261   : > { %v1777_v4 = vpop.f32.mrf.mxu0 }
 0x262   : > { %v1997_v16 = vadd.f32 %v1996_v9, %v1902_v11  ;;  %2291 = vmatmul.f32.gmra.mxu1 %v6881_v50  ;;  %2539 = vmatmul.f32.gmra.mxu3 %v6911_v5 }
 0x264   : > { %2215 = vmatmul.f32.gmra.mxu0 %v6911_v5  ;;  %v7610_v30 = vadd.f32 %v2098_v2, %v1997_v16  ;;  %2419 = vmatmul.f32.gmra.mxu2 %v9304_v40  ;;  %v3087_v16 = vand.u32 4294901760, %v3086_v49 }
 0x265   : > { %v2104_v25 = vpop.f32.mrf.mxu3 }
 0x266   : > { %3088 = vmatpush.msra.mxu1 %v3087_v16 }
 0x267   : > { %v1905_v28 = vpop.f32.mrf.mxu1  ;;  %v2001_v57 = vpop.f32.mrf.mxu2 }
 0x268   : > { %v1906_v42 = vadd.f32 %v1905_v28, %v1777_v4 }
 0x269   : > { %v1785_v51 = vpop.f32.mrf.mxu0 }
 0x26a   : > { %v2002_v15 = vadd.f32 %v2001_v57, %v1906_v42  ;;  %2295 = vmatmul.f32.gmra.mxu1 %v6911_v5  ;;  %2543 = vmatmul.f32.gmra.mxu3 %v6932_v29  ;;  %v375_v42 = vld [vmem:[%s6520_s21 + $0x160] sm:$0xff] }
 0x26b   : > { %v7640_v57 = vand.u32 4294901760, %v375_v42 }
 0x26c   : > { %2219 = vmatmul.f32.gmra.mxu0 %v6932_v29  ;;  %v7625_v10 = vadd.f32 %v2104_v25, %v2002_v15  ;;  %2427 = vmatmul.f32.gmra.mxu2 %v9308_v43 }
 0x26d   : > { %v2110_v2 = vpop.f32.mrf.mxu3  ;;  %2950 = vmatpush.msra.mxu0 %v7640_v57  ;;  %3295 = vmatpush.msra.mxu3 %v7640_v57 }
 0x26f   : > { %v1909_v61 = vpop.f32.mrf.mxu1  ;;  %v2006_v9 = vpop.f32.mrf.mxu2 }
 0x270   : > { %v1910_v11 = vadd.f32 %v1909_v61, %v1785_v51 }
 0x271   : > { %v1793_v4 = vpop.f32.mrf.mxu0 }
 0x272   : > { %v2007_v32 = vadd.f32 %v2006_v9, %v1910_v11  ;;  %2299 = vmatmul.f32.gmra.mxu1 %v6932_v29  ;;  %2547 = vmatmul.f32.gmra.mxu3 %v6956_v1  ;;  %v7643_v11 = vsub.f32 %v375_v42, %v7640_v57 }
 0x274   : > { %2223 = vmatmul.f32.gmra.mxu0 %v6956_v1  ;;  %v7635_v28 = vadd.f32 %v2110_v2, %v2007_v32  ;;  %2435 = vmatmul.f32.gmra.mxu2 %v9310_v17  ;;  %v9134_v2 = vand.u32 4294901760, %v7643_v11 }
 0x275   : > { %v2116_v49 = vpop.f32.mrf.mxu3  ;;  %3196 = vmatpush.msra.mxu2 %v7643_v11 }
 0x277   : > { %v1913_v51 = vpop.f32.mrf.mxu1  ;;  %v2011_v61 = vpop.f32.mrf.mxu2 }
 0x278   : > { %v1914_v15 = vadd.f32 %v1913_v51, %v1793_v4  ;;  %v3092_v4 = vsub.f32 %v7643_v11, %v9134_v2  ;;  %v367_v2 = vld [vmem:[%s6520_s21 + $0x120] sm:$0xff] }
 0x279   : > { %v1801_v25 = vpop.f32.mrf.mxu0 }
 0x27a   : > { %v2012_v9 = vadd.f32 %v2011_v61, %v1914_v15  ;;  %2303 = vmatmul.f32.gmra.mxu1 %v6956_v1  ;;  %2551 = vmatmul.f32.gmra.mxu3 %v6985_v39  ;;  %v3093_v32 = vand.u32 4294901760, %v3092_v4 }
 0x27c   : > { %2227 = vmatmul.f32.gmra.mxu0 %v6985_v39  ;;  %v7651_v16 = vadd.f32 %v2116_v49, %v2012_v9  ;;  %2443 = vmatmul.f32.gmra.mxu2 %v9311_v6  ;;  %v9327_v49 = vld [vmem:[#allocation10_spill] sm:$0xff]  ;;  %v7665_v6 = vand.u32 4294901760, %v367_v2 }
 0x27d   : > { %v2122_v19 = vpop.f32.mrf.mxu3  ;;  %3094 = vmatpush.msra.mxu1 %v3093_v32 }
 0x27e   : > { %v7668_v32 = vsub.f32 %v367_v2, %v7665_v6  ;;  %2952 = vmatpush.msra.mxu0 %v7665_v6  ;;  %3297 = vmatpush.msra.mxu3 %v7665_v6 }
 0x27f   : > { %v1917_v51 = vpop.f32.mrf.mxu1  ;;  %v2016_v61 = vpop.f32.mrf.mxu2 }
 0x280   : > { %v1918_v15 = vadd.f32 %v1917_v51, %v1801_v25  ;;  %3199 = vmatpush.msra.mxu2 %v7668_v32 }
 0x281   : > { %v1809_v42 = vpop.f32.mrf.mxu0 }
 0x282   : > { %v2017_v24 = vadd.f32 %v2016_v61, %v1918_v15  ;;  %2307 = vmatmul.f32.gmra.mxu1 %v6985_v39  ;;  %2882 = vmatmul.f32.vlgmr.msrb.gmra.mxu3 %v9270_v7  ;;  %v9329_v15 = vld [vmem:[#allocation11_spill] sm:$0xff] }
 0x284   : > { %2587 = vmatmul.f32.vlgmr.msrb.gmra.mxu0 %v9327_v49  ;;  %v7660_v9 = vadd.f32 %v2122_v19, %v2017_v24  ;;  %2802 = vmatmul.f32.vlgmr.msrb.gmra.mxu2 %v9270_v7  ;;  %v9328_v19 = vld [vmem:[#allocation15_spill] sm:$0xff] }
 0x285   : > { %v2128_v22 = vpop.f32.mrf.mxu3 }
 0x287   : > { %v1921_v17 = vpop.f32.mrf.mxu1  ;;  %v2021_v51 = vpop.f32.mrf.mxu2 }
 0x288   : > { %v1922_v25 = vadd.f32 %v1921_v17, %v1809_v42  ;;  %v9140_v17 = vand.u32 4294901760, %v7668_v32 }
 0x289   : > { %v1817_v4 = vpop.f32.mrf.mxu0 }
 0x28a   : > { %v2022_v24 = vadd.f32 %v2021_v51, %v1922_v25  ;;  %2682 = vmatmul.f32.vlgmr.msrb.gmra.mxu1 %v9329_v15  ;;  %2886 = vmatmul.f32.gmra.mxu3 %v9273_v56  ;;  %v3098_v2 = vsub.f32 %v7668_v32, %v9140_v17  ;;  %v7690_v17 = vand.u32 4294901760, %v359_v63 }
 0x28c   : > { %2592 = vmatmul.f32.gmra.mxu0 %v9328_v19  ;;  %v7675_v61 = vadd.f32 %v2128_v22, %v2022_v24  ;;  %2806 = vmatmul.f32.gmra.mxu2 %v9273_v56  ;;  %v3099_v41 = vand.u32 4294901760, %v3098_v2  ;;  %v9330_v22 = vld [vmem:[#allocation17_spill] sm:$0xff]  ;;  %v9331_v24 = vld [vmem:[#allocation16_spill] sm:$0xff] }
 0x28d   : > { %v2134_v40 = vpop.f32.mrf.mxu3  ;;  %2954 = vmatpush.msra.mxu0 %v7690_v17  ;;  %3299 = vmatpush.msra.mxu3 %v7690_v17 }
 0x28e   : > { %3100 = vmatpush.msra.mxu1 %v3099_v41 }
 0x28f   : > { %v1925_v42 = vpop.f32.mrf.mxu1  ;;  %v2026_v43 = vpop.f32.mrf.mxu2 }
 0x290   : > { %v1926_v51 = vadd.f32 %v1925_v42, %v1817_v4 }
 0x291   : > { %v2176_v25 = vpop.f32.mrf.mxu0 }
 0x292   : > { %v2027_v14 = vadd.f32 %v2026_v43, %v1926_v51  ;;  %2688 = vmatmul.f32.gmra.mxu1 %v9331_v24  ;;  %2890 = vmatmul.f32.gmra.mxu3 %v9313_v60  ;;  %v7693_v43 = vsub.f32 %v359_v63, %v7690_v17  ;;  %v2177_v51 = vadd.f32 %v2176_v25, %v7565_v52 }
 0x294   : > { %2597 = vmatmul.f32.gmra.mxu0 %v9330_v22  ;;  %v7685_v53 = vadd.f32 %v2134_v40, %v2027_v14  ;;  %2810 = vmatmul.f32.gmra.mxu2 %v9313_v60  ;;  %v9333_v40 = vld [vmem:[#allocation21_spill] sm:$0xff]  ;;  %v9334_v14 = vld [vmem:[#allocation19_spill] sm:$0xff]  ;;  %v9143_v63 = vand.u32 4294901760, %v7693_v43 }
 0x295   : > { %v2500_v2 = vpop.f32.mrf.mxu3  ;;  %3202 = vmatpush.msra.mxu2 %v7693_v43 }
 0x297   : > { %v2256_v4 = vpop.f32.mrf.mxu1  ;;  %v2340_v42 = vpop.f32.mrf.mxu2 }
 0x298   : > { %v7697_v41 = vadd.f32 %v2500_v2, %v2340_v42  ;;  %v2257_v60 = vadd.f32 %v2256_v4, %v2177_v51  ;;  %v3104_v42 = vsub.f32 %v7693_v43, %v9143_v63  ;;  %v7711_v2 = vld [vmem:[%s6526_s10 + $0x10] sm:$0xff]  ;;  %v9336_v4 = vld [vmem:[#allocation25_spill] sm:$0xff] }
 0x299   : > { %v2180_v8 = vpop.f32.mrf.mxu0  ;;  %v9337_v51 = vld [vmem:[#allocation23_spill] sm:$0xff] }
 0x29a   : > { %9332 = vst [vmem:[#allocation18_spill] sm:$0xff] %v7697_v41  ;;  %2694 = vmatmul.f32.gmra.mxu1 %v9334_v14  ;;  %2894 = vmatmul.f32.gmra.mxu3 %v9315_v55  ;;  %v2181_v18 = vadd.f32 %v2180_v8, %v7571_v47  ;;  %v7714_v41 = vld [vmem:[%s6526_s10 + $0x50] sm:$0xff]  ;;  %v3105_v14 = vand.u32 4294901760, %v3104_v42  ;;  %v5504_v47 = vmul.f32 %v7711_v2, %v2257_v60 }
 0x29b   : > { %v7729_v60 = vld [vmem:[%s6526_s10 + $0x90] sm:$0xff] }
 0x29c   : > { %2602 = vmatmul.f32.gmra.mxu0 %v9333_v40  ;;  %2814 = vmatmul.f32.gmra.mxu2 %v9315_v55 }
 0x29d   : > { %v2504_v22 = vpop.f32.mrf.mxu3  ;;  %3106 = vmatpush.msra.mxu1 %v3105_v14 }
 0x29f   : > { %v2260_v31 = vpop.f32.mrf.mxu1  ;;  %v2348_v25 = vpop.f32.mrf.mxu2 }
 0x2a0   : > { %v2261_v52 = vadd.f32 %v2260_v31, %v2181_v18  ;;  %v7716_v55 = vadd.f32 %v2504_v22, %v2348_v25  ;;  %v351_v31 = vld [vmem:[%s6520_s21 + $0xa0] sm:$0xff] }
 0x2a1   : > { %v2184_v40 = vpop.f32.mrf.mxu0  ;;  %v7726_v42 = vand.u32 4294901760, %v351_v31 }
 0x2a2   : > { %9335 = vst [vmem:[#allocation9_spill] sm:$0xff] %v7716_v55  ;;  %v5512_v8 = vmul.f32 %v7714_v41, %v2261_v52  ;;  %2700 = vmatmul.f32.gmra.mxu1 %v9337_v51  ;;  %2898 = vmatmul.f32.gmra.mxu3 %v9317_v27  ;;  %v2185_v18 = vadd.f32 %v2184_v40, %v7580_v20  ;;  %v9339_v40 = vld [vmem:[#allocation29_spill] sm:$0xff] }
 0x2a3   : > { %2956 = vmatpush.msra.mxu0 %v7726_v42  ;;  %3301 = vmatpush.msra.mxu3 %v7726_v42  ;;  %v9342_v51 = vld [vmem:[#allocation33_spill] sm:$0xff] }
 0x2a4   : > { %2607 = vmatmul.f32.gmra.mxu0 %v9336_v4  ;;  %v5638_v63 = vadd.f32 %v5512_v8, %v5504_v47  ;;  %2818 = vmatmul.f32.gmra.mxu2 %v9317_v27  ;;  %v7736_v47 = vsub.f32 %v351_v31, %v7726_v42  ;;  %v9340_v8 = vld [vmem:[#allocation27_spill] sm:$0xff] }
 0x2a5   : > { %v2508_v4 = vpop.f32.mrf.mxu3  ;;  %v7746_v31 = vld [vmem:[%s6526_s10 + $0xd0] sm:$0xff] }
 0x2a6   : > { %3205 = vmatpush.msra.mxu2 %v7736_v47 }
 0x2a7   : > { %v2264_v25 = vpop.f32.mrf.mxu1  ;;  %v2356_v55 = vpop.f32.mrf.mxu2 }
 0x2a8   : > { %v2265_v52 = vadd.f32 %v2264_v25, %v2185_v18  ;;  %v7733_v14 = vadd.f32 %v2508_v4, %v2356_v55 }
 0x2a9   : > { %v2188_v22 = vpop.f32.mrf.mxu0 }
 0x2aa   : > { %9338 = vst [vmem:[#allocation55_spill] sm:$0xff] %v7733_v14  ;;  %v5520_v20 = vmul.f32 %v7729_v60, %v2265_v52  ;;  %2706 = vmatmul.f32.gmra.mxu1 %v9340_v8  ;;  %2902 = vmatmul.f32.gmra.mxu3 %v9320_v13  ;;  %v2189_v25 = vadd.f32 %v2188_v22, %v7586_v44 }
 0x2ac   : > { %2612 = vmatmul.f32.gmra.mxu0 %v9339_v40  ;;  %v5639_v18 = vadd.f32 %v5638_v63, %v5520_v20  ;;  %2822 = vmatmul.f32.gmra.mxu2 %v9320_v13  ;;  %v9343_v63 = vld [vmem:[#allocation31_spill] sm:$0xff] }
 0x2ad   : > { %v2512_v14 = vpop.f32.mrf.mxu3 }
 0x2af   : > { %v2268_v4 = vpop.f32.mrf.mxu1  ;;  %v2364_v52 = vpop.f32.mrf.mxu2 }
 0x2b0   : > { %v2269_v27 = vadd.f32 %v2268_v4, %v2189_v25  ;;  %v7748_v40 = vadd.f32 %v2512_v14, %v2364_v52  ;;  %v7757_v4 = vld [vmem:[%s6526_s10 + $0x110] sm:$0xff] }
 0x2b1   : > { %v2192_v55 = vpop.f32.mrf.mxu0 }
 0x2b2   : > { %9341 = vst [vmem:[#allocation56_spill] sm:$0xff] %v7748_v40  ;;  %v5528_v8 = vmul.f32 %v7746_v31, %v2269_v27  ;;  %2712 = vmatmul.f32.gmra.mxu1 %v9343_v63  ;;  %2906 = vmatmul.f32.gmra.mxu3 %v9322_v0  ;;  %v2193_v44 = vadd.f32 %v2192_v55, %v7592_v38  ;;  %v9345_v40 = vld [vmem:[#allocation37_spill] sm:$0xff] }
 0x2b4   : > { %2617 = vmatmul.f32.gmra.mxu0 %v9342_v51  ;;  %v5640_v20 = vadd.f32 %v5639_v18, %v5528_v8  ;;  %2826 = vmatmul.f32.gmra.mxu2 %v9322_v0  ;;  %v9346_v8 = vld [vmem:[#allocation35_spill] sm:$0xff]  ;;  %v9147_v18 = vand.u32 4294901760, %v7736_v47  ;;  %v343_v0 = vld [vmem:[%s6520_s21 + $0x60] sm:$0xff] }
 0x2b5   : > { %v2516_v13 = vpop.f32.mrf.mxu3  ;;  %v7766_v38 = vand.u32 4294901760, %v343_v0 }
 0x2b7   : > { %v2272_v25 = vpop.f32.mrf.mxu1  ;;  %v2372_v52 = vpop.f32.mrf.mxu2  ;;  %2958 = vmatpush.msra.mxu0 %v7766_v38  ;;  %3303 = vmatpush.msra.mxu3 %v7766_v38 }
 0x2b8   : > { %v2273_v14 = vadd.f32 %v2272_v25, %v2193_v44  ;;  %v7759_v27 = vadd.f32 %v2516_v13, %v2372_v52  ;;  %v3110_v13 = vsub.f32 %v7736_v47, %v9147_v18  ;;  %v3114_v44 = vsub.f32 %v343_v0, %v7766_v38 }
 0x2b9   : > { %v2196_v22 = vpop.f32.mrf.mxu0 }
 0x2ba   : > { %9344 = vst [vmem:[#allocation57_spill] sm:$0xff] %v7759_v27  ;;  %v5536_v51 = vmul.f32 %v7757_v4, %v2273_v14  ;;  %2718 = vmatmul.f32.gmra.mxu1 %v9346_v8  ;;  %2910 = vmatmul.f32.gmra.mxu3 %v9324_v34  ;;  %v2197_v25 = vadd.f32 %v2196_v22, %v7598_v26  ;;  %v3111_v14 = vand.u32 4294901760, %v3110_v13  ;;  %v9348_v22 = vld [vmem:[#allocation41_spill] sm:$0xff]  ;;  %v9349_v13 = vld [vmem:[#allocation39_spill] sm:$0xff] }
 0x2bb   : > { %3208 = vmatpush.msra.mxu2 %v3114_v44 }
 0x2bc   : > { %2622 = vmatmul.f32.gmra.mxu0 %v9345_v40  ;;  %v5641_v55 = vadd.f32 %v5640_v20, %v5536_v51  ;;  %2830 = vmatmul.f32.gmra.mxu2 %v9324_v34  ;;  %v7778_v51 = vld [vmem:[%s6526_s10 + $0x150] sm:$0xff]  ;;  %v3115_v20 = vand.u32 4294901760, %v3114_v44 }
 0x2bd   : > { %v2520_v27 = vpop.f32.mrf.mxu3  ;;  %3112 = vmatpush.msra.mxu1 %v3111_v14 }
 0x2be   : > { %v3116_v34 = vsub.f32 %v3114_v44, %v3115_v20  ;;  %v7792_v44 = vld [vmem:[%s6526_s10 + $0x190] sm:$0xff] }
 0x2bf   : > { %v2276_v40 = vpop.f32.mrf.mxu1  ;;  %v2380_v18 = vpop.f32.mrf.mxu2 }
 0x2c0   : > { %v2277_v8 = vadd.f32 %v2276_v40, %v2197_v25  ;;  %v7780_v0 = vadd.f32 %v2520_v27, %v2380_v18  ;;  %v3117_v63 = vand.u32 4294901760, %v3116_v34  ;;  %v335_v40 = vld [vmem:[%s6520_s21 + $0x20] sm:$0xff] }
 0x2c1   : > { %v2200_v52 = vpop.f32.mrf.mxu0  ;;  %v7789_v14 = vand.u32 4294901760, %v335_v40 }
 0x2c2   : > { %9347 = vst [vmem:[#allocation58_spill] sm:$0xff] %v7780_v0  ;;  %v5544_v26 = vmul.f32 %v7778_v51, %v2277_v8  ;;  %2724 = vmatmul.f32.gmra.mxu1 %v9349_v13  ;;  %2914 = vmatmul.f32.gmra.mxu3 %v6860_v45  ;;  %v2201_v25 = vadd.f32 %v2200_v52, %v7604_v35  ;;  %v9351_v52 = vld [vmem:[#allocation45_spill] sm:$0xff] }
 0x2c3   : > { %3118 = vmatpush.msra.mxu1 %v3117_v63  ;;  %v3120_v34 = vsub.f32 %v335_v40, %v7789_v14  ;;  %2960 = vmatpush.msra.mxu0 %v7789_v14  ;;  %v9350_v63 = vand.u32 4294901760, %v7618_v21  ;;  %v9354_v21 = vand.u32 4294901760, %v7668_v32 }
 0x2c4   : > { %2627 = vmatmul.f32.gmra.mxu0 %v9348_v22  ;;  %v5642_v56 = vadd.f32 %v5641_v55, %v5544_v26  ;;  %2834 = vmatmul.f32.gmra.mxu2 %v6860_v45  ;;  %v9352_v26 = vld [vmem:[#allocation43_spill] sm:$0xff] }
 0x2c5   : > { %v2524_v0 = vpop.f32.mrf.mxu3  ;;  %3305 = vmatpush.msra.mxu3 %v7789_v14  ;;  %3403 = vmatpush.msrb.mxu0 %v9350_v63  ;;  %v9355_v63 = vand.u32 4294901760, %v7693_v43  ;;  %v384_v43 = vld [vmem:[%s6520_s21 + $0x1a8] sm:$0xff] }
 0x2c6   : > { %3211 = vmatpush.msra.mxu2 %v3120_v34 }
 0x2c7   : > { %v2280_v18 = vpop.f32.mrf.mxu1  ;;  %v2388_v22 = vpop.f32.mrf.mxu2 }
 0x2c8   : > { %v2281_v8 = vadd.f32 %v2280_v18, %v2201_v25  ;;  %v7797_v55 = vadd.f32 %v2524_v0, %v2388_v22  ;;  %v9353_v25 = vand.u32 4294901760, %v7643_v11  ;;  %v3121_v18 = vand.u32 4294901760, %v3120_v34 }
 0x2c9   : > { %v2204_v27 = vpop.f32.mrf.mxu0 }
 0x2ca   : > { %v5552_v35 = vmul.f32 %v7792_v44, %v2281_v8  ;;  %2730 = vmatmul.f32.gmra.mxu1 %v9352_v26  ;;  %3407 = vmatpush.msrb.mxu0 %v9353_v25  ;;  %v3122_v0 = vsub.f32 %v3120_v34, %v3121_v18  ;;  %v2205_v32 = vadd.f32 %v2204_v27, %v7610_v30 }
 0x2cb   : > { %2918 = vmatmul.f32.gmra.mxu3 %v6881_v50 }
 0x2cc   : > { %2632 = vmatmul.f32.gmra.mxu0 %v9351_v52  ;;  %v7806_v40 = vadd.f32 %v5642_v56, %v5552_v35  ;;  %2838 = vmatmul.f32.gmra.mxu2 %v6881_v50  ;;  %v3123_v25 = vand.u32 4294901760, %v3122_v0  ;;  %v9356_v35 = vand.u32 4294901760, %v7736_v47  ;;  %v9357_v50 = vld [vmem:[#allocation47_spill] sm:$0xff] }
 0x2cd   : > { %3411 = vmatpush.msrb.mxu0 %v9354_v21  ;;  %v2528_v11 = vpop.f32.mrf.mxu3 }
 0x2ce   : > { %3124 = vmatpush.msra.mxu1 %v3123_v25 }
 0x2cf   : > { %v2284_v8 = vpop.f32.mrf.mxu1  ;;  %3415 = vmatpush.msrb.mxu0 %v9355_v63  ;;  %v2396_v52 = vpop.f32.mrf.mxu2 }
 0x2d0   : > { %v7814_v56 = vadd.f32 %v2528_v11, %v2396_v52  ;;  %3495 = vmatpush.msrb.mxu1 %v7615_v48  ;;  %v2285_v47 = vadd.f32 %v2284_v8, %v2205_v32  ;;  %v7826_v52 = vand.u32 4294901760, %v384_v43 }
 0x2d1   : > { %v2208_v22 = vpop.f32.mrf.mxu0  ;;  %3419 = vmatpush.msrb.mxu0 %v9356_v35 }
 0x2d2   : > { %2736 = vmatmul.f32.gmra.mxu1 %v9357_v50  ;;  %v2209_v34 = vadd.f32 %v2208_v22, %v7625_v10  ;;  %3575 = vmatpush.msrb.mxu2 %v7826_v52  ;;  %v7831_v48 = vsub.f32 %v384_v43, %v7826_v52  ;;  %v5560_v10 = vmul.f32 %v7711_v2, %v2285_v47 }
 0x2d3   : > { %3423 = vmatpush.msrb.mxu0 %v3115_v20  ;;  %2922 = vmatmul.f32.gmra.mxu3 %v6911_v5 }
 0x2d4   : > { %2637 = vmatmul.f32.gmra.mxu0 %v6921_v59  ;;  %2842 = vmatmul.f32.gmra.mxu2 %v6911_v5  ;;  %v9154_v22 = vand.u32 4294901760, %v7831_v48 }
 0x2d5   : > { %3427 = vmatpush.msrb.mxu0 %v3121_v18  ;;  %3497 = vmatpush.msrb.mxu1 %v7640_v57  ;;  %v2532_v30 = vpop.f32.mrf.mxu3 }
 0x2d7   : > { %v2288_v0 = vpop.f32.mrf.mxu1  ;;  %v2404_v63 = vpop.f32.mrf.mxu2  ;;  %3499 = vmatpush.msrb.mxu1 %v7665_v6 }
 0x2d8   : > { %v2289_v20 = vadd.f32 %v2288_v0, %v2209_v34  ;;  %v7833_v27 = vadd.f32 %v2532_v30, %v2404_v63 }
 0x2d9   : > { %v2212_v21 = vpop.f32.mrf.mxu0  ;;  %3501 = vmatpush.msrb.mxu1 %v7690_v17 }
 0x2da   : > { %v5568_v18 = vmul.f32 %v7714_v41, %v2289_v20  ;;  %2742 = vmatmul.f32.gmra.mxu1 %v6930_v36  ;;  %v2213_v6 = vadd.f32 %v2212_v21, %v7635_v28  ;;  %v3713_v41 = vsub.f32 %v7831_v48, %v9154_v22  ;;  %v9368_v22 = vld [vmem:[#allocation20_spill] sm:$0xff] }
 0x2db   : > { %2926 = vmatmul.f32.gmra.mxu3 %v6932_v29  ;;  %3503 = vmatpush.msrb.mxu1 %v7726_v42 }
 0x2dc   : > { %2642 = vmatmul.f32.gmra.mxu0 %v6944_v54  ;;  %v5734_v57 = vadd.f32 %v5568_v18, %v5560_v10  ;;  %2846 = vmatmul.f32.gmra.mxu2 %v6932_v29  ;;  %v3714_v35 = vand.u32 4294901760, %v3713_v41  ;;  %v376_v41 = vld [vmem:[%s6520_s21 + $0x168] sm:$0xff] }
 0x2dd   : > { %3505 = vmatpush.msrb.mxu1 %v7766_v38  ;;  %v2536_v25 = vpop.f32.mrf.mxu3 }
 0x2de   : > { %3715 = vmatpush.msrb.mxu3 %v3714_v35 }
 0x2df   : > { %v2292_v8 = vpop.f32.mrf.mxu1  ;;  %v2412_v11 = vpop.f32.mrf.mxu2  ;;  %3507 = vmatpush.msrb.mxu1 %v7789_v14 }
 0x2e0   : > { %v2293_v17 = vadd.f32 %v2292_v8, %v2213_v6  ;;  %v7850_v32 = vadd.f32 %v2536_v25, %v2412_v11 }
 0x2e1   : > { %v2216_v2 = vpop.f32.mrf.mxu0 }
 0x2e2   : > { %v5576_v42 = vmul.f32 %v7729_v60, %v2293_v17  ;;  %2748 = vmatmul.f32.gmra.mxu1 %v6954_v37  ;;  %v2217_v38 = vadd.f32 %v2216_v2, %v7651_v16  ;;  %v7873_v2 = vand.u32 4294901760, %v376_v41 }
 0x2e3   : > { %2930 = vmatmul.f32.gmra.mxu3 %v6956_v1 }
 0x2e4   : > { %2647 = vmatmul.f32.gmra.mxu0 %v6971_v23  ;;  %v5735_v28 = vadd.f32 %v5734_v57, %v5576_v42  ;;  %2850 = vmatmul.f32.gmra.mxu2 %v6956_v1  ;;  %v7879_v8 = vsub.f32 %v376_v41, %v7873_v2 }
 0x2e5   : > { %v2540_v0 = vpop.f32.mrf.mxu3  ;;  %3577 = vmatpush.msrb.mxu2 %v7873_v2 }
 0x2e6   : > { %v9153_v25 = vand.u32 4294901760, %v7879_v8 }
 0x2e7   : > { %v2296_v34 = vpop.f32.mrf.mxu1  ;;  %v2420_v21 = vpop.f32.mrf.mxu2 }
 0x2e8   : > { %v2297_v47 = vadd.f32 %v2296_v34, %v2217_v38  ;;  %v7859_v14 = vadd.f32 %v2540_v0, %v2420_v21  ;;  %v368_v38 = vld [vmem:[%s6520_s21 + $0x128] sm:$0xff]  ;;  %v3719_v34 = vsub.f32 %v7879_v8, %v9153_v25 }
 0x2e9   : > { %v2220_v43 = vpop.f32.mrf.mxu0  ;;  %v9367_v25 = vld [vmem:[#allocation30_spill] sm:$0xff] }
 0x2ea   : > { %v5584_v60 = vmul.f32 %v7746_v31, %v2297_v47  ;;  %2754 = vmatmul.f32.gmra.mxu1 %v9266_v58  ;;  %v2221_v16 = vadd.f32 %v2220_v43, %v7660_v9  ;;  %v7891_v47 = vand.u32 4294901760, %v368_v38  ;;  %v3720_v21 = vand.u32 4294901760, %v3719_v34 }
 0x2eb   : > { %2934 = vmatmul.f32.gmra.mxu3 %v6985_v39 }
 0x2ec   : > { %2652 = vmatmul.f32.gmra.mxu0 %v6994_v33  ;;  %v5736_v20 = vadd.f32 %v5735_v28, %v5584_v60  ;;  %2854 = vmatmul.f32.gmra.mxu2 %v6985_v39  ;;  %v7898_v0 = vsub.f32 %v368_v38, %v7891_v47 }
 0x2ed   : > { %v2544_v57 = vpop.f32.mrf.mxu3  ;;  %3579 = vmatpush.msrb.mxu2 %v7891_v47  ;;  %3721 = vmatpush.msrb.mxu3 %v3720_v21 }
 0x2ef   : > { %v2300_v30 = vpop.f32.mrf.mxu1  ;;  %v2428_v18 = vpop.f32.mrf.mxu2 }
 0x2f0   : > { %v2301_v10 = vadd.f32 %v2300_v30, %v2221_v16  ;;  %v7867_v6 = vadd.f32 %v2544_v57, %v2428_v18 }
 0x2f1   : > { %v2224_v63 = vpop.f32.mrf.mxu0 }
 0x2f2   : > { %v5592_v31 = vmul.f32 %v7757_v4, %v2301_v10  ;;  %2760 = vmatmul.f32.gmra.mxu1 %v9267_v46  ;;  %v2225_v4 = vadd.f32 %v2224_v63, %v7675_v61 }
 0x2f3   : > { %3309 = vmatmul.f32.vlgmr.msra.gmra.mxu3 %v9329_v15 }
 0x2f4   : > { %2966 = vmatmul.f32.vlgmr.msra.gmra.mxu0 %v9268_v62  ;;  %v5737_v9 = vadd.f32 %v5736_v20, %v5592_v31  ;;  %3214 = vmatmul.f32.vlgmr.msra.gmra.mxu2 %v9327_v49  ;;  %v352_v49 = vld [vmem:[%s6520_s21 + $0xa8] sm:$0xff] }
 0x2f5   : > { %3820 = vmatpush.msra.mxu0 %v7831_v48  ;;  %v2548_v28 = vpop.f32.mrf.mxu3 }
 0x2f7   : > { %v2304_v11 = vpop.f32.mrf.mxu1  ;;  %3823 = vmatpush.msra.mxu0 %v7879_v8  ;;  %v2436_v42 = vpop.f32.mrf.mxu2 }
 0x2f8   : > { %v2305_v35 = vadd.f32 %v2304_v11, %v2225_v4  ;;  %v7886_v43 = vadd.f32 %v2548_v28, %v2436_v42  ;;  %v9360_v11 = vld [vmem:[#allocation17_spill] sm:$0xff] }
 0x2f9   : > { %v2228_v17 = vpop.f32.mrf.mxu0  ;;  %3826 = vmatpush.msra.mxu0 %v7898_v0 }
 0x2fa   : > { %v5600_v61 = vmul.f32 %v7778_v51, %v2305_v35  ;;  %3126 = vmatmul.f32.vlgmr.msra.gmra.mxu1 %v9270_v7  ;;  %v9152_v51 = vand.u32 4294901760, %v7898_v0  ;;  %v2229_v20 = vadd.f32 %v2228_v17, %v7685_v53  ;;  %v9359_v17 = vld [vmem:[#allocation19_spill] sm:$0xff]  ;;  %v9361_v35 = vld [vmem:[#allocation18_spill] sm:$0xff] }
 0x2fb   : > { %3920 = vmatpush.msra.mxu1 %v7826_v52  ;;  %3315 = vmatmul.f32.gmra.mxu3 %v9331_v24 }
 0x2fc   : > { %2974 = vmatmul.f32.gmra.mxu0 %v9269_v12  ;;  %v5738_v60 = vadd.f32 %v5737_v9, %v5600_v61  ;;  %3219 = vmatmul.f32.gmra.mxu2 %v9328_v19  ;;  %v3725_v30 = vsub.f32 %v7898_v0, %v9152_v51  ;;  %v9358_v9 = vld [vmem:[#allocation12_spill] sm:$0xff] }
 0x2fd   : > { %3922 = vmatpush.msra.mxu1 %v7873_v2  ;;  %v2552_v57 = vpop.f32.mrf.mxu3 }
 0x2fe   : > { %v3726_v41 = vand.u32 4294901760, %v3725_v30  ;;  %v9362_v30 = vld [vmem:[#allocation26_spill] sm:$0xff] }
 0x2ff   : > { %v2308_v16 = vpop.f32.mrf.mxu1  ;;  %v2444_v18 = vpop.f32.mrf.mxu2  ;;  %3924 = vmatpush.msra.mxu1 %v7891_v47 }
 0x300   : > { %v2309_v10 = vadd.f32 %v2308_v16, %v2229_v20  ;;  %v7911_v31 = vadd.f32 %v2552_v57, %v2444_v18  ;;  %3727 = vmatpush.msrb.mxu3 %v3726_v41  ;;  %v360_v20 = vld [vmem:[%s6520_s21 + $0xe8] sm:$0xff]  ;;  %v9364_v18 = vld [vmem:[#allocation23_spill] sm:$0xff]  ;;  %v9365_v57 = vld [vmem:[#allocation21_spill] sm:$0xff] }
 0x301   : > { %v2588_v63 = vpop.f32.mrf.mxu0 }
 0x302   : > { %v5608_v53 = vmul.f32 %v7792_v44, %v2309_v10  ;;  %3130 = vmatmul.f32.gmra.mxu1 %v9358_v9  ;;  %v2589_v42 = vadd.f32 %v2588_v63, %v9361_v35  ;;  %v7922_v44 = vand.u32 4294901760, %v360_v20  ;;  %v9363_v10 = vld [vmem:[#allocation13_spill] sm:$0xff] }
 0x303   : > { %3321 = vmatmul.f32.gmra.mxu3 %v9359_v17  ;;  %v7945_v17 = vld [vmem:[%s6526_s10 + $0x58] sm:$0xff] }
 0x304   : > { %2982 = vmatmul.f32.gmra.mxu0 %v9314_v3  ;;  %v7916_v4 = vadd.f32 %v5738_v60, %v5608_v53  ;;  %3224 = vmatmul.f32.gmra.mxu2 %v9360_v11  ;;  %v7928_v60 = vsub.f32 %v360_v20, %v7922_v44  ;;  %v9366_v53 = vld [vmem:[#allocation9_spill] sm:$0xff]  ;;  %v9379_v3 = vld [vmem:[#allocation28_spill] sm:$0xff] }
 0x305   : > { %v2883_v21 = vpop.f32.mrf.mxu3  ;;  %3581 = vmatpush.msrb.mxu2 %v7922_v44  ;;  %3926 = vmatpush.msra.mxu1 %v7922_v44 }
 0x306   : > { %v9155_v41 = vand.u32 4294901760, %v7928_v60  ;;  %3829 = vmatpush.msra.mxu0 %v7928_v60 }
 0x307   : > { %v2683_v38 = vpop.f32.mrf.mxu1  ;;  %v2803_v61 = vpop.f32.mrf.mxu2 }
 0x308   : > { %v2684_v34 = vadd.f32 %v2683_v38, %v2589_v42 }
 0x309   : > { %v2593_v28 = vpop.f32.mrf.mxu0 }
 0x30a   : > { %v2804_v16 = vadd.f32 %v2803_v61, %v2684_v34  ;;  %3134 = vmatmul.f32.gmra.mxu1 %v9363_v10  ;;  %v2594_v35 = vadd.f32 %v2593_v28, %v9366_v53  ;;  %v3731_v34 = vsub.f32 %v7928_v60, %v9155_v41  ;;  %v9369_v53 = vld [vmem:[#allocation27_spill] sm:$0xff]  ;;  %v8020_v10 = vld [vmem:[%s6526_s10 + $0x198] sm:$0xff] }
 0x30b   : > { %3327 = vmatmul.f32.gmra.mxu3 %v9364_v18  ;;  %v7942_v18 = vld [vmem:[%s6526_s10 + $0x18] sm:$0xff] }
 0x30c   : > { %2990 = vmatmul.f32.gmra.mxu0 %v9362_v30  ;;  %v2884_v63 = vadd.f32 %v2883_v21, %v2804_v16  ;;  %3229 = vmatmul.f32.gmra.mxu2 %v9365_v57  ;;  %v3732_v16 = vand.u32 4294901760, %v3731_v34  ;;  %v9370_v57 = vld [vmem:[#allocation25_spill] sm:$0xff] }
 0x30d   : > { %v2887_v20 = vpop.f32.mrf.mxu3 }
 0x30e   : > { %3733 = vmatpush.msrb.mxu3 %v3732_v16  ;;  %v7953_v16 = vand.u32 4294901760, %v352_v49 }
 0x30f   : > { %v2689_v38 = vpop.f32.mrf.mxu1  ;;  %v2807_v21 = vpop.f32.mrf.mxu2 }
 0x310   : > { %v2690_v61 = vadd.f32 %v2689_v38, %v2594_v35  ;;  %v5505_v35 = vmul.f32 %v7942_v18, %v2884_v63  ;;  %v9371_v38 = vld [vmem:[#allocation55_spill] sm:$0xff]  ;;  %3583 = vmatpush.msrb.mxu2 %v7953_v16  ;;  %v7962_v63 = vsub.f32 %v352_v49, %v7953_v16  ;;  %3928 = vmatpush.msra.mxu1 %v7953_v16 }
 0x311   : > { %v2598_v42 = vpop.f32.mrf.mxu0 }
 0x312   : > { %v2808_v51 = vadd.f32 %v2807_v21, %v2690_v61  ;;  %3138 = vmatmul.f32.gmra.mxu1 %v9368_v22  ;;  %v2599_v34 = vadd.f32 %v2598_v42, %v9371_v38  ;;  %v9374_v42 = vld [vmem:[#allocation31_spill] sm:$0xff]  ;;  %3832 = vmatpush.msra.mxu0 %v7962_v63  ;;  %v9378_v22 = vld [vmem:[#allocation38_spill] sm:$0xff] }
 0x313   : > { %3333 = vmatmul.f32.gmra.mxu3 %v9369_v53  ;;  %v9373_v53 = vld [vmem:[#allocation24_spill] sm:$0xff] }
 0x314   : > { %2998 = vmatmul.f32.gmra.mxu0 %v9367_v25  ;;  %v2888_v28 = vadd.f32 %v2887_v20, %v2808_v51  ;;  %3234 = vmatmul.f32.gmra.mxu2 %v9370_v57  ;;  %v9372_v20 = vld [vmem:[#allocation34_spill] sm:$0xff]  ;;  %v7958_v57 = vld [vmem:[%s6526_s10 + $0x98] sm:$0xff] }
 0x315   : > { %v2891_v19 = vpop.f32.mrf.mxu3 }
 0x316   : > { %v5513_v61 = vmul.f32 %v7945_v17, %v2888_v28  ;;  %v9375_v28 = vld [vmem:[#allocation29_spill] sm:$0xff] }
 0x317   : > { %v2695_v41 = vpop.f32.mrf.mxu1  ;;  %v2811_v15 = vpop.f32.mrf.mxu2 }
 0x318   : > { %v5650_v24 = vadd.f32 %v5513_v61, %v5505_v35  ;;  %v2696_v11 = vadd.f32 %v2695_v41, %v2599_v34 }
 0x319   : > { %v2603_v21 = vpop.f32.mrf.mxu0 }
 0x31a   : > { %v2812_v51 = vadd.f32 %v2811_v15, %v2696_v11  ;;  %3142 = vmatmul.f32.gmra.mxu1 %v9373_v53  ;;  %v9161_v15 = vand.u32 4294901760, %v7962_v63  ;;  %v9376_v11 = vld [vmem:[#allocation56_spill] sm:$0xff] }
 0x31b   : > { %3339 = vmatmul.f32.gmra.mxu3 %v9374_v42  ;;  %v2604_v35 = vadd.f32 %v2603_v21, %v9376_v11  ;;  %v7978_v21 = vld [vmem:[%s6526_s10 + $0xd8] sm:$0xff]  ;;  %v9380_v11 = vld [vmem:[#allocation35_spill] sm:$0xff] }
 0x31c   : > { %3006 = vmatmul.f32.gmra.mxu0 %v9372_v20  ;;  %v2892_v41 = vadd.f32 %v2891_v19, %v2812_v51  ;;  %3239 = vmatmul.f32.gmra.mxu2 %v9375_v28  ;;  %v3737_v49 = vsub.f32 %v7962_v63, %v9161_v15  ;;  %v9377_v51 = vld [vmem:[#allocation57_spill] sm:$0xff] }
 0x31d   : > { %v2895_v25 = vpop.f32.mrf.mxu3  ;;  %v9381_v15 = vld [vmem:[#allocation33_spill] sm:$0xff] }
 0x31e   : > { %v5521_v38 = vmul.f32 %v7958_v57, %v2892_v41  ;;  %v3738_v53 = vand.u32 4294901760, %v3737_v49 }
 0x31f   : > { %v2701_v61 = vpop.f32.mrf.mxu1  ;;  %v2815_v28 = vpop.f32.mrf.mxu2 }
 0x320   : > { %v5651_v19 = vadd.f32 %v5650_v24, %v5521_v38  ;;  %v2702_v20 = vadd.f32 %v2701_v61, %v2604_v35  ;;  %3739 = vmatpush.msrb.mxu3 %v3738_v53  ;;  %v9382_v61 = vld [vmem:[#allocation58_spill] sm:$0xff]  ;;  %v9384_v53 = vld [vmem:[#allocation32_spill] sm:$0xff] }
 0x321   : > { %v2608_v34 = vpop.f32.mrf.mxu0 }
 0x322   : > { %v2609_v42 = vadd.f32 %v2608_v34, %v9377_v51  ;;  %v2816_v30 = vadd.f32 %v2815_v28, %v2702_v20  ;;  %3146 = vmatmul.f32.gmra.mxu1 %v9379_v3  ;;  %v9383_v3 = vld [vmem:[#allocation42_spill] sm:$0xff] }
 0x323   : > { %3345 = vmatmul.f32.gmra.mxu3 %v9380_v11 }
 0x324   : > { %3014 = vmatmul.f32.gmra.mxu0 %v9378_v22  ;;  %v2896_v41 = vadd.f32 %v2895_v25, %v2816_v30  ;;  %3244 = vmatmul.f32.gmra.mxu2 %v9381_v15  ;;  %v7987_v25 = vld [vmem:[%s6526_s10 + $0x118] sm:$0xff]  ;;  %v9386_v15 = vld [vmem:[#allocation46_spill] sm:$0xff] }
 0x325   : > { %v2899_v51 = vpop.f32.mrf.mxu3 }
 0x326   : > { %v5529_v24 = vmul.f32 %v7978_v21, %v2896_v41  ;;  %v9385_v41 = vld [vmem:[#allocation37_spill] sm:$0xff] }
 0x327   : > { %v2707_v38 = vpop.f32.mrf.mxu1  ;;  %v2819_v49 = vpop.f32.mrf.mxu2 }
 0x328   : > { %v5652_v34 = vadd.f32 %v5651_v19, %v5529_v24  ;;  %v2708_v28 = vadd.f32 %v2707_v38, %v2609_v42 }
 0x329   : > { %v2613_v35 = vpop.f32.mrf.mxu0 }
 0x32a   : > { %v2614_v20 = vadd.f32 %v2613_v35, %v9382_v61  ;;  %v2820_v22 = vadd.f32 %v2819_v49, %v2708_v28  ;;  %3150 = vmatmul.f32.gmra.mxu1 %v9384_v53  ;;  %v344_v49 = vld [vmem:[%s6520_s21 + $0x68] sm:$0xff] }
 0x32b   : > { %3351 = vmatmul.f32.gmra.mxu3 %v9349_v13  ;;  %v7995_v53 = vand.u32 4294901760, %v344_v49 }
 0x32c   : > { %3022 = vmatmul.f32.gmra.mxu0 %v9383_v3  ;;  %v2900_v30 = vadd.f32 %v2899_v51, %v2820_v22  ;;  %3249 = vmatmul.f32.gmra.mxu2 %v9385_v41  ;;  %v9387_v3 = vld [vmem:[#allocation36_spill] sm:$0xff] }
 0x32d   : > { %v2903_v28 = vpop.f32.mrf.mxu3  ;;  %v7998_v22 = vld [vmem:[%s6526_s10 + $0x158] sm:$0xff]  ;;  %3585 = vmatpush.msrb.mxu2 %v7995_v53  ;;  %3930 = vmatpush.msra.mxu1 %v7995_v53 }
 0x32e   : > { %v5537_v19 = vmul.f32 %v7987_v25, %v2900_v30  ;;  %v9388_v30 = vld [vmem:[#allocation41_spill] sm:$0xff] }
 0x32f   : > { %v2713_v42 = vpop.f32.mrf.mxu1  ;;  %v2823_v61 = vpop.f32.mrf.mxu2 }
 0x330   : > { %v5653_v35 = vadd.f32 %v5652_v34, %v5537_v19  ;;  %v2714_v38 = vadd.f32 %v2713_v42, %v2614_v20  ;;  %v8003_v34 = vsub.f32 %v344_v49, %v7995_v53  ;;  %v5644_v20 = vrot.slane %v7806_v40, 4 }
 0x331   : > { %v2618_v24 = vpop.f32.mrf.mxu0 }
 0x332   : > { %v2824_v11 = vadd.f32 %v2823_v61, %v2714_v38  ;;  %3154 = vmatmul.f32.gmra.mxu1 %v9387_v3  ;;  %v2619_v19 = vadd.f32 %v2618_v24, %v7797_v55  ;;  %3835 = vmatpush.msra.mxu0 %v8003_v34  ;;  %v9389_v24 = vld [vmem:[#allocation48_spill] sm:$0xff] }
 0x333   : > { %3357 = vmatmul.f32.gmra.mxu3 %v9352_v26 }
 0x334   : > { %3030 = vmatmul.f32.gmra.mxu0 %v9386_v15  ;;  %v2904_v51 = vadd.f32 %v2903_v28, %v2824_v11  ;;  %3254 = vmatmul.f32.gmra.mxu2 %v9388_v30  ;;  %v3742_v11 = vand.u32 4294901760, %v8003_v34  ;;  %v336_v30 = vld [vmem:[%s6520_s21 + $0x28] sm:$0xff]  ;;  %v5645_v15 = vadd.f32 %v5644_v20, %v7806_v40  ;;  %v9390_v40 = vand.u32 4294901760, %v7831_v48  ;;  %v9391_v20 = vld [vmem:[#allocation45_spill] sm:$0xff] }
 0x335   : > { %v2907_v13 = vpop.f32.mrf.mxu3  ;;  %v8015_v3 = vand.u32 4294901760, %v336_v30 }
 0x336   : > { %v5545_v42 = vmul.f32 %v7998_v22, %v2904_v51  ;;  %v3743_v41 = vsub.f32 %v8003_v34, %v3742_v11 }
 0x337   : > { %v2719_v61 = vpop.f32.mrf.mxu1  ;;  %v2827_v26 = vpop.f32.mrf.mxu2  ;;  %3587 = vmatpush.msrb.mxu2 %v8015_v3  ;;  %3932 = vmatpush.msra.mxu1 %v8015_v3 }
 0x338   : > { %v5654_v28 = vadd.f32 %v5653_v35, %v5545_v42  ;;  %v2720_v49 = vadd.f32 %v2719_v61, %v2619_v19  ;;  %v3744_v51 = vand.u32 4294901760, %v3743_v41  ;;  %v3747_v35 = vsub.f32 %v336_v30, %v8015_v3 }
 0x339   : > { %v2623_v38 = vpop.f32.mrf.mxu0  ;;  %4030 = vmatpush.msra.mxu2 %v9390_v40  ;;  %v9392_v42 = vand.u32 4294901760, %v7879_v8  ;;  %v9393_v40 = vand.u32 4294901760, %v7898_v0  ;;  %v9395_v8 = vld [vmem:[#allocation44_spill] sm:$0xff] }
 0x33a   : > { %v2828_v55 = vadd.f32 %v2827_v26, %v2720_v49  ;;  %3158 = vmatmul.f32.gmra.mxu1 %v6860_v45  ;;  %v5646_v26 = vrot.slane %v5645_v15, 2  ;;  %3745 = vmatpush.msrb.mxu3 %v3744_v51  ;;  %v3748_v19 = vand.u32 4294901760, %v3747_v35 }
 0x33b   : > { %3363 = vmatmul.f32.gmra.mxu3 %v9357_v50  ;;  %4034 = vmatpush.msra.mxu2 %v9392_v42  ;;  %v9396_v42 = vand.u32 4294901760, %v7928_v60 }
 0x33c   : > { %3038 = vmatmul.f32.gmra.mxu0 %v9389_v24  ;;  %v2908_v34 = vadd.f32 %v2907_v13, %v2828_v55  ;;  %3259 = vmatmul.f32.gmra.mxu2 %v9391_v20  ;;  %v3749_v49 = vsub.f32 %v3747_v35, %v3748_v19  ;;  %v2624_v13 = vadd.f32 %v2623_v38, %v7814_v56 }
 0x33d   : > { %3838 = vmatpush.msra.mxu0 %v3747_v35  ;;  %v2911_v48 = vpop.f32.mrf.mxu3  ;;  %4038 = vmatpush.msra.mxu2 %v9393_v40  ;;  %v5647_v20 = vadd.f32 %v5646_v26, %v5645_v15 }
 0x33e   : > { %v5553_v41 = vmul.f32 %v8020_v10, %v2908_v34  ;;  %v3750_v51 = vand.u32 4294901760, %v3749_v49  ;;  %v9394_v34 = vld [vmem:[#allocation49_spill] sm:$0xff] }
 0x33f   : > { %v2725_v61 = vpop.f32.mrf.mxu1  ;;  %v2831_v50 = vpop.f32.mrf.mxu2  ;;  %4042 = vmatpush.msra.mxu2 %v9396_v42  ;;  %v5648_v56 = vrot.slane %v5647_v20, 1 }
 0x340   : > { %v5655_v55 = vadd.f32 %v5654_v28, %v5553_v41  ;;  %v2726_v45 = vadd.f32 %v2725_v61, %v2624_v13  ;;  %3751 = vmatpush.msrb.mxu3 %v3750_v51  ;;  %v9397_v28 = vand.u32 4294901760, %v7962_v63 }
 0x341   : > { %v2628_v30 = vpop.f32.mrf.mxu0  ;;  %v5649_v13 = vadd.f32 %v5648_v56, %v5647_v20  ;;  %v9399_v56 = vld [vmem:[#allocation53_spill] sm:$0xff] }
 0x342   : > { %v5656_v24 = vrot.slane %v5655_v55, 4  ;;  %3162 = vmatmul.f32.gmra.mxu1 %v9395_v8  ;;  %4122 = vmatpush.msra.mxu3 %v7826_v52  ;;  %v2629_v15 = vadd.f32 %v2628_v30, %v7833_v27  ;;  %v2832_v38 = vadd.f32 %v2831_v50, %v2726_v45  ;;  %v9398_v27 = vld [vmem:[#allocation50_spill] sm:$0xff] }
 0x343   : > { %3369 = vmatmul.f32.gmra.mxu3 %v6930_v36  ;;  %4046 = vmatpush.msra.mxu2 %v9397_v28 }
 0x344   : > { %3046 = vmatmul.f32.gmra.mxu0 %v9394_v34  ;;  %v5657_v35 = vadd.f32 %v5656_v24, %v5655_v55  ;;  %3264 = vmatmul.f32.gmra.mxu2 %v6921_v59  ;;  %v2912_v55 = vadd.f32 %v2911_v48, %v2832_v38 }
 0x345   : > { %4124 = vmatpush.msra.mxu3 %v7873_v2  ;;  %v2915_v49 = vpop.f32.mrf.mxu3  ;;  %4050 = vmatpush.msra.mxu2 %v3742_v11  ;;  %v5823_v2 = vrot.slane %v5649_v13, 4 }
 0x346   : > { %v5658_v0 = vrot.slane %v5657_v35, 2  ;;  %v5561_v63 = vmul.f32 %v7942_v18, %v2912_v55 }
 0x347   : > { %v2731_v41 = vpop.f32.mrf.mxu1  ;;  %v2835_v61 = vpop.f32.mrf.mxu2  ;;  %4126 = vmatpush.msra.mxu3 %v7891_v47  ;;  %4054 = vmatpush.msra.mxu2 %v3748_v19 }
 0x348   : > { %v5659_v60 = vadd.f32 %v5658_v0, %v5657_v35  ;;  %v2732_v24 = vadd.f32 %v2731_v41, %v2629_v15 }
 0x349   : > { %v2633_v26 = vpop.f32.mrf.mxu0  ;;  %4128 = vmatpush.msra.mxu3 %v7922_v44 }
 0x34a   : > { %v5660_v52 = vrot.slane %v5659_v60, 1  ;;  %v2836_v40 = vadd.f32 %v2835_v61, %v2732_v24  ;;  %3166 = vmatmul.f32.gmra.mxu1 %v6911_v5  ;;  %v2634_v11 = vadd.f32 %v2633_v26, %v7850_v32  ;;  %v9400_v32 = vld [vmem:[#allocation52_spill] sm:$0xff]  ;;  %v9401_v24 = vld [vmem:[#allocation54_spill] sm:$0xff] }
 0x34b   : > { %3375 = vmatmul.f32.gmra.mxu3 %v6954_v37 }
 0x34c   : > { %3054 = vmatmul.f32.gmra.mxu0 %v9398_v27  ;;  %v5661_v45 = vadd.f32 %v5660_v52, %v5659_v60  ;;  %v2916_v50 = vadd.f32 %v2915_v49, %v2836_v40  ;;  %3269 = vmatmul.f32.gmra.mxu2 %v6944_v54 }
 0x34d   : > { %4130 = vmatpush.msra.mxu3 %v7953_v16 }
 0x34e   : > { %v5824_v47 = vrot.slane %v5661_v45, 2  ;;  %v5569_v20 = vmul.f32 %v7945_v17, %v2916_v50  ;;  %v2919_v35 = vpop.f32.mrf.mxu3 }
 0x34f   : > { %v2737_v19 = vpop.f32.mrf.mxu1  ;;  %4132 = vmatpush.msra.mxu3 %v7995_v53  ;;  %v2839_v42 = vpop.f32.mrf.mxu2 }
 0x350   : > { %v5837_v30 = vsel %vm5836_vm2, %v5823_v2, %v5824_v47  ;;  %v5746_v48 = vadd.f32 %v5569_v20, %v5561_v63  ;;  %v2738_v51 = vadd.f32 %v2737_v19, %v2634_v11 }
 0x351   : > { %v2638_v44 = vpop.f32.mrf.mxu0  ;;  %v8060_v16 = vsel %vm5838_vm3, %v9399_v56, %v5837_v30  ;;  %4134 = vmatpush.msra.mxu3 %v8015_v3 }
 0x352   : > { %v2840_v18 = vadd.f32 %v2839_v42, %v2738_v51  ;;  %3170 = vmatmul.f32.gmra.mxu1 %v6932_v29  ;;  %v2639_v53 = vadd.f32 %v2638_v44, %v7859_v14 }
 0x353   : > { %3381 = vmatmul.f32.gmra.mxu3 %v9266_v58 }
 0x354   : > { %3062 = vmatmul.f32.gmra.mxu0 %v9400_v32  ;;  %v2920_v17 = vadd.f32 %v2919_v35, %v2840_v18  ;;  %3274 = vmatmul.f32.gmra.mxu2 %v6971_v23 }
 0x356   : > { %v5577_v0 = vmul.f32 %v7958_v57, %v2920_v17  ;;  %v2923_v3 = vpop.f32.mrf.mxu3 }
 0x357   : > { %v2743_v38 = vpop.f32.mrf.mxu1  ;;  %v2843_v41 = vpop.f32.mrf.mxu2 }
 0x358   : > { %v5747_v28 = vadd.f32 %v5746_v48, %v5577_v0  ;;  %v2744_v26 = vadd.f32 %v2743_v38, %v2639_v53  ;;  %v9402_v38 = vld [vmem:[#allocation13_spill] sm:$0xff] }
 0x359   : > { %v2643_v15 = vpop.f32.mrf.mxu0 }
 0x35a   : > { %v2844_v60 = vadd.f32 %v2843_v41, %v2744_v26  ;;  %3174 = vmatmul.f32.gmra.mxu1 %v6956_v1  ;;  %v2644_v14 = vadd.f32 %v2643_v15, %v7867_v6  ;;  %v9403_v26 = vld [vmem:[#allocation22_spill] sm:$0xff] }
 0x35b   : > { %3387 = vmatmul.f32.gmra.mxu3 %v9267_v46 }
 0x35c   : > { %3070 = vmatmul.f32.gmra.mxu0 %v9401_v24  ;;  %v2924_v61 = vadd.f32 %v2923_v3, %v2844_v60  ;;  %3279 = vmatmul.f32.gmra.mxu2 %v6994_v33 }
 0x35e   : > { %v5585_v57 = vmul.f32 %v7978_v21, %v2924_v61  ;;  %v2927_v45 = vpop.f32.mrf.mxu3 }
 0x35f   : > { %v2749_v13 = vpop.f32.mrf.mxu1  ;;  %v2847_v40 = vpop.f32.mrf.mxu2 }
 0x360   : > { %v5748_v52 = vadd.f32 %v5747_v28, %v5585_v57  ;;  %v2750_v55 = vadd.f32 %v2749_v13, %v2644_v14 }
 0x361   : > { %v2648_v49 = vpop.f32.mrf.mxu0 }
 0x362   : > { %v2848_v50 = vadd.f32 %v2847_v40, %v2750_v55  ;;  %3178 = vmatmul.f32.gmra.mxu1 %v6985_v39  ;;  %v2649_v6 = vadd.f32 %v2648_v49, %v7886_v43  ;;  %v5740_v43 = vrot.slane %v7916_v4, 4 }
 0x363   : > { %3753 = vmatmul.f32.vlgmr.msrb.gmra.mxu3 %v9270_v7 }
 0x364   : > { %3429 = vmatmul.f32.vlgmr.msrb.gmra.mxu0 %v9270_v7  ;;  %v2928_v2 = vadd.f32 %v2927_v45, %v2848_v50  ;;  %3593 = vmatmul.f32.vlgmr.msrb.gmra.mxu2 %v9268_v62  ;;  %v5741_v0 = vadd.f32 %v5740_v43, %v7916_v4 }
 0x366   : > { %v5593_v21 = vmul.f32 %v7987_v25, %v2928_v2  ;;  %v2931_v19 = vpop.f32.mrf.mxu3 }
 0x367   : > { %v2755_v63 = vpop.f32.mrf.mxu1  ;;  %v2851_v44 = vpop.f32.mrf.mxu2 }
 0x368   : > { %v5749_v11 = vadd.f32 %v5748_v52, %v5593_v21  ;;  %v2756_v20 = vadd.f32 %v2755_v63, %v2649_v6  ;;  %v9404_v52 = vld [vmem:[#allocation20_spill] sm:$0xff] }
 0x369   : > { %v2653_v47 = vpop.f32.mrf.mxu0 }
 0x36a   : > { %v2852_v30 = vadd.f32 %v2851_v44, %v2756_v20  ;;  %3509 = vmatmul.f32.vlgmr.msrb.gmra.mxu1 %v9270_v7  ;;  %v2654_v25 = vadd.f32 %v2653_v47, %v7911_v31  ;;  %v5742_v31 = vrot.slane %v5741_v0, 2 }
 0x36b   : > { %3757 = vmatmul.f32.gmra.mxu3 %v9358_v9 }
 0x36c   : > { %3433 = vmatmul.f32.gmra.mxu0 %v9358_v9  ;;  %v2932_v48 = vadd.f32 %v2931_v19, %v2852_v30  ;;  %3601 = vmatmul.f32.gmra.mxu2 %v9269_v12  ;;  %v5743_v57 = vadd.f32 %v5742_v31, %v5741_v0  ;;  %v9406_v30 = vld [vmem:[#allocation24_spill] sm:$0xff] }
 0x36e   : > { %v5601_v51 = vmul.f32 %v7998_v22, %v2932_v48  ;;  %v2935_v53 = vpop.f32.mrf.mxu3  ;;  %v5744_v45 = vrot.slane %v5743_v57, 1 }
 0x36f   : > { %v2761_v42 = vpop.f32.mrf.mxu1  ;;  %v2855_v17 = vpop.f32.mrf.mxu2 }
 0x370   : > { %v5750_v56 = vadd.f32 %v5749_v11, %v5601_v51  ;;  %v2762_v18 = vadd.f32 %v2761_v42, %v2654_v25  ;;  %v5745_v20 = vadd.f32 %v5744_v45, %v5743_v57  ;;  %v9407_v25 = vld [vmem:[#allocation30_spill] sm:$0xff] }
 0x371   : > { %v2967_v35 = vpop.f32.mrf.mxu0 }
 0x372   : > { %v2856_v15 = vadd.f32 %v2855_v17, %v2762_v18  ;;  %3513 = vmatmul.f32.gmra.mxu1 %v9358_v9  ;;  %v5829_v51 = vrot.slane %v5745_v20, 4 }
 0x373   : > { %3761 = vmatmul.f32.gmra.mxu3 %v9402_v38 }
 0x374   : > { %3437 = vmatmul.f32.gmra.mxu0 %v9402_v38  ;;  %v2936_v28 = vadd.f32 %v2935_v53, %v2856_v15  ;;  %3609 = vmatmul.f32.gmra.mxu2 %v9403_v26  ;;  %v9408_v15 = vld [vmem:[#allocation14_spill] sm:$0xff] }
 0x376   : > { %v5609_v22 = vmul.f32 %v8020_v10, %v2936_v28  ;;  %v3310_v4 = vpop.f32.mrf.mxu3  ;;  %v9405_v10 = vld [vmem:[#allocation26_spill] sm:$0xff] }
 0x377   : > { %v3127_v3 = vpop.f32.mrf.mxu1  ;;  %v3215_v14 = vpop.f32.mrf.mxu2 }
 0x378   : > { %v5751_v60 = vadd.f32 %v5750_v56, %v5609_v22  ;;  %v3128_v61 = vadd.f32 %v3127_v3, %v2967_v35 }
 0x379   : > { %v2975_v41 = vpop.f32.mrf.mxu0 }
 0x37a   : > { %v5752_v49 = vrot.slane %v5751_v60, 4  ;;  %v3216_v13 = vadd.f32 %v3215_v14, %v3128_v61  ;;  %3517 = vmatmul.f32.gmra.mxu1 %v9402_v38  ;;  %v9410_v14 = vld [vmem:[#allocation34_spill] sm:$0xff] }
 0x37b   : > { %3765 = vmatmul.f32.gmra.mxu3 %v9404_v52 }
 0x37c   : > { %3441 = vmatmul.f32.gmra.mxu0 %v9404_v52  ;;  %v5753_v55 = vadd.f32 %v5752_v49, %v5751_v60  ;;  %v8096_v40 = vadd.f32 %v3310_v4, %v3216_v13  ;;  %3617 = vmatmul.f32.gmra.mxu2 %v9405_v10 }
 0x37e   : > { %v5754_v50 = vrot.slane %v5753_v55, 2  ;;  %v3316_v11 = vpop.f32.mrf.mxu3 }
 0x37f   : > { %v3131_v6 = vpop.f32.mrf.mxu1  ;;  %v3220_v63 = vpop.f32.mrf.mxu2 }
 0x380   : > { %v5755_v21 = vadd.f32 %v5754_v50, %v5753_v55  ;;  %v3132_v47 = vadd.f32 %v3131_v6, %v2975_v41  ;;  %v9409_v41 = vld [vmem:[#allocation28_spill] sm:$0xff] }
 0x381   : > { %v2983_v2 = vpop.f32.mrf.mxu0 }
 0x382   : > { %v5756_v44 = vrot.slane %v5755_v21, 1  ;;  %v3221_v19 = vadd.f32 %v3220_v63, %v3132_v47  ;;  %3521 = vmatmul.f32.gmra.mxu1 %v9404_v52 }
 0x383   : > { %3769 = vmatmul.f32.gmra.mxu3 %v9406_v30 }
 0x384   : > { %3445 = vmatmul.f32.gmra.mxu0 %v9406_v30  ;;  %v5757_v48 = vadd.f32 %v5756_v44, %v5755_v21  ;;  %v8103_v43 = vadd.f32 %v3316_v11, %v3221_v19  ;;  %3625 = vmatmul.f32.gmra.mxu2 %v9407_v25  ;;  %v9412_v21 = vld [vmem:[#allocation38_spill] sm:$0xff] }
 0x386   : > { %v5830_v42 = vrot.slane %v5757_v48, 2  ;;  %v3322_v0 = vpop.f32.mrf.mxu3  ;;  %v9413_v48 = vld [vmem:[#allocation36_spill] sm:$0xff] }
 0x387   : > { %v3135_v56 = vpop.f32.mrf.mxu1  ;;  %v3225_v53 = vpop.f32.mrf.mxu2 }
 0x388   : > { %v5844_v18 = vsel %vm5836_vm2, %v5829_v51, %v5830_v42  ;;  %v3136_v17 = vadd.f32 %v3135_v56, %v2983_v2  ;;  %v9411_v2 = vld [vmem:[#allocation32_spill] sm:$0xff]  ;;  %v9414_v42 = vld [vmem:[#allocation42_spill] sm:$0xff] }
 0x389   : > { %v2991_v35 = vpop.f32.mrf.mxu0  ;;  %v5845_v28 = vsel %vm5838_vm3, %v9408_v15, %v5844_v18  ;;  %v9415_v15 = vld [vmem:[#allocation40_spill] sm:$0xff] }
 0x38a   : > { %v5853_v31 = vrot.slane %v5845_v28, 7  ;;  %v3226_v22 = vadd.f32 %v3225_v53, %v3136_v17  ;;  %3525 = vmatmul.f32.gmra.mxu1 %v9406_v30 }
 0x38b   : > { %3773 = vmatmul.f32.gmra.mxu3 %v9409_v41 }
 0x38c   : > { %3449 = vmatmul.f32.gmra.mxu0 %v9409_v41  ;;  %v5855_v3 = vsel %vm5854_vm4, %v5853_v31, %v8060_v16  ;;  %v8114_v60 = vadd.f32 %v3322_v0, %v3226_v22  ;;  %3633 = vmatmul.f32.gmra.mxu2 %v9410_v14 }
 0x38d   : > { %v5857_v61 = vsel %vm5856_vm5, %v5853_v31, %v5855_v3 }
 0x38e   : > { %v5859_v4 = vsel %vm5858_vm6, %v5853_v31, %v5857_v61  ;;  %v3328_v45 = vpop.f32.mrf.mxu3 }
 0x38f   : > { %v5861_v57 = vsel %vm5860_vm7, %v5853_v31, %v5859_v4  ;;  %v3139_v49 = vpop.f32.mrf.mxu1  ;;  %v3230_v55 = vpop.f32.mrf.mxu2  ;;  %v9416_v31 = vld [vmem:[#allocation46_spill] sm:$0xff] }
 0x390   : > { %5871 = vst [vmem:[%s8120_s9] sm:$0xff] %v5861_v57  ;;  %v3140_v13 = vadd.f32 %v3139_v49, %v2991_v35 }
 0x391   : > { %v2999_v16 = vpop.f32.mrf.mxu0 }
 0x392   : > { %v3231_v50 = vadd.f32 %v3230_v55, %v3140_v13  ;;  %3529 = vmatmul.f32.gmra.mxu1 %v9409_v41  ;;  %v9417_v13 = vld [vmem:[#allocation48_spill] sm:$0xff] }
 0x393   : > { %3777 = vmatmul.f32.gmra.mxu3 %v9411_v2 }
 0x394   : > { %3453 = vmatmul.f32.gmra.mxu0 %v9411_v2  ;;  %v8129_v6 = vadd.f32 %v3328_v45, %v3231_v50  ;;  %3641 = vmatmul.f32.gmra.mxu2 %v9412_v21  ;;  %v361_v21 = vld [vmem:[%s6520_s21 + $0xf0] sm:$0xff] }
 0x396   : > { %v3334_v44 = vpop.f32.mrf.mxu3 }
 0x397   : > { %v3143_v63 = vpop.f32.mrf.mxu1  ;;  %v3235_v20 = vpop.f32.mrf.mxu2 }
 0x398   : > { %v3144_v11 = vadd.f32 %v3143_v63, %v2999_v16 }
 0x399   : > { %v3007_v47 = vpop.f32.mrf.mxu0 }
 0x39a   : > { %v3236_v19 = vadd.f32 %v3235_v20, %v3144_v11  ;;  %3533 = vmatmul.f32.gmra.mxu1 %v9411_v2 }
 0x39b   : > { %3781 = vmatmul.f32.gmra.mxu3 %v9413_v48 }
 0x39c   : > { %3457 = vmatmul.f32.gmra.mxu0 %v9413_v48  ;;  %v8135_v51 = vadd.f32 %v3334_v44, %v3236_v19  ;;  %3649 = vmatmul.f32.gmra.mxu2 %v9414_v42  ;;  %v385_v44 = vld [vmem:[%s6520_s21 + $0x1b0] sm:$0xff] }
 0x39d   : > { %v8158_v19 = vand.u32 4294901760, %v385_v44 }
 0x39e   : > { %v3340_v53 = vpop.f32.mrf.mxu3 }
 0x39f   : > { %v3147_v56 = vpop.f32.mrf.mxu1  ;;  %v3240_v17 = vpop.f32.mrf.mxu2  ;;  %4202 = vmatpush.msrb.mxu0 %v8158_v19  ;;  %4547 = vmatpush.msrb.mxu3 %v8158_v19 }
 0x3a0   : > { %v3148_v18 = vadd.f32 %v3147_v56, %v3007_v47 }
 0x3a1   : > { %v3015_v35 = vpop.f32.mrf.mxu0 }
 0x3a2   : > { %v3241_v0 = vadd.f32 %v3240_v17, %v3148_v18  ;;  %3537 = vmatmul.f32.gmra.mxu1 %v9413_v48 }
 0x3a3   : > { %3785 = vmatmul.f32.gmra.mxu3 %v9415_v15 }
 0x3a4   : > { %3461 = vmatmul.f32.gmra.mxu0 %v9415_v15  ;;  %v8141_v28 = vadd.f32 %v3340_v53, %v3241_v0  ;;  %3657 = vmatmul.f32.gmra.mxu2 %v9416_v31  ;;  %v8161_v0 = vsub.f32 %v385_v44, %v8158_v19  ;;  %v377_v44 = vld [vmem:[%s6520_s21 + $0x170] sm:$0xff] }
 0x3a6   : > { %v3346_v57 = vpop.f32.mrf.mxu3  ;;  %4447 = vmatpush.msrb.mxu2 %v8161_v0 }
 0x3a7   : > { %v3151_v3 = vpop.f32.mrf.mxu1  ;;  %v3245_v4 = vpop.f32.mrf.mxu2 }
 0x3a8   : > { %v3152_v61 = vadd.f32 %v3151_v3, %v3015_v35 }
 0x3a9   : > { %v3023_v22 = vpop.f32.mrf.mxu0 }
 0x3aa   : > { %v3246_v16 = vadd.f32 %v3245_v4, %v3152_v61  ;;  %3541 = vmatmul.f32.gmra.mxu1 %v9415_v15  ;;  %v9168_v61 = vand.u32 4294901760, %v8161_v0 }
 0x3ab   : > { %3789 = vmatmul.f32.gmra.mxu3 %v9395_v8 }
 0x3ac   : > { %3465 = vmatmul.f32.gmra.mxu0 %v9395_v8  ;;  %v8147_v49 = vadd.f32 %v3346_v57, %v3246_v16  ;;  %3665 = vmatmul.f32.gmra.mxu2 %v9417_v13  ;;  %v4340_v4 = vsub.f32 %v8161_v0, %v9168_v61 }
 0x3ae   : > { %v3352_v63 = vpop.f32.mrf.mxu3 }
 0x3af   : > { %v3155_v45 = vpop.f32.mrf.mxu1  ;;  %v3250_v47 = vpop.f32.mrf.mxu2 }
 0x3b0   : > { %v3156_v50 = vadd.f32 %v3155_v45, %v3023_v22 }
 0x3b1   : > { %v3031_v55 = vpop.f32.mrf.mxu0 }
 0x3b2   : > { %v3251_v11 = vadd.f32 %v3250_v47, %v3156_v50  ;;  %3545 = vmatmul.f32.gmra.mxu1 %v9395_v8  ;;  %v4341_v47 = vand.u32 4294901760, %v4340_v4 }
 0x3b3   : > { %3793 = vmatmul.f32.gmra.mxu3 %v6911_v5 }
 0x3b4   : > { %3469 = vmatmul.f32.gmra.mxu0 %v6911_v5  ;;  %v8153_v20 = vadd.f32 %v3352_v63, %v3251_v11  ;;  %3673 = vmatmul.f32.gmra.mxu2 %v9394_v34 }
 0x3b5   : > { %4342 = vmatpush.msrb.mxu1 %v4341_v47 }
 0x3b6   : > { %v3358_v53 = vpop.f32.mrf.mxu3 }
 0x3b7   : > { %v3159_v56 = vpop.f32.mrf.mxu1  ;;  %v3255_v17 = vpop.f32.mrf.mxu2 }
 0x3b8   : > { %v3160_v18 = vadd.f32 %v3159_v56, %v3031_v55  ;;  %v8183_v56 = vand.u32 4294901760, %v377_v44 }
 0x3b9   : > { %v3039_v35 = vpop.f32.mrf.mxu0 }
 0x3ba   : > { %v3256_v22 = vadd.f32 %v3255_v17, %v3160_v18  ;;  %3549 = vmatmul.f32.gmra.mxu1 %v6911_v5  ;;  %v8186_v4 = vsub.f32 %v377_v44, %v8183_v56  ;;  %4204 = vmatpush.msrb.mxu0 %v8183_v56 }
 0x3bb   : > { %3797 = vmatmul.f32.gmra.mxu3 %v6932_v29 }
 0x3bc   : > { %3473 = vmatmul.f32.gmra.mxu0 %v6932_v29  ;;  %v8168_v3 = vadd.f32 %v3358_v53, %v3256_v22  ;;  %3681 = vmatmul.f32.gmra.mxu2 %v9398_v27 }
 0x3bd   : > { %4549 = vmatpush.msrb.mxu3 %v8183_v56  ;;  %4450 = vmatpush.msrb.mxu2 %v8186_v4 }
 0x3be   : > { %v3364_v50 = vpop.f32.mrf.mxu3 }
 0x3bf   : > { %v3163_v16 = vpop.f32.mrf.mxu1  ;;  %v3260_v45 = vpop.f32.mrf.mxu2 }
 0x3c0   : > { %v3164_v55 = vadd.f32 %v3163_v16, %v3039_v35 }
 0x3c1   : > { %v3047_v57 = vpop.f32.mrf.mxu0 }
 0x3c2   : > { %v3261_v63 = vadd.f32 %v3260_v45, %v3164_v55  ;;  %3553 = vmatmul.f32.gmra.mxu1 %v6932_v29  ;;  %v9167_v55 = vand.u32 4294901760, %v8186_v4 }
 0x3c3   : > { %3801 = vmatmul.f32.gmra.mxu3 %v6956_v1 }
 0x3c4   : > { %3477 = vmatmul.f32.gmra.mxu0 %v6956_v1  ;;  %v8178_v11 = vadd.f32 %v3364_v50, %v3261_v63  ;;  %3689 = vmatmul.f32.gmra.mxu2 %v9400_v32 }
 0x3c6   : > { %v3370_v22 = vpop.f32.mrf.mxu3 }
 0x3c7   : > { %v3167_v35 = vpop.f32.mrf.mxu1  ;;  %v3265_v53 = vpop.f32.mrf.mxu2 }
 0x3c8   : > { %v3168_v17 = vadd.f32 %v3167_v35, %v3047_v57  ;;  %v4346_v57 = vsub.f32 %v8186_v4, %v9167_v55  ;;  %v369_v55 = vld [vmem:[%s6520_s21 + $0x130] sm:$0xff] }
 0x3c9   : > { %v3055_v18 = vpop.f32.mrf.mxu0  ;;  %v8208_v61 = vand.u32 4294901760, %v369_v55 }
 0x3ca   : > { %v3266_v16 = vadd.f32 %v3265_v53, %v3168_v17  ;;  %3557 = vmatmul.f32.gmra.mxu1 %v6956_v1  ;;  %v4347_v50 = vand.u32 4294901760, %v4346_v57 }
 0x3cb   : > { %3805 = vmatmul.f32.gmra.mxu3 %v6985_v39  ;;  %4206 = vmatpush.msrb.mxu0 %v8208_v61 }
 0x3cc   : > { %3481 = vmatmul.f32.gmra.mxu0 %v6985_v39  ;;  %v8194_v45 = vadd.f32 %v3370_v22, %v3266_v16  ;;  %3697 = vmatmul.f32.gmra.mxu2 %v9401_v24  ;;  %v9418_v22 = vld [vmem:[#allocation10_spill] sm:$0xff] }
 0x3cd   : > { %4348 = vmatpush.msrb.mxu1 %v4347_v50  ;;  %v8211_v50 = vsub.f32 %v369_v55, %v8208_v61  ;;  %4551 = vmatpush.msrb.mxu3 %v8208_v61 }
 0x3ce   : > { %v3376_v17 = vpop.f32.mrf.mxu3 }
 0x3cf   : > { %v3171_v63 = vpop.f32.mrf.mxu1  ;;  %v3270_v35 = vpop.f32.mrf.mxu2  ;;  %4453 = vmatpush.msrb.mxu2 %v8211_v50 }
 0x3d0   : > { %v3172_v44 = vadd.f32 %v3171_v63, %v3055_v18 }
 0x3d1   : > { %v3063_v47 = vpop.f32.mrf.mxu0 }
 0x3d2   : > { %v3271_v53 = vadd.f32 %v3270_v35, %v3172_v44  ;;  %3561 = vmatmul.f32.gmra.mxu1 %v6985_v39  ;;  %v9419_v35 = vld [vmem:[#allocation15_spill] sm:$0xff] }
 0x3d3   : > { %4136 = vmatmul.f32.vlgmr.msra.gmra.mxu3 %v9270_v7 }
 0x3d4   : > { %3841 = vmatmul.f32.vlgmr.msra.gmra.mxu0 %v9418_v22  ;;  %v8203_v16 = vadd.f32 %v3376_v17, %v3271_v53  ;;  %4056 = vmatmul.f32.vlgmr.msra.gmra.mxu2 %v9270_v7  ;;  %v9420_v17 = vld [vmem:[#allocation11_spill] sm:$0xff] }
 0x3d6   : > { %v3382_v32 = vpop.f32.mrf.mxu3 }
 0x3d7   : > { %v3175_v24 = vpop.f32.mrf.mxu1  ;;  %v3275_v63 = vpop.f32.mrf.mxu2 }
 0x3d8   : > { %v3176_v18 = vadd.f32 %v3175_v24, %v3063_v47  ;;  %v9173_v24 = vand.u32 4294901760, %v8211_v50 }
 0x3d9   : > { %v3071_v57 = vpop.f32.mrf.mxu0 }
 0x3da   : > { %v3276_v44 = vadd.f32 %v3275_v63, %v3176_v18  ;;  %3936 = vmatmul.f32.vlgmr.msra.gmra.mxu1 %v9420_v17  ;;  %v4352_v55 = vsub.f32 %v8211_v50, %v9173_v24  ;;  %v8233_v24 = vand.u32 4294901760, %v361_v21 }
 0x3db   : > { %4140 = vmatmul.f32.gmra.mxu3 %v9358_v9 }
 0x3dc   : > { %3846 = vmatmul.f32.gmra.mxu0 %v9419_v35  ;;  %v8218_v53 = vadd.f32 %v3382_v32, %v3276_v44  ;;  %4060 = vmatmul.f32.gmra.mxu2 %v9358_v9  ;;  %v4353_v13 = vand.u32 4294901760, %v4352_v55  ;;  %v9421_v32 = vld [vmem:[#allocation17_spill] sm:$0xff]  ;;  %v9422_v44 = vld [vmem:[#allocation16_spill] sm:$0xff] }
 0x3dd   : > { %4208 = vmatpush.msrb.mxu0 %v8233_v24  ;;  %4553 = vmatpush.msrb.mxu3 %v8233_v24 }
 0x3de   : > { %v3388_v34 = vpop.f32.mrf.mxu3  ;;  %4354 = vmatpush.msrb.mxu1 %v4353_v13  ;;  %v9425_v13 = vld [vmem:[#allocation19_spill] sm:$0xff] }
 0x3df   : > { %v3179_v47 = vpop.f32.mrf.mxu1  ;;  %v3280_v27 = vpop.f32.mrf.mxu2 }
 0x3e0   : > { %v3180_v63 = vadd.f32 %v3179_v47, %v3071_v57 }
 0x3e1   : > { %v3430_v18 = vpop.f32.mrf.mxu0 }
 0x3e2   : > { %v3281_v31 = vadd.f32 %v3280_v27, %v3180_v63  ;;  %3942 = vmatmul.f32.gmra.mxu1 %v9422_v44  ;;  %v8236_v27 = vsub.f32 %v361_v21, %v8233_v24  ;;  %v3431_v63 = vadd.f32 %v3430_v18, %v8096_v40 }
 0x3e3   : > { %4144 = vmatmul.f32.gmra.mxu3 %v9402_v38 }
 0x3e4   : > { %3851 = vmatmul.f32.gmra.mxu0 %v9421_v32  ;;  %v8228_v42 = vadd.f32 %v3388_v34, %v3281_v31  ;;  %4064 = vmatmul.f32.gmra.mxu2 %v9402_v38  ;;  %v9424_v31 = vld [vmem:[#allocation21_spill] sm:$0xff]  ;;  %v9176_v21 = vand.u32 4294901760, %v8236_v27 }
 0x3e5   : > { %4456 = vmatpush.msrb.mxu2 %v8236_v27 }
 0x3e6   : > { %v3754_v55 = vpop.f32.mrf.mxu3 }
 0x3e7   : > { %v3510_v57 = vpop.f32.mrf.mxu1  ;;  %v3594_v47 = vpop.f32.mrf.mxu2 }
 0x3e8   : > { %v8240_v34 = vadd.f32 %v3754_v55, %v3594_v47  ;;  %v3511_v38 = vadd.f32 %v3510_v57, %v3431_v63  ;;  %v4358_v47 = vsub.f32 %v8236_v27, %v9176_v21  ;;  %v8254_v55 = vld [vmem:[%s6526_s10 + $0x20] sm:$0xff]  ;;  %v9428_v63 = vld [vmem:[#allocation23_spill] sm:$0xff] }
 0x3e9   : > { %v3434_v14 = vpop.f32.mrf.mxu0  ;;  %v9427_v57 = vld [vmem:[#allocation25_spill] sm:$0xff] }
 0x3ea   : > { %9423 = vst [vmem:[#allocation51_spill] sm:$0xff] %v8240_v34  ;;  %3948 = vmatmul.f32.gmra.mxu1 %v9425_v13  ;;  %v3435_v25 = vadd.f32 %v3434_v14, %v8103_v43  ;;  %v8257_v34 = vld [vmem:[%s6526_s10 + $0x60] sm:$0xff]  ;;  %v4359_v13 = vand.u32 4294901760, %v4358_v47  ;;  %v5506_v43 = vmul.f32 %v8254_v55, %v3511_v38 }
 0x3eb   : > { %4148 = vmatmul.f32.gmra.mxu3 %v9404_v52  ;;  %v8272_v38 = vld [vmem:[%s6526_s10 + $0xa0] sm:$0xff] }
 0x3ec   : > { %3856 = vmatmul.f32.gmra.mxu0 %v9424_v31  ;;  %4068 = vmatmul.f32.gmra.mxu2 %v9404_v52 }
 0x3ed   : > { %4360 = vmatpush.msrb.mxu1 %v4359_v13 }
 0x3ee   : > { %v3758_v32 = vpop.f32.mrf.mxu3 }
 0x3ef   : > { %v3514_v10 = vpop.f32.mrf.mxu1  ;;  %v3602_v18 = vpop.f32.mrf.mxu2 }
 0x3f0   : > { %v3515_v40 = vadd.f32 %v3514_v10, %v3435_v25  ;;  %v8259_v52 = vadd.f32 %v3758_v32, %v3602_v18  ;;  %v353_v10 = vld [vmem:[%s6520_s21 + $0xb0] sm:$0xff] }
 0x3f1   : > { %v3438_v31 = vpop.f32.mrf.mxu0  ;;  %v8269_v47 = vand.u32 4294901760, %v353_v10 }
 0x3f2   : > { %9426 = vst [vmem:[#allocation12_spill] sm:$0xff] %v8259_v52  ;;  %v5514_v14 = vmul.f32 %v8257_v34, %v3515_v40  ;;  %3954 = vmatmul.f32.gmra.mxu1 %v9428_v63  ;;  %v3439_v25 = vadd.f32 %v3438_v31, %v8114_v60  ;;  %v9430_v31 = vld [vmem:[#allocation29_spill] sm:$0xff] }
 0x3f3   : > { %4152 = vmatmul.f32.gmra.mxu3 %v9406_v30  ;;  %4210 = vmatpush.msrb.mxu0 %v8269_v47 }
 0x3f4   : > { %3861 = vmatmul.f32.gmra.mxu0 %v9427_v57  ;;  %v5662_v21 = vadd.f32 %v5514_v14, %v5506_v43  ;;  %4072 = vmatmul.f32.gmra.mxu2 %v9406_v30  ;;  %v8279_v43 = vsub.f32 %v353_v10, %v8269_v47  ;;  %v9431_v14 = vld [vmem:[#allocation27_spill] sm:$0xff]  ;;  %v8289_v10 = vld [vmem:[%s6526_s10 + $0xe0] sm:$0xff] }
 0x3f5   : > { %4555 = vmatpush.msrb.mxu3 %v8269_v47 }
 0x3f6   : > { %v3762_v57 = vpop.f32.mrf.mxu3  ;;  %4459 = vmatpush.msrb.mxu2 %v8279_v43 }
 0x3f7   : > { %v3518_v18 = vpop.f32.mrf.mxu1  ;;  %v3610_v52 = vpop.f32.mrf.mxu2 }
 0x3f8   : > { %v3519_v40 = vadd.f32 %v3518_v18, %v3439_v25  ;;  %v8276_v13 = vadd.f32 %v3762_v57, %v3610_v52 }
 0x3f9   : > { %v3442_v32 = vpop.f32.mrf.mxu0 }
 0x3fa   : > { %9429 = vst [vmem:[#allocation18_spill] sm:$0xff] %v8276_v13  ;;  %v5522_v60 = vmul.f32 %v8272_v38, %v3519_v40  ;;  %3960 = vmatmul.f32.gmra.mxu1 %v9431_v14  ;;  %v3443_v18 = vadd.f32 %v3442_v32, %v8129_v6 }
 0x3fb   : > { %4156 = vmatmul.f32.gmra.mxu3 %v9409_v41 }
 0x3fc   : > { %3866 = vmatmul.f32.gmra.mxu0 %v9430_v31  ;;  %v5663_v25 = vadd.f32 %v5662_v21, %v5522_v60  ;;  %4076 = vmatmul.f32.gmra.mxu2 %v9409_v41  ;;  %v9433_v21 = vld [vmem:[#allocation33_spill] sm:$0xff]  ;;  %v9434_v60 = vld [vmem:[#allocation31_spill] sm:$0xff] }
 0x3fe   : > { %v3766_v13 = vpop.f32.mrf.mxu3 }
 0x3ff   : > { %v3522_v57 = vpop.f32.mrf.mxu1  ;;  %v3618_v40 = vpop.f32.mrf.mxu2 }
 0x400   : > { %v3523_v30 = vadd.f32 %v3522_v57, %v3443_v18  ;;  %v8291_v31 = vadd.f32 %v3766_v13, %v3618_v40  ;;  %v8300_v57 = vld [vmem:[%s6526_s10 + $0x120] sm:$0xff] }
 0x401   : > { %v3446_v52 = vpop.f32.mrf.mxu0 }
 0x402   : > { %9432 = vst [vmem:[#allocation9_spill] sm:$0xff] %v8291_v31  ;;  %v5530_v14 = vmul.f32 %v8289_v10, %v3523_v30  ;;  %3966 = vmatmul.f32.gmra.mxu1 %v9434_v60  ;;  %v3447_v6 = vadd.f32 %v3446_v52, %v8135_v51  ;;  %v9180_v30 = vand.u32 4294901760, %v8279_v43  ;;  %v345_v31 = vld [vmem:[%s6520_s21 + $0x70] sm:$0xff] }
 0x403   : > { %4160 = vmatmul.f32.gmra.mxu3 %v9411_v2  ;;  %v8306_v60 = vand.u32 4294901760, %v345_v31 }
 0x404   : > { %3871 = vmatmul.f32.gmra.mxu0 %v9433_v21  ;;  %v5664_v41 = vadd.f32 %v5663_v25, %v5530_v14  ;;  %4080 = vmatmul.f32.gmra.mxu2 %v9411_v2  ;;  %v9436_v25 = vld [vmem:[#allocation37_spill] sm:$0xff]  ;;  %v9437_v2 = vld [vmem:[#allocation35_spill] sm:$0xff]  ;;  %v4364_v51 = vsub.f32 %v8279_v43, %v9180_v30 }
 0x405   : > { %v8315_v52 = vsub.f32 %v345_v31, %v8306_v60  ;;  %4212 = vmatpush.msrb.mxu0 %v8306_v60  ;;  %4557 = vmatpush.msrb.mxu3 %v8306_v60  ;;  %v8325_v30 = vld [vmem:[%s6526_s10 + $0x160] sm:$0xff] }
 0x406   : > { %v3770_v40 = vpop.f32.mrf.mxu3 }
 0x407   : > { %v3526_v18 = vpop.f32.mrf.mxu1  ;;  %v3626_v13 = vpop.f32.mrf.mxu2  ;;  %4462 = vmatpush.msrb.mxu2 %v8315_v52 }
 0x408   : > { %v3527_v63 = vadd.f32 %v3526_v18, %v3447_v6  ;;  %v8304_v21 = vadd.f32 %v3770_v40, %v3626_v13  ;;  %v4369_v18 = vand.u32 4294901760, %v8315_v52 }
 0x409   : > { %v3450_v32 = vpop.f32.mrf.mxu0 }
 0x40a   : > { %9435 = vst [vmem:[#allocation55_spill] sm:$0xff] %v8304_v21  ;;  %v5538_v14 = vmul.f32 %v8300_v57, %v3527_v63  ;;  %3972 = vmatmul.f32.gmra.mxu1 %v9437_v2  ;;  %v4365_v63 = vand.u32 4294901760, %v4364_v51  ;;  %v3451_v13 = vadd.f32 %v3450_v32, %v8141_v28  ;;  %v9439_v28 = vld [vmem:[#allocation41_spill] sm:$0xff]  ;;  %v9440_v32 = vld [vmem:[#allocation39_spill] sm:$0xff] }
 0x40b   : > { %4164 = vmatmul.f32.gmra.mxu3 %v9413_v48 }
 0x40c   : > { %3876 = vmatmul.f32.gmra.mxu0 %v9436_v25  ;;  %v5665_v6 = vadd.f32 %v5664_v41, %v5538_v14  ;;  %4084 = vmatmul.f32.gmra.mxu2 %v9413_v48  ;;  %v4370_v25 = vsub.f32 %v8315_v52, %v4369_v18  ;;  %v337_v52 = vld [vmem:[%s6520_s21 + $0x30] sm:$0xff] }
 0x40d   : > { %4366 = vmatpush.msrb.mxu1 %v4365_v63 }
 0x40e   : > { %v3774_v51 = vpop.f32.mrf.mxu3  ;;  %v4371_v48 = vand.u32 4294901760, %v4370_v25  ;;  %v8340_v25 = vld [vmem:[%s6526_s10 + $0x1a0] sm:$0xff] }
 0x40f   : > { %v3530_v31 = vpop.f32.mrf.mxu1  ;;  %v3634_v14 = vpop.f32.mrf.mxu2 }
 0x410   : > { %v3531_v41 = vadd.f32 %v3530_v31, %v3451_v13  ;;  %v8328_v21 = vadd.f32 %v3774_v51, %v3634_v14  ;;  %4372 = vmatpush.msrb.mxu1 %v4371_v48  ;;  %v8337_v31 = vand.u32 4294901760, %v337_v52  ;;  %v9441_v48 = vand.u32 4294901760, %v8161_v0 }
 0x411   : > { %v3454_v40 = vpop.f32.mrf.mxu0  ;;  %v9445_v0 = vand.u32 4294901760, %v8211_v50 }
 0x412   : > { %9438 = vst [vmem:[#allocation56_spill] sm:$0xff] %v8328_v21  ;;  %v5546_v2 = vmul.f32 %v8325_v30, %v3531_v41  ;;  %3978 = vmatmul.f32.gmra.mxu1 %v9440_v32  ;;  %v3455_v13 = vadd.f32 %v3454_v40, %v8147_v49  ;;  %v4374_v32 = vsub.f32 %v337_v52, %v8337_v31  ;;  %v9443_v40 = vld [vmem:[#allocation43_spill] sm:$0xff] }
 0x413   : > { %4168 = vmatmul.f32.gmra.mxu3 %v9415_v15  ;;  %4214 = vmatpush.msrb.mxu0 %v8337_v31 }
 0x414   : > { %3881 = vmatmul.f32.gmra.mxu0 %v9439_v28  ;;  %v5666_v63 = vadd.f32 %v5665_v6, %v5546_v2  ;;  %4088 = vmatmul.f32.gmra.mxu2 %v9415_v15  ;;  %v9442_v6 = vld [vmem:[#allocation45_spill] sm:$0xff] }
 0x415   : > { %4559 = vmatpush.msrb.mxu3 %v8337_v31  ;;  %4657 = vmatpush.msra.mxu0 %v9441_v48  ;;  %v9446_v48 = vand.u32 4294901760, %v8236_v27  ;;  %v386_v27 = vld [vmem:[%s6520_s21 + $0x1b8] sm:$0xff] }
 0x416   : > { %v3778_v28 = vpop.f32.mrf.mxu3  ;;  %4465 = vmatpush.msrb.mxu2 %v4374_v32 }
 0x417   : > { %v3534_v51 = vpop.f32.mrf.mxu1  ;;  %v3642_v21 = vpop.f32.mrf.mxu2 }
 0x418   : > { %v3535_v41 = vadd.f32 %v3534_v51, %v3455_v13  ;;  %v8345_v2 = vadd.f32 %v3778_v28, %v3642_v21  ;;  %v9444_v13 = vand.u32 4294901760, %v8186_v4  ;;  %v4375_v51 = vand.u32 4294901760, %v4374_v32 }
 0x419   : > { %v3458_v14 = vpop.f32.mrf.mxu0 }
 0x41a   : > { %v5554_v49 = vmul.f32 %v8340_v25, %v3535_v41  ;;  %3984 = vmatmul.f32.gmra.mxu1 %v9443_v40  ;;  %4661 = vmatpush.msra.mxu0 %v9444_v13  ;;  %v4376_v21 = vsub.f32 %v4374_v32, %v4375_v51  ;;  %v3459_v50 = vadd.f32 %v3458_v14, %v8153_v20 }
 0x41b   : > { %4172 = vmatmul.f32.gmra.mxu3 %v9395_v8 }
 0x41c   : > { %3886 = vmatmul.f32.gmra.mxu0 %v9442_v6  ;;  %v8354_v52 = vadd.f32 %v5666_v63, %v5554_v49  ;;  %4092 = vmatmul.f32.gmra.mxu2 %v9395_v8  ;;  %v4377_v13 = vand.u32 4294901760, %v4376_v21  ;;  %v9447_v49 = vand.u32 4294901760, %v8279_v43  ;;  %v9448_v8 = vld [vmem:[#allocation47_spill] sm:$0xff] }
 0x41d   : > { %4665 = vmatpush.msra.mxu0 %v9445_v0 }
 0x41e   : > { %v3782_v4 = vpop.f32.mrf.mxu3  ;;  %4378 = vmatpush.msrb.mxu1 %v4377_v13 }
 0x41f   : > { %v3538_v41 = vpop.f32.mrf.mxu1  ;;  %4669 = vmatpush.msra.mxu0 %v9446_v48  ;;  %v3650_v6 = vpop.f32.mrf.mxu2 }
 0x420   : > { %v8362_v63 = vadd.f32 %v3782_v4, %v3650_v6  ;;  %4749 = vmatpush.msra.mxu1 %v8158_v19  ;;  %v3539_v43 = vadd.f32 %v3538_v41, %v3459_v50  ;;  %v8374_v6 = vand.u32 4294901760, %v386_v27 }
 0x421   : > { %v3462_v28 = vpop.f32.mrf.mxu0  ;;  %4673 = vmatpush.msra.mxu0 %v9447_v49 }
 0x422   : > { %3990 = vmatmul.f32.gmra.mxu1 %v9448_v8  ;;  %v3463_v32 = vadd.f32 %v3462_v28, %v8168_v3  ;;  %4829 = vmatpush.msra.mxu2 %v8374_v6  ;;  %v8379_v19 = vsub.f32 %v386_v27, %v8374_v6  ;;  %v5562_v3 = vmul.f32 %v8254_v55, %v3539_v43 }
 0x423   : > { %4677 = vmatpush.msra.mxu0 %v4369_v18  ;;  %4176 = vmatmul.f32.gmra.mxu3 %v6911_v5 }
 0x424   : > { %3891 = vmatmul.f32.gmra.mxu0 %v6921_v59  ;;  %4096 = vmatmul.f32.gmra.mxu2 %v6911_v5  ;;  %v9185_v28 = vand.u32 4294901760, %v8379_v19 }
 0x425   : > { %4681 = vmatpush.msra.mxu0 %v4375_v51  ;;  %4751 = vmatpush.msra.mxu1 %v8183_v56 }
 0x426   : > { %v3786_v20 = vpop.f32.mrf.mxu3 }
 0x427   : > { %v3542_v21 = vpop.f32.mrf.mxu1  ;;  %v3658_v48 = vpop.f32.mrf.mxu2  ;;  %4753 = vmatpush.msra.mxu1 %v8208_v61 }
 0x428   : > { %v3543_v18 = vadd.f32 %v3542_v21, %v3463_v32  ;;  %v8381_v14 = vadd.f32 %v3786_v20, %v3658_v48 }
 0x429   : > { %v3466_v0 = vpop.f32.mrf.mxu0  ;;  %4755 = vmatpush.msra.mxu1 %v8233_v24 }
 0x42a   : > { %v5570_v51 = vmul.f32 %v8257_v34, %v3543_v18  ;;  %3996 = vmatmul.f32.gmra.mxu1 %v6930_v36  ;;  %v3467_v61 = vadd.f32 %v3466_v0, %v8178_v11  ;;  %v4967_v34 = vsub.f32 %v8379_v19, %v9185_v28  ;;  %v8490_v28 = vld [vmem:[%s6526_s10 + $0x28] sm:$0xff] }
 0x42b   : > { %4180 = vmatmul.f32.gmra.mxu3 %v6932_v29  ;;  %4757 = vmatpush.msra.mxu1 %v8269_v47 }
 0x42c   : > { %3896 = vmatmul.f32.gmra.mxu0 %v6944_v54  ;;  %v5758_v56 = vadd.f32 %v5570_v51, %v5562_v3  ;;  %4100 = vmatmul.f32.gmra.mxu2 %v6932_v29  ;;  %v4968_v49 = vand.u32 4294901760, %v4967_v34 }
 0x42d   : > { %4759 = vmatpush.msra.mxu1 %v8306_v60 }
 0x42e   : > { %v3790_v13 = vpop.f32.mrf.mxu3  ;;  %4969 = vmatpush.msra.mxu3 %v4968_v49 }
 0x42f   : > { %v3546_v41 = vpop.f32.mrf.mxu1  ;;  %v3666_v4 = vpop.f32.mrf.mxu2  ;;  %4761 = vmatpush.msra.mxu1 %v8337_v31 }
 0x430   : > { %v3547_v24 = vadd.f32 %v3546_v41, %v3467_v61  ;;  %v8398_v50 = vadd.f32 %v3790_v13, %v3666_v4  ;;  %v378_v61 = vld [vmem:[%s6520_s21 + $0x178] sm:$0xff] }
 0x431   : > { %v3470_v55 = vpop.f32.mrf.mxu0 }
 0x432   : > { %v5578_v47 = vmul.f32 %v8272_v38, %v3547_v24  ;;  %4002 = vmatmul.f32.gmra.mxu1 %v6954_v37  ;;  %v3471_v60 = vadd.f32 %v3470_v55, %v8194_v45 }
 0x433   : > { %4184 = vmatmul.f32.gmra.mxu3 %v6956_v1 }
 0x434   : > { %3901 = vmatmul.f32.gmra.mxu0 %v6971_v23  ;;  %v5759_v11 = vadd.f32 %v5758_v56, %v5578_v47  ;;  %4104 = vmatmul.f32.gmra.mxu2 %v6956_v1 }
 0x436   : > { %v3794_v31 = vpop.f32.mrf.mxu3 }
 0x437   : > { %v3550_v32 = vpop.f32.mrf.mxu1  ;;  %v3674_v0 = vpop.f32.mrf.mxu2 }
 0x438   : > { %v3551_v43 = vadd.f32 %v3550_v32, %v3471_v60  ;;  %v8407_v21 = vadd.f32 %v3794_v31, %v3674_v0 }
 0x439   : > { %v3474_v27 = vpop.f32.mrf.mxu0 }
 0x43a   : > { %v5586_v38 = vmul.f32 %v8289_v10, %v3551_v43  ;;  %4008 = vmatmul.f32.gmra.mxu1 %v9266_v58  ;;  %v3475_v45 = vadd.f32 %v3474_v27, %v8203_v16  ;;  %v8418_v10 = vand.u32 4294901760, %v378_v61  ;;  %v370_v27 = vld [vmem:[%s6520_s21 + $0x138] sm:$0xff] }
 0x43b   : > { %4188 = vmatmul.f32.gmra.mxu3 %v6985_v39  ;;  %v8439_v0 = vand.u32 4294901760, %v370_v27 }
 0x43c   : > { %3906 = vmatmul.f32.gmra.mxu0 %v6994_v33  ;;  %v5760_v18 = vadd.f32 %v5759_v11, %v5586_v38  ;;  %4108 = vmatmul.f32.gmra.mxu2 %v6985_v39  ;;  %v8425_v16 = vsub.f32 %v378_v61, %v8418_v10 }
 0x43d   : > { %4831 = vmatpush.msra.mxu2 %v8418_v10 }
 0x43e   : > { %v3798_v56 = vpop.f32.mrf.mxu3  ;;  %v9184_v24 = vand.u32 4294901760, %v8425_v16 }
 0x43f   : > { %v3554_v20 = vpop.f32.mrf.mxu1  ;;  %v3682_v51 = vpop.f32.mrf.mxu2  ;;  %4833 = vmatpush.msra.mxu2 %v8439_v0 }
 0x440   : > { %v3555_v3 = vadd.f32 %v3554_v20, %v3475_v45  ;;  %v8416_v34 = vadd.f32 %v3798_v56, %v3682_v51  ;;  %v4973_v49 = vsub.f32 %v8425_v16, %v9184_v24  ;;  %v9458_v24 = vld [vmem:[#allocation20_spill] sm:$0xff] }
 0x441   : > { %v3478_v48 = vpop.f32.mrf.mxu0 }
 0x442   : > { %v5594_v55 = vmul.f32 %v8300_v57, %v3555_v3  ;;  %4014 = vmatmul.f32.gmra.mxu1 %v9267_v46  ;;  %v3479_v57 = vadd.f32 %v3478_v48, %v8218_v53  ;;  %v4974_v43 = vand.u32 4294901760, %v4973_v49  ;;  %v8446_v53 = vsub.f32 %v370_v27, %v8439_v0 }
 0x443   : > { %4563 = vmatmul.f32.vlgmr.msrb.gmra.mxu3 %v9420_v17 }
 0x444   : > { %4220 = vmatmul.f32.vlgmr.msrb.gmra.mxu0 %v9268_v62  ;;  %v5761_v41 = vadd.f32 %v5760_v18, %v5594_v55  ;;  %4468 = vmatmul.f32.vlgmr.msrb.gmra.mxu2 %v9418_v22  ;;  %v9183_v18 = vand.u32 4294901760, %v8446_v53 }
 0x445   : > { %5074 = vmatpush.msrb.mxu0 %v8379_v19  ;;  %4975 = vmatpush.msra.mxu3 %v4974_v43 }
 0x446   : > { %v3802_v60 = vpop.f32.mrf.mxu3  ;;  %v4979_v20 = vsub.f32 %v8446_v53, %v9183_v18  ;;  %v9457_v18 = vld [vmem:[#allocation30_spill] sm:$0xff] }
 0x447   : > { %5077 = vmatpush.msrb.mxu0 %v8425_v16  ;;  %v3558_v13 = vpop.f32.mrf.mxu1  ;;  %v3690_v11 = vpop.f32.mrf.mxu2 }
 0x448   : > { %v3559_v47 = vadd.f32 %v3558_v13, %v3479_v57  ;;  %v8437_v32 = vadd.f32 %v3802_v60, %v3690_v11  ;;  %v4980_v55 = vand.u32 4294901760, %v4979_v20  ;;  %v9449_v57 = vld [vmem:[#allocation19_spill] sm:$0xff]  ;;  %v9453_v20 = vld [vmem:[#allocation13_spill] sm:$0xff] }
 0x449   : > { %v3482_v4 = vpop.f32.mrf.mxu0  ;;  %5080 = vmatpush.msrb.mxu0 %v8446_v53  ;;  %v9451_v13 = vld [vmem:[#allocation51_spill] sm:$0xff] }
 0x44a   : > { %v5602_v31 = vmul.f32 %v8325_v30, %v3559_v47  ;;  %4380 = vmatmul.f32.vlgmr.msrb.gmra.mxu1 %v9270_v7  ;;  %v3483_v30 = vadd.f32 %v3482_v4, %v8228_v42  ;;  %4981 = vmatpush.msra.mxu3 %v4980_v55  ;;  %v9450_v4 = vld [vmem:[#allocation17_spill] sm:$0xff]  ;;  %v9456_v55 = vld [vmem:[#allocation12_spill] sm:$0xff] }
 0x44b   : > { %4569 = vmatmul.f32.gmra.mxu3 %v9422_v44  ;;  %5174 = vmatpush.msrb.mxu1 %v8374_v6 }
 0x44c   : > { %4228 = vmatmul.f32.gmra.mxu0 %v9269_v12  ;;  %v5762_v38 = vadd.f32 %v5761_v41, %v5602_v31  ;;  %4473 = vmatmul.f32.gmra.mxu2 %v9419_v35  ;;  %v362_v31 = vld [vmem:[%s6520_s21 + $0xf8] sm:$0xff] }
 0x44d   : > { %5176 = vmatpush.msrb.mxu1 %v8418_v10  ;;  %v354_v35 = vld [vmem:[%s6520_s21 + $0xb8] sm:$0xff] }
 0x44e   : > { %v3806_v56 = vpop.f32.mrf.mxu3 }
 0x44f   : > { %v3562_v45 = vpop.f32.mrf.mxu1  ;;  %v3698_v51 = vpop.f32.mrf.mxu2  ;;  %5178 = vmatpush.msrb.mxu1 %v8439_v0 }
 0x450   : > { %v3563_v3 = vadd.f32 %v3562_v45, %v3483_v30  ;;  %v8459_v61 = vadd.f32 %v3806_v56, %v3698_v51  ;;  %v9452_v45 = vld [vmem:[#allocation26_spill] sm:$0xff]  ;;  %v9455_v51 = vld [vmem:[#allocation21_spill] sm:$0xff] }
 0x451   : > { %v3842_v48 = vpop.f32.mrf.mxu0 }
 0x452   : > { %v5610_v41 = vmul.f32 %v8340_v25, %v3563_v3  ;;  %4384 = vmatmul.f32.gmra.mxu1 %v9358_v9  ;;  %v3843_v49 = vadd.f32 %v3842_v48, %v9451_v13  ;;  %v8470_v25 = vand.u32 4294901760, %v362_v31  ;;  %v9454_v3 = vld [vmem:[#allocation23_spill] sm:$0xff] }
 0x453   : > { %4575 = vmatmul.f32.gmra.mxu3 %v9449_v57  ;;  %v9460_v57 = vld [vmem:[#allocation25_spill] sm:$0xff] }
 0x454   : > { %4236 = vmatmul.f32.gmra.mxu0 %v9403_v26  ;;  %v8464_v42 = vadd.f32 %v5762_v38, %v5610_v41  ;;  %4478 = vmatmul.f32.gmra.mxu2 %v9450_v4  ;;  %v8476_v38 = vsub.f32 %v362_v31, %v8470_v25 }
 0x455   : > { %4835 = vmatpush.msra.mxu2 %v8470_v25  ;;  %5180 = vmatpush.msrb.mxu1 %v8470_v25 }
 0x456   : > { %v4137_v43 = vpop.f32.mrf.mxu3  ;;  %v9186_v56 = vand.u32 4294901760, %v8476_v38  ;;  %5083 = vmatpush.msrb.mxu0 %v8476_v38 }
 0x457   : > { %v3937_v11 = vpop.f32.mrf.mxu1  ;;  %v4057_v27 = vpop.f32.mrf.mxu2 }
 0x458   : > { %v3938_v60 = vadd.f32 %v3937_v11, %v3843_v49  ;;  %v4985_v11 = vsub.f32 %v8476_v38, %v9186_v56 }
 0x459   : > { %v3847_v47 = vpop.f32.mrf.mxu0 }
 0x45a   : > { %v4058_v30 = vadd.f32 %v4057_v27, %v3938_v60  ;;  %4388 = vmatmul.f32.gmra.mxu1 %v9453_v20  ;;  %v3848_v41 = vadd.f32 %v3847_v47, %v9456_v55  ;;  %v4986_v31 = vand.u32 4294901760, %v4985_v11  ;;  %v9459_v55 = vld [vmem:[#allocation27_spill] sm:$0xff] }
 0x45b   : > { %4581 = vmatmul.f32.gmra.mxu3 %v9454_v3  ;;  %v8493_v3 = vld [vmem:[%s6526_s10 + $0x68] sm:$0xff] }
 0x45c   : > { %4244 = vmatmul.f32.gmra.mxu0 %v9452_v45  ;;  %v4138_v48 = vadd.f32 %v4137_v43, %v4058_v30  ;;  %4483 = vmatmul.f32.gmra.mxu2 %v9455_v51  ;;  %v8525_v45 = vld [vmem:[%s6526_s10 + $0xe8] sm:$0xff] }
 0x45d   : > { %4987 = vmatpush.msra.mxu3 %v4986_v31  ;;  %v8501_v31 = vand.u32 4294901760, %v354_v35 }
 0x45e   : > { %v4141_v43 = vpop.f32.mrf.mxu3 }
 0x45f   : > { %v3943_v49 = vpop.f32.mrf.mxu1  ;;  %v4061_v27 = vpop.f32.mrf.mxu2  ;;  %4837 = vmatpush.msra.mxu2 %v8501_v31  ;;  %5182 = vmatpush.msrb.mxu1 %v8501_v31 }
 0x460   : > { %v3944_v60 = vadd.f32 %v3943_v49, %v3848_v41  ;;  %v5507_v41 = vmul.f32 %v8490_v28, %v4138_v48  ;;  %v9461_v49 = vld [vmem:[#allocation18_spill] sm:$0xff]  ;;  %v8510_v48 = vsub.f32 %v354_v35, %v8501_v31 }
 0x461   : > { %v3852_v13 = vpop.f32.mrf.mxu0 }
 0x462   : > { %v4062_v30 = vadd.f32 %v4061_v27, %v3944_v60  ;;  %4392 = vmatmul.f32.gmra.mxu1 %v9458_v24  ;;  %v3853_v11 = vadd.f32 %v3852_v13, %v9461_v49  ;;  %v9464_v13 = vld [vmem:[#allocation31_spill] sm:$0xff]  ;;  %5086 = vmatpush.msrb.mxu0 %v8510_v48  ;;  %v9472_v24 = vld [vmem:[#allocation42_spill] sm:$0xff] }
 0x463   : > { %4587 = vmatmul.f32.gmra.mxu3 %v9459_v55  ;;  %v9463_v55 = vld [vmem:[#allocation24_spill] sm:$0xff] }
 0x464   : > { %4252 = vmatmul.f32.gmra.mxu0 %v9457_v18  ;;  %v4142_v47 = vadd.f32 %v4141_v43, %v4062_v30  ;;  %4488 = vmatmul.f32.gmra.mxu2 %v9460_v57  ;;  %v9462_v30 = vld [vmem:[#allocation34_spill] sm:$0xff] }
 0x465   : > { %v8506_v57 = vld [vmem:[%s6526_s10 + $0xa8] sm:$0xff] }
 0x466   : > { %v5515_v60 = vmul.f32 %v8493_v3, %v4142_v47  ;;  %v4145_v17 = vpop.f32.mrf.mxu3  ;;  %v9465_v47 = vld [vmem:[#allocation29_spill] sm:$0xff]  ;;  %v9467_v18 = vld [vmem:[#allocation38_spill] sm:$0xff] }
 0x467   : > { %v3949_v56 = vpop.f32.mrf.mxu1  ;;  %v4065_v4 = vpop.f32.mrf.mxu2 }
 0x468   : > { %v5674_v51 = vadd.f32 %v5515_v60, %v5507_v41  ;;  %v3950_v44 = vadd.f32 %v3949_v56, %v3853_v11 }
 0x469   : > { %v3857_v27 = vpop.f32.mrf.mxu0 }
 0x46a   : > { %v4066_v43 = vadd.f32 %v4065_v4, %v3950_v44  ;;  %4396 = vmatmul.f32.gmra.mxu1 %v9463_v55  ;;  %v9191_v44 = vand.u32 4294901760, %v8510_v48  ;;  %v9466_v4 = vld [vmem:[#allocation9_spill] sm:$0xff]  ;;  %v9468_v55 = vld [vmem:[#allocation28_spill] sm:$0xff] }
 0x46b   : > { %4593 = vmatmul.f32.gmra.mxu3 %v9464_v13  ;;  %v3858_v41 = vadd.f32 %v3857_v27, %v9466_v4  ;;  %v9470_v4 = vld [vmem:[#allocation33_spill] sm:$0xff] }
 0x46c   : > { %4260 = vmatmul.f32.gmra.mxu0 %v9462_v30  ;;  %v4146_v56 = vadd.f32 %v4145_v17, %v4066_v43  ;;  %4493 = vmatmul.f32.gmra.mxu2 %v9465_v47  ;;  %v4991_v35 = vsub.f32 %v8510_v48, %v9191_v44  ;;  %v9471_v44 = vld [vmem:[#allocation55_spill] sm:$0xff] }
 0x46e   : > { %v5523_v49 = vmul.f32 %v8506_v57, %v4146_v56  ;;  %v4149_v22 = vpop.f32.mrf.mxu3  ;;  %v4992_v47 = vand.u32 4294901760, %v4991_v35  ;;  %v9469_v56 = vld [vmem:[#allocation35_spill] sm:$0xff] }
 0x46f   : > { %v3955_v60 = vpop.f32.mrf.mxu1  ;;  %v4069_v13 = vpop.f32.mrf.mxu2 }
 0x470   : > { %v5675_v17 = vadd.f32 %v5674_v51, %v5523_v49  ;;  %v3956_v43 = vadd.f32 %v3955_v60, %v3858_v41  ;;  %4993 = vmatpush.msra.mxu3 %v4992_v47  ;;  %v9473_v47 = vld [vmem:[#allocation32_spill] sm:$0xff] }
 0x471   : > { %v3862_v11 = vpop.f32.mrf.mxu0 }
 0x472   : > { %v4070_v30 = vadd.f32 %v4069_v13, %v3956_v43  ;;  %4400 = vmatmul.f32.gmra.mxu1 %v9468_v55  ;;  %v3863_v51 = vadd.f32 %v3862_v11, %v9471_v44  ;;  %v9475_v44 = vld [vmem:[#allocation37_spill] sm:$0xff]  ;;  %v9476_v11 = vld [vmem:[#allocation56_spill] sm:$0xff] }
 0x473   : > { %4599 = vmatmul.f32.gmra.mxu3 %v9469_v56  ;;  %v9474_v56 = vld [vmem:[#allocation39_spill] sm:$0xff] }
 0x474   : > { %4268 = vmatmul.f32.gmra.mxu0 %v9467_v18  ;;  %v4150_v27 = vadd.f32 %v4149_v22, %v4070_v30  ;;  %4498 = vmatmul.f32.gmra.mxu2 %v9470_v4  ;;  %v8534_v22 = vld [vmem:[%s6526_s10 + $0x128] sm:$0xff] }
 0x476   : > { %v5531_v41 = vmul.f32 %v8525_v45, %v4150_v27  ;;  %v4153_v18 = vpop.f32.mrf.mxu3 }
 0x477   : > { %v3961_v60 = vpop.f32.mrf.mxu1  ;;  %v4073_v43 = vpop.f32.mrf.mxu2 }
 0x478   : > { %v5676_v13 = vadd.f32 %v5675_v17, %v5531_v41  ;;  %v3962_v35 = vadd.f32 %v3961_v60, %v3863_v51 }
 0x479   : > { %v3867_v49 = vpop.f32.mrf.mxu0 }
 0x47a   : > { %v4074_v55 = vadd.f32 %v4073_v43, %v3962_v35  ;;  %4404 = vmatmul.f32.gmra.mxu1 %v9473_v47  ;;  %v3868_v27 = vadd.f32 %v3867_v49, %v9476_v11 }
 0x47b   : > { %4605 = vmatmul.f32.gmra.mxu3 %v9474_v56  ;;  %v8546_v56 = vld [vmem:[%s6526_s10 + $0x168] sm:$0xff] }
 0x47c   : > { %4276 = vmatmul.f32.gmra.mxu0 %v9472_v24  ;;  %v4154_v30 = vadd.f32 %v4153_v18, %v4074_v55  ;;  %4503 = vmatmul.f32.gmra.mxu2 %v9475_v44  ;;  %v346_v24 = vld [vmem:[%s6520_s21 + $0x78] sm:$0xff]  ;;  %v9477_v18 = vld [vmem:[#allocation46_spill] sm:$0xff]  ;;  %v5668_v44 = vrot.slane %v8354_v52, 4 }
 0x47d   : > { %v8541_v47 = vand.u32 4294901760, %v346_v24  ;;  %v9478_v55 = vld [vmem:[#allocation36_spill] sm:$0xff] }
 0x47e   : > { %v5539_v17 = vmul.f32 %v8534_v22, %v4154_v30  ;;  %v4157_v4 = vpop.f32.mrf.mxu3  ;;  %v9479_v30 = vld [vmem:[#allocation41_spill] sm:$0xff] }
 0x47f   : > { %v3967_v41 = vpop.f32.mrf.mxu1  ;;  %v4077_v43 = vpop.f32.mrf.mxu2  ;;  %4839 = vmatpush.msra.mxu2 %v8541_v47  ;;  %v8550_v49 = vsub.f32 %v346_v24, %v8541_v47  ;;  %5184 = vmatpush.msrb.mxu1 %v8541_v47 }
 0x480   : > { %v5677_v60 = vadd.f32 %v5676_v13, %v5539_v17  ;;  %v3968_v35 = vadd.f32 %v3967_v41, %v3868_v27 }
 0x481   : > { %v3872_v51 = vpop.f32.mrf.mxu0  ;;  %v9194_v11 = vand.u32 4294901760, %v8550_v49  ;;  %5089 = vmatpush.msrb.mxu0 %v8550_v49 }
 0x482   : > { %v4078_v26 = vadd.f32 %v4077_v43, %v3968_v35  ;;  %4408 = vmatmul.f32.gmra.mxu1 %v9478_v55  ;;  %v3873_v27 = vadd.f32 %v3872_v51, %v8345_v2  ;;  %v9480_v51 = vld [vmem:[#allocation48_spill] sm:$0xff] }
 0x483   : > { %4611 = vmatmul.f32.gmra.mxu3 %v9443_v40  ;;  %v4997_v35 = vsub.f32 %v8550_v49, %v9194_v11  ;;  %v9483_v11 = vand.u32 4294901760, %v8425_v16  ;;  %v9486_v16 = vld [vmem:[#allocation44_spill] sm:$0xff] }
 0x484   : > { %4284 = vmatmul.f32.gmra.mxu0 %v9477_v18  ;;  %v4158_v13 = vadd.f32 %v4157_v4, %v4078_v26  ;;  %4508 = vmatmul.f32.gmra.mxu2 %v9479_v30  ;;  %v338_v30 = vld [vmem:[%s6520_s21 + $0x38] sm:$0xff] }
 0x485   : > { %v4998_v18 = vand.u32 4294901760, %v4997_v35  ;;  %v8564_v55 = vand.u32 4294901760, %v338_v30  ;;  %v9482_v35 = vld [vmem:[#allocation45_spill] sm:$0xff] }
 0x486   : > { %v5547_v17 = vmul.f32 %v8546_v56, %v4158_v13  ;;  %v4161_v40 = vpop.f32.mrf.mxu3  ;;  %v8569_v13 = vld [vmem:[%s6526_s10 + $0x1a8] sm:$0xff] }
 0x487   : > { %v3973_v24 = vpop.f32.mrf.mxu1  ;;  %v4081_v43 = vpop.f32.mrf.mxu2  ;;  %4999 = vmatpush.msra.mxu3 %v4998_v18  ;;  %4841 = vmatpush.msra.mxu2 %v8564_v55 }
 0x488   : > { %v5678_v26 = vadd.f32 %v5677_v60, %v5547_v17  ;;  %v3974_v4 = vadd.f32 %v3973_v24, %v3873_v27  ;;  %v5001_v60 = vsub.f32 %v338_v30, %v8564_v55  ;;  %v9481_v17 = vand.u32 4294901760, %v8379_v19  ;;  %5186 = vmatpush.msrb.mxu1 %v8564_v55 }
 0x489   : > { %v3877_v41 = vpop.f32.mrf.mxu0  ;;  %v5669_v24 = vadd.f32 %v5668_v44, %v8354_v52  ;;  %v9484_v44 = vand.u32 4294901760, %v8446_v53 }
 0x48a   : > { %v4082_v2 = vadd.f32 %v4081_v43, %v3974_v4  ;;  %4412 = vmatmul.f32.gmra.mxu1 %v9415_v15  ;;  %5284 = vmatpush.msrb.mxu2 %v9481_v17  ;;  %v5002_v4 = vand.u32 4294901760, %v5001_v60  ;;  %v3878_v43 = vadd.f32 %v3877_v41, %v8362_v63 }
 0x48b   : > { %4617 = vmatmul.f32.gmra.mxu3 %v9448_v8  ;;  %5092 = vmatpush.msrb.mxu0 %v5001_v60 }
 0x48c   : > { %4292 = vmatmul.f32.gmra.mxu0 %v9480_v51  ;;  %v4162_v27 = vadd.f32 %v4161_v40, %v4082_v2  ;;  %4513 = vmatmul.f32.gmra.mxu2 %v9482_v35  ;;  %v5003_v2 = vsub.f32 %v5001_v60, %v5002_v4  ;;  %v5670_v35 = vrot.slane %v5669_v24, 2 }
 0x48d   : > { %5288 = vmatpush.msrb.mxu2 %v9483_v11  ;;  %v9487_v11 = vand.u32 4294901760, %v8476_v38 }
 0x48e   : > { %v5555_v18 = vmul.f32 %v8569_v13, %v4162_v27  ;;  %v4165_v52 = vpop.f32.mrf.mxu3  ;;  %v5004_v51 = vand.u32 4294901760, %v5003_v2  ;;  %v9485_v27 = vld [vmem:[#allocation49_spill] sm:$0xff] }
 0x48f   : > { %v3979_v30 = vpop.f32.mrf.mxu1  ;;  %v4085_v8 = vpop.f32.mrf.mxu2  ;;  %5292 = vmatpush.msrb.mxu2 %v9484_v44 }
 0x490   : > { %v5679_v19 = vadd.f32 %v5678_v26, %v5555_v18  ;;  %v3980_v17 = vadd.f32 %v3979_v30, %v3878_v43  ;;  %5005 = vmatpush.msra.mxu3 %v5004_v51  ;;  %v5671_v43 = vadd.f32 %v5670_v35, %v5669_v24  ;;  %v9488_v18 = vand.u32 4294901760, %v8510_v48 }
 0x491   : > { %v3882_v40 = vpop.f32.mrf.mxu0  ;;  %5296 = vmatpush.msrb.mxu2 %v9487_v11  ;;  %v9489_v24 = vand.u32 4294901760, %v8550_v49 }
 0x492   : > { %v5680_v63 = vrot.slane %v5679_v19, 4  ;;  %v4086_v41 = vadd.f32 %v4085_v8, %v3980_v17  ;;  %4416 = vmatmul.f32.gmra.mxu1 %v9486_v16  ;;  %5376 = vmatpush.msrb.mxu3 %v8374_v6  ;;  %v3883_v8 = vadd.f32 %v3882_v40, %v8381_v14  ;;  %v5672_v35 = vrot.slane %v5671_v43, 1  ;;  %v9490_v14 = vld [vmem:[#allocation50_spill] sm:$0xff] }
 0x493   : > { %4623 = vmatmul.f32.gmra.mxu3 %v6930_v36  ;;  %5300 = vmatpush.msrb.mxu2 %v9488_v18 }
 0x494   : > { %4300 = vmatmul.f32.gmra.mxu0 %v9485_v27  ;;  %v5681_v60 = vadd.f32 %v5680_v63, %v5679_v19  ;;  %v4166_v26 = vadd.f32 %v4165_v52, %v4086_v41  ;;  %4518 = vmatmul.f32.gmra.mxu2 %v6921_v59  ;;  %v5673_v40 = vadd.f32 %v5672_v35, %v5671_v43 }
 0x495   : > { %5378 = vmatpush.msrb.mxu3 %v8418_v10  ;;  %5304 = vmatpush.msrb.mxu2 %v9489_v24 }
 0x496   : > { %v5682_v53 = vrot.slane %v5681_v60, 2  ;;  %v4169_v17 = vpop.f32.mrf.mxu3 }
 0x497   : > { %v3985_v51 = vpop.f32.mrf.mxu1  ;;  %v4089_v19 = vpop.f32.mrf.mxu2  ;;  %5380 = vmatpush.msrb.mxu3 %v8439_v0  ;;  %5308 = vmatpush.msrb.mxu2 %v5002_v4  ;;  %v5563_v0 = vmul.f32 %v8490_v28, %v4166_v26 }
 0x498   : > { %v5683_v38 = vadd.f32 %v5682_v53, %v5681_v60  ;;  %v3986_v2 = vadd.f32 %v3985_v51, %v3883_v8  ;;  %v9491_v8 = vld [vmem:[#allocation52_spill] sm:$0xff] }
 0x499   : > { %v3887_v30 = vpop.f32.mrf.mxu0  ;;  %5382 = vmatpush.msrb.mxu3 %v8470_v25 }
 0x49a   : > { %v5684_v6 = vrot.slane %v5683_v38, 1  ;;  %v4090_v52 = vadd.f32 %v4089_v19, %v3986_v2  ;;  %4420 = vmatmul.f32.gmra.mxu1 %v6911_v5  ;;  %v3888_v44 = vadd.f32 %v3887_v30, %v8398_v50  ;;  %v9492_v2 = vld [vmem:[#allocation54_spill] sm:$0xff] }
 0x49b   : > { %4629 = vmatmul.f32.gmra.mxu3 %v6954_v37 }
 0x49c   : > { %4308 = vmatmul.f32.gmra.mxu0 %v9490_v14  ;;  %v5685_v10 = vadd.f32 %v5684_v6, %v5683_v38  ;;  %v4170_v48 = vadd.f32 %v4169_v17, %v4090_v52  ;;  %4523 = vmatmul.f32.gmra.mxu2 %v6944_v54 }
 0x49d   : > { %5384 = vmatpush.msrb.mxu3 %v8501_v31 }
 0x49e   : > { %v5825_v49 = vrot.slane %v5685_v10, 6  ;;  %v5571_v63 = vmul.f32 %v8493_v3, %v4170_v48  ;;  %v4173_v53 = vpop.f32.mrf.mxu3 }
 0x49f   : > { %v3991_v11 = vpop.f32.mrf.mxu1  ;;  %5386 = vmatpush.msrb.mxu3 %v8541_v47  ;;  %v4093_v43 = vpop.f32.mrf.mxu2 }
 0x4a0   : > { %v8610_v25 = vsel %vm5834_vm1, %v5673_v40, %v5825_v49  ;;  %v5770_v4 = vadd.f32 %v5571_v63, %v5563_v0  ;;  %v3992_v60 = vadd.f32 %v3991_v11, %v3888_v44 }
 0x4a1   : > { %v3892_v41 = vpop.f32.mrf.mxu0  ;;  %5388 = vmatpush.msrb.mxu3 %v8564_v55 }
 0x4a2   : > { %v4094_v31 = vadd.f32 %v4093_v43, %v3992_v60  ;;  %4424 = vmatmul.f32.gmra.mxu1 %v6932_v29  ;;  %v3893_v50 = vadd.f32 %v3892_v41, %v8407_v21 }
 0x4a3   : > { %4635 = vmatmul.f32.gmra.mxu3 %v9266_v58 }
 0x4a4   : > { %4316 = vmatmul.f32.gmra.mxu0 %v9491_v8  ;;  %v4174_v28 = vadd.f32 %v4173_v53, %v4094_v31  ;;  %4528 = vmatmul.f32.gmra.mxu2 %v6971_v23 }
 0x4a6   : > { %v5579_v3 = vmul.f32 %v8506_v57, %v4174_v28  ;;  %v4177_v55 = vpop.f32.mrf.mxu3 }
 0x4a7   : > { %v3997_v26 = vpop.f32.mrf.mxu1  ;;  %v4097_v51 = vpop.f32.mrf.mxu2 }
 0x4a8   : > { %v5771_v18 = vadd.f32 %v5770_v4, %v5579_v3  ;;  %v3998_v30 = vadd.f32 %v3997_v26, %v3893_v50  ;;  %v5764_v3 = vrot.slane %v8464_v42, 4 }
 0x4a9   : > { %v3897_v47 = vpop.f32.mrf.mxu0 }
 0x4aa   : > { %v4098_v38 = vadd.f32 %v4097_v51, %v3998_v30  ;;  %4428 = vmatmul.f32.gmra.mxu1 %v6956_v1  ;;  %v3898_v21 = vadd.f32 %v3897_v47, %v8416_v34 }
 0x4ab   : > { %4641 = vmatmul.f32.gmra.mxu3 %v9267_v46 }
 0x4ac   : > { %4324 = vmatmul.f32.gmra.mxu0 %v9492_v2  ;;  %v4178_v19 = vadd.f32 %v4177_v55, %v4098_v38  ;;  %4533 = vmatmul.f32.gmra.mxu2 %v6994_v33 }
 0x4ae   : > { %v5587_v57 = vmul.f32 %v8525_v45, %v4178_v19  ;;  %v4181_v10 = vpop.f32.mrf.mxu3 }
 0x4af   : > { %v4003_v24 = vpop.f32.mrf.mxu1  ;;  %v4101_v52 = vpop.f32.mrf.mxu2 }
 0x4b0   : > { %v5772_v35 = vadd.f32 %v5771_v18, %v5587_v57  ;;  %v4004_v6 = vadd.f32 %v4003_v24, %v3898_v21  ;;  %v9494_v24 = vld [vmem:[#allocation20_spill] sm:$0xff] }
 0x4b1   : > { %v3902_v17 = vpop.f32.mrf.mxu0 }
 0x4b2   : > { %v4102_v48 = vadd.f32 %v4101_v52, %v4004_v6  ;;  %4432 = vmatmul.f32.gmra.mxu1 %v6985_v39  ;;  %v3903_v34 = vadd.f32 %v3902_v17, %v8437_v32 }
 0x4b3   : > { %5007 = vmatmul.f32.vlgmr.msra.gmra.mxu3 %v9270_v7 }
 0x4b4   : > { %4683 = vmatmul.f32.vlgmr.msra.gmra.mxu0 %v9270_v7  ;;  %v4182_v40 = vadd.f32 %v4181_v10, %v4102_v48  ;;  %4847 = vmatmul.f32.vlgmr.msra.gmra.mxu2 %v9268_v62 }
 0x4b6   : > { %v5595_v45 = vmul.f32 %v8534_v22, %v4182_v40  ;;  %v4185_v11 = vpop.f32.mrf.mxu3 }
 0x4b7   : > { %v4009_v0 = vpop.f32.mrf.mxu1  ;;  %v4105_v41 = vpop.f32.mrf.mxu2 }
 0x4b8   : > { %v5773_v44 = vadd.f32 %v5772_v35, %v5595_v45  ;;  %v4010_v63 = vadd.f32 %v4009_v0, %v3903_v34 }
 0x4b9   : > { %v3907_v49 = vpop.f32.mrf.mxu0 }
 0x4ba   : > { %v4106_v4 = vadd.f32 %v4105_v41, %v4010_v63  ;;  %4763 = vmatmul.f32.vlgmr.msra.gmra.mxu1 %v9270_v7  ;;  %v3908_v62 = vadd.f32 %v3907_v49, %v8459_v61  ;;  %v5765_v61 = vadd.f32 %v5764_v3, %v8464_v42  ;;  %v9495_v42 = vld [vmem:[#allocation26_spill] sm:$0xff]  ;;  %v9496_v41 = vld [vmem:[#allocation24_spill] sm:$0xff] }
 0x4bb   : > { %5011 = vmatmul.f32.gmra.mxu3 %v9358_v9 }
 0x4bc   : > { %4687 = vmatmul.f32.gmra.mxu0 %v9358_v9  ;;  %v4186_v60 = vadd.f32 %v4185_v11, %v4106_v4  ;;  %4855 = vmatmul.f32.gmra.mxu2 %v9269_v12  ;;  %v9493_v12 = vld [vmem:[#allocation22_spill] sm:$0xff]  ;;  %v5766_v21 = vrot.slane %v5765_v61, 2 }
 0x4be   : > { %v5603_v32 = vmul.f32 %v8546_v56, %v4186_v60  ;;  %v4189_v50 = vpop.f32.mrf.mxu3  ;;  %v9497_v60 = vld [vmem:[#allocation30_spill] sm:$0xff] }
 0x4bf   : > { %v4015_v22 = vpop.f32.mrf.mxu1  ;;  %v4109_v28 = vpop.f32.mrf.mxu2 }
 0x4c0   : > { %v5774_v53 = vadd.f32 %v5773_v44, %v5603_v32  ;;  %v4016_v31 = vadd.f32 %v4015_v22, %v3908_v62 }
 0x4c1   : > { %v4221_v43 = vpop.f32.mrf.mxu0 }
 0x4c2   : > { %v4110_v47 = vadd.f32 %v4109_v28, %v4016_v31  ;;  %4767 = vmatmul.f32.gmra.mxu1 %v9358_v9 }
 0x4c3   : > { %5015 = vmatmul.f32.gmra.mxu3 %v9453_v20 }
 0x4c4   : > { %4691 = vmatmul.f32.gmra.mxu0 %v9453_v20  ;;  %v4190_v26 = vadd.f32 %v4189_v50, %v4110_v47  ;;  %4863 = vmatmul.f32.gmra.mxu2 %v9493_v12  ;;  %v9498_v47 = vld [vmem:[#allocation28_spill] sm:$0xff]  ;;  %v9499_v12 = vld [vmem:[#allocation34_spill] sm:$0xff] }
 0x4c6   : > { %v5611_v56 = vmul.f32 %v8569_v13, %v4190_v26  ;;  %v4564_v19 = vpop.f32.mrf.mxu3  ;;  %v5767_v13 = vadd.f32 %v5766_v21, %v5765_v61  ;;  %v9501_v21 = vld [vmem:[#allocation38_spill] sm:$0xff] }
 0x4c7   : > { %v4381_v30 = vpop.f32.mrf.mxu1  ;;  %v4469_v38 = vpop.f32.mrf.mxu2 }
 0x4c8   : > { %v5775_v51 = vadd.f32 %v5774_v53, %v5611_v56  ;;  %v4382_v55 = vadd.f32 %v4381_v30, %v4221_v43  ;;  %v5768_v0 = vrot.slane %v5767_v13, 1 }
 0x4c9   : > { %v4229_v18 = vpop.f32.mrf.mxu0 }
 0x4ca   : > { %v5776_v57 = vrot.slane %v5775_v51, 4  ;;  %v4470_v17 = vadd.f32 %v4469_v38, %v4382_v55  ;;  %4771 = vmatmul.f32.gmra.mxu1 %v9453_v20  ;;  %v5769_v62 = vadd.f32 %v5768_v0, %v5767_v13  ;;  %v9500_v38 = vld [vmem:[#allocation32_spill] sm:$0xff] }
 0x4cb   : > { %5019 = vmatmul.f32.gmra.mxu3 %v9494_v24 }
 0x4cc   : > { %4695 = vmatmul.f32.gmra.mxu0 %v9494_v24  ;;  %v5777_v35 = vadd.f32 %v5776_v57, %v5775_v51  ;;  %v8646_v6 = vadd.f32 %v4564_v19, %v4470_v17  ;;  %4871 = vmatmul.f32.gmra.mxu2 %v9495_v42 }
 0x4ce   : > { %v5778_v52 = vrot.slane %v5777_v35, 2  ;;  %v4570_v49 = vpop.f32.mrf.mxu3 }
 0x4cf   : > { %v4385_v48 = vpop.f32.mrf.mxu1  ;;  %v4474_v45 = vpop.f32.mrf.mxu2 }
 0x4d0   : > { %v5779_v40 = vadd.f32 %v5778_v52, %v5777_v35  ;;  %v4386_v34 = vadd.f32 %v4385_v48, %v4229_v18 }
 0x4d1   : > { %v4237_v10 = vpop.f32.mrf.mxu0 }
 0x4d2   : > { %v5780_v44 = vrot.slane %v5779_v40, 1  ;;  %v4475_v63 = vadd.f32 %v4474_v45, %v4386_v34  ;;  %4775 = vmatmul.f32.gmra.mxu1 %v9494_v24 }
 0x4d3   : > { %5023 = vmatmul.f32.gmra.mxu3 %v9496_v41 }
 0x4d4   : > { %4699 = vmatmul.f32.gmra.mxu0 %v9496_v41  ;;  %v5781_v11 = vadd.f32 %v5780_v44, %v5779_v40  ;;  %v8652_v4 = vadd.f32 %v4570_v49, %v4475_v63  ;;  %4879 = vmatmul.f32.gmra.mxu2 %v9497_v60  ;;  %v9503_v40 = vld [vmem:[#allocation42_spill] sm:$0xff] }
 0x4d5   : > { %v9504_v60 = vld [vmem:[#allocation46_spill] sm:$0xff] }
 0x4d6   : > { %v5831_v32 = vrot.slane %v5781_v11, 6  ;;  %v4576_v50 = vpop.f32.mrf.mxu3 }
 0x4d7   : > { %v4389_v43 = vpop.f32.mrf.mxu1  ;;  %v4479_v28 = vpop.f32.mrf.mxu2 }
 0x4d8   : > { %v8657_v53 = vsel %vm5834_vm1, %v5769_v62, %v5831_v32  ;;  %v4390_v31 = vadd.f32 %v4389_v43, %v4237_v10  ;;  %v9502_v10 = vld [vmem:[#allocation36_spill] sm:$0xff] }
 0x4d9   : > { %v4245_v22 = vpop.f32.mrf.mxu0 }
 0x4da   : > { %v4480_v3 = vadd.f32 %v4479_v28, %v4390_v31  ;;  %4779 = vmatmul.f32.gmra.mxu1 %v9496_v41 }
 0x4db   : > { %5027 = vmatmul.f32.gmra.mxu3 %v9498_v47 }
 0x4dc   : > { %4703 = vmatmul.f32.gmra.mxu0 %v9498_v47  ;;  %v8661_v26 = vadd.f32 %v4576_v50, %v4480_v3  ;;  %4887 = vmatmul.f32.gmra.mxu2 %v9499_v12  ;;  %v9505_v3 = vld [vmem:[#allocation48_spill] sm:$0xff] }
 0x4de   : > { %v4582_v51 = vpop.f32.mrf.mxu3 }
 0x4df   : > { %v4393_v56 = vpop.f32.mrf.mxu1  ;;  %v4484_v30 = vpop.f32.mrf.mxu2 }
 0x4e0   : > { %v4394_v18 = vadd.f32 %v4393_v56, %v4245_v22 }
 0x4e1   : > { %v4253_v61 = vpop.f32.mrf.mxu0 }
 0x4e2   : > { %v4485_v55 = vadd.f32 %v4484_v30, %v4394_v18  ;;  %4783 = vmatmul.f32.gmra.mxu1 %v9498_v47 }
 0x4e3   : > { %5031 = vmatmul.f32.gmra.mxu3 %v9500_v38 }
 0x4e4   : > { %4707 = vmatmul.f32.gmra.mxu0 %v9500_v38  ;;  %v8667_v19 = vadd.f32 %v4582_v51, %v4485_v55  ;;  %4895 = vmatmul.f32.gmra.mxu2 %v9501_v21 }
 0x4e6   : > { %v4588_v13 = vpop.f32.mrf.mxu3 }
 0x4e7   : > { %v4397_v17 = vpop.f32.mrf.mxu1  ;;  %v4489_v42 = vpop.f32.mrf.mxu2 }
 0x4e8   : > { %v4398_v35 = vadd.f32 %v4397_v17, %v4253_v61 }
 0x4e9   : > { %v4261_v57 = vpop.f32.mrf.mxu0 }
 0x4ea   : > { %v4490_v52 = vadd.f32 %v4489_v42, %v4398_v35  ;;  %4787 = vmatmul.f32.gmra.mxu1 %v9500_v38 }
 0x4eb   : > { %5035 = vmatmul.f32.gmra.mxu3 %v9502_v10 }
 0x4ec   : > { %4711 = vmatmul.f32.gmra.mxu0 %v9502_v10  ;;  %v8673_v48 = vadd.f32 %v4588_v13, %v4490_v52  ;;  %4903 = vmatmul.f32.gmra.mxu2 %v9503_v40 }
 0x4ee   : > { %v4594_v44 = vpop.f32.mrf.mxu3 }
 0x4ef   : > { %v4401_v45 = vpop.f32.mrf.mxu1  ;;  %v4494_v0 = vpop.f32.mrf.mxu2 }
 0x4f0   : > { %v4402_v49 = vadd.f32 %v4401_v45, %v4261_v57 }
 0x4f1   : > { %v4269_v34 = vpop.f32.mrf.mxu0 }
 0x4f2   : > { %v4495_v63 = vadd.f32 %v4494_v0, %v4402_v49  ;;  %4791 = vmatmul.f32.gmra.mxu1 %v9502_v10 }
 0x4f3   : > { %5039 = vmatmul.f32.gmra.mxu3 %v9415_v15 }
 0x4f4   : > { %4715 = vmatmul.f32.gmra.mxu0 %v9415_v15  ;;  %v8679_v11 = vadd.f32 %v4594_v44, %v4495_v63  ;;  %4911 = vmatmul.f32.gmra.mxu2 %v9504_v60 }
 0x4f6   : > { %v4600_v31 = vpop.f32.mrf.mxu3 }
 0x4f7   : > { %v4405_v32 = vpop.f32.mrf.mxu1  ;;  %v4499_v43 = vpop.f32.mrf.mxu2 }
 0x4f8   : > { %v4406_v22 = vadd.f32 %v4405_v32, %v4269_v34 }
 0x4f9   : > { %v4277_v62 = vpop.f32.mrf.mxu0 }
 0x4fa   : > { %v4500_v28 = vadd.f32 %v4499_v43, %v4406_v22  ;;  %4795 = vmatmul.f32.gmra.mxu1 %v9415_v15 }
 0x4fb   : > { %5043 = vmatmul.f32.gmra.mxu3 %v9486_v16 }
 0x4fc   : > { %4719 = vmatmul.f32.gmra.mxu0 %v9486_v16  ;;  %v8685_v50 = vadd.f32 %v4600_v31, %v4500_v28  ;;  %4919 = vmatmul.f32.gmra.mxu2 %v9505_v3 }
 0x4fe   : > { %v4606_v30 = vpop.f32.mrf.mxu3 }
 0x4ff   : > { %v4409_v61 = vpop.f32.mrf.mxu1  ;;  %v4504_v18 = vpop.f32.mrf.mxu2 }
 0x500   : > { %v4410_v56 = vadd.f32 %v4409_v61, %v4277_v62 }
 0x501   : > { %v4285_v12 = vpop.f32.mrf.mxu0 }
 0x502   : > { %v4505_v51 = vadd.f32 %v4504_v18, %v4410_v56  ;;  %4799 = vmatmul.f32.gmra.mxu1 %v9486_v16  ;;  %v9506_v56 = vld [vmem:[#allocation10_spill] sm:$0xff] }
 0x503   : > { %5047 = vmatmul.f32.gmra.mxu3 %v6911_v5 }
 0x504   : > { %4723 = vmatmul.f32.gmra.mxu0 %v6911_v5  ;;  %v8691_v55 = vadd.f32 %v4606_v30, %v4505_v51  ;;  %4927 = vmatmul.f32.gmra.mxu2 %v9485_v27 }
 0x506   : > { %v4612_v42 = vpop.f32.mrf.mxu3 }
 0x507   : > { %v4413_v57 = vpop.f32.mrf.mxu1  ;;  %v4509_v35 = vpop.f32.mrf.mxu2 }
 0x508   : > { %v4414_v17 = vadd.f32 %v4413_v57, %v4285_v12 }
 0x509   : > { %v4293_v21 = vpop.f32.mrf.mxu0 }
 0x50a   : > { %v4510_v13 = vadd.f32 %v4509_v35, %v4414_v17  ;;  %4803 = vmatmul.f32.gmra.mxu1 %v6911_v5  ;;  %v9507_v35 = vld [vmem:[#allocation15_spill] sm:$0xff] }
 0x50b   : > { %5051 = vmatmul.f32.gmra.mxu3 %v6932_v29 }
 0x50c   : > { %4727 = vmatmul.f32.gmra.mxu0 %v6932_v29  ;;  %v8697_v52 = vadd.f32 %v4612_v42, %v4510_v13  ;;  %4935 = vmatmul.f32.gmra.mxu2 %v9490_v14  ;;  %v9508_v42 = vld [vmem:[#allocation11_spill] sm:$0xff] }
 0x50e   : > { %v4618_v49 = vpop.f32.mrf.mxu3 }
 0x50f   : > { %v4417_v34 = vpop.f32.mrf.mxu1  ;;  %v4514_v27 = vpop.f32.mrf.mxu2 }
 0x510   : > { %v4418_v45 = vadd.f32 %v4417_v34, %v4293_v21 }
 0x511   : > { %v4301_v40 = vpop.f32.mrf.mxu0 }
 0x512   : > { %v4515_v0 = vadd.f32 %v4514_v27, %v4418_v45  ;;  %4807 = vmatmul.f32.gmra.mxu1 %v6932_v29 }
 0x513   : > { %5055 = vmatmul.f32.gmra.mxu3 %v6956_v1 }
 0x514   : > { %4731 = vmatmul.f32.gmra.mxu0 %v6956_v1  ;;  %v8703_v44 = vadd.f32 %v4618_v49, %v4515_v0  ;;  %4943 = vmatmul.f32.gmra.mxu2 %v9491_v8  ;;  %v9509_v0 = vld [vmem:[#allocation17_spill] sm:$0xff] }
 0x516   : > { %v4624_v32 = vpop.f32.mrf.mxu3 }
 0x517   : > { %v4421_v60 = vpop.f32.mrf.mxu1  ;;  %v4519_v14 = vpop.f32.mrf.mxu2 }
 0x518   : > { %v4422_v62 = vadd.f32 %v4421_v60, %v4301_v40 }
 0x519   : > { %v4309_v63 = vpop.f32.mrf.mxu0 }
 0x51a   : > { %v4520_v22 = vadd.f32 %v4519_v14, %v4422_v62  ;;  %4811 = vmatmul.f32.gmra.mxu1 %v6956_v1 }
 0x51b   : > { %5059 = vmatmul.f32.gmra.mxu3 %v6985_v39 }
 0x51c   : > { %4735 = vmatmul.f32.gmra.mxu0 %v6985_v39  ;;  %v8709_v43 = vadd.f32 %v4624_v32, %v4520_v22  ;;  %4951 = vmatmul.f32.gmra.mxu2 %v9492_v2 }
 0x51e   : > { %v4630_v12 = vpop.f32.mrf.mxu3 }
 0x51f   : > { %v4425_v28 = vpop.f32.mrf.mxu1  ;;  %v4524_v8 = vpop.f32.mrf.mxu2 }
 0x520   : > { %v4426_v3 = vadd.f32 %v4425_v28, %v4309_v63  ;;  %v9510_v63 = vld [vmem:[#allocation16_spill] sm:$0xff]  ;;  %v9512_v28 = vld [vmem:[#allocation19_spill] sm:$0xff] }
 0x521   : > { %v4317_v31 = vpop.f32.mrf.mxu0 }
 0x522   : > { %v4525_v61 = vadd.f32 %v4524_v8, %v4426_v3  ;;  %4815 = vmatmul.f32.gmra.mxu1 %v6985_v39 }
 0x523   : > { %5390 = vmatmul.f32.vlgmr.msrb.gmra.mxu3 %v9270_v7 }
 0x524   : > { %5095 = vmatmul.f32.vlgmr.msrb.gmra.mxu0 %v9506_v56  ;;  %v8715_v18 = vadd.f32 %v4630_v12, %v4525_v61  ;;  %5310 = vmatmul.f32.vlgmr.msrb.gmra.mxu2 %v9270_v7  ;;  %v8740_v56 = vld [vmem:[%s6526_s10 + $0x30] sm:$0xff] }
 0x526   : > { %v4636_v57 = vpop.f32.mrf.mxu3 }
 0x527   : > { %v4429_v51 = vpop.f32.mrf.mxu1  ;;  %v4529_v2 = vpop.f32.mrf.mxu2 }
 0x528   : > { %v4430_v21 = vadd.f32 %v4429_v51, %v4317_v31  ;;  %v9511_v31 = vld [vmem:[#allocation21_spill] sm:$0xff] }
 0x529   : > { %v4325_v30 = vpop.f32.mrf.mxu0 }
 0x52a   : > { %v4530_v17 = vadd.f32 %v4529_v2, %v4430_v21  ;;  %5190 = vmatmul.f32.vlgmr.msrb.gmra.mxu1 %v9508_v42 }
 0x52b   : > { %5394 = vmatmul.f32.gmra.mxu3 %v9358_v9 }
 0x52c   : > { %5100 = vmatmul.f32.gmra.mxu0 %v9507_v35  ;;  %v8721_v13 = vadd.f32 %v4636_v57, %v4530_v17  ;;  %5314 = vmatmul.f32.gmra.mxu2 %v9358_v9  ;;  %v9514_v17 = vld [vmem:[#allocation23_spill] sm:$0xff] }
 0x52e   : > { %v4642_v27 = vpop.f32.mrf.mxu3 }
 0x52f   : > { %v4433_v40 = vpop.f32.mrf.mxu1  ;;  %v4534_v7 = vpop.f32.mrf.mxu2 }
 0x530   : > { %v4434_v45 = vadd.f32 %v4433_v40, %v4325_v30  ;;  %v8743_v30 = vld [vmem:[%s6526_s10 + $0x70] sm:$0xff] }
 0x531   : > { %v4684_v34 = vpop.f32.mrf.mxu0 }
 0x532   : > { %v4535_v49 = vadd.f32 %v4534_v7, %v4434_v45  ;;  %5196 = vmatmul.f32.gmra.mxu1 %v9510_v63  ;;  %v4685_v3 = vadd.f32 %v4684_v34, %v8646_v6  ;;  %v9513_v6 = vld [vmem:[#allocation25_spill] sm:$0xff]  ;;  %v8755_v45 = vld [vmem:[%s6526_s10 + $0xb0] sm:$0xff] }
 0x533   : > { %5398 = vmatmul.f32.gmra.mxu3 %v9453_v20  ;;  %v9515_v63 = vld [vmem:[#allocation29_spill] sm:$0xff] }
 0x534   : > { %5105 = vmatmul.f32.gmra.mxu0 %v9509_v0  ;;  %v8727_v60 = vadd.f32 %v4642_v27, %v4535_v49  ;;  %5318 = vmatmul.f32.gmra.mxu2 %v9453_v20 }
 0x536   : > { %v5008_v32 = vpop.f32.mrf.mxu3 }
 0x537   : > { %v4764_v9 = vpop.f32.mrf.mxu1  ;;  %v4848_v14 = vpop.f32.mrf.mxu2 }
 0x538   : > { %v8731_v22 = vadd.f32 %v5008_v32, %v4848_v14  ;;  %v4765_v20 = vadd.f32 %v4764_v9, %v4685_v3 }
 0x539   : > { %v4688_v62 = vpop.f32.mrf.mxu0 }
 0x53a   : > { %5202 = vmatmul.f32.gmra.mxu1 %v9512_v28  ;;  %v4689_v8 = vadd.f32 %v4688_v62, %v8652_v4  ;;  %v9516_v62 = vld [vmem:[#allocation27_spill] sm:$0xff] }
 0x53b   : > { %5402 = vmatmul.f32.gmra.mxu3 %v9494_v24 }
 0x53c   : > { %5110 = vmatmul.f32.gmra.mxu0 %v9511_v31  ;;  %5322 = vmatmul.f32.gmra.mxu2 %v9494_v24  ;;  %v5508_v24 = vmul.f32 %v8740_v56, %v4765_v20  ;;  %v8766_v31 = vld [vmem:[%s6526_s10 + $0xf0] sm:$0xff] }
 0x53e   : > { %v5012_v2 = vpop.f32.mrf.mxu3 }
 0x53f   : > { %v4768_v61 = vpop.f32.mrf.mxu1  ;;  %v4856_v21 = vpop.f32.mrf.mxu2 }
 0x540   : > { %v4769_v51 = vadd.f32 %v4768_v61, %v4689_v8  ;;  %v8745_v57 = vadd.f32 %v5012_v2, %v4856_v21  ;;  %v9517_v61 = vld [vmem:[#allocation33_spill] sm:$0xff] }
 0x541   : > { %v4692_v12 = vpop.f32.mrf.mxu0 }
 0x542   : > { %5208 = vmatmul.f32.gmra.mxu1 %v9514_v17  ;;  %v5516_v4 = vmul.f32 %v8743_v30, %v4769_v51  ;;  %v4693_v42 = vadd.f32 %v4692_v12, %v8661_v26  ;;  %v9518_v51 = vld [vmem:[#allocation31_spill] sm:$0xff] }
 0x543   : > { %5406 = vmatmul.f32.gmra.mxu3 %v9496_v41 }
 0x544   : > { %5115 = vmatmul.f32.gmra.mxu0 %v9513_v6  ;;  %v5686_v35 = vadd.f32 %v5516_v4, %v5508_v24  ;;  %5326 = vmatmul.f32.gmra.mxu2 %v9496_v41 }
 0x546   : > { %v5016_v49 = vpop.f32.mrf.mxu3 }
 0x547   : > { %v4772_v34 = vpop.f32.mrf.mxu1  ;;  %v4864_v27 = vpop.f32.mrf.mxu2 }
 0x548   : > { %v4773_v7 = vadd.f32 %v4772_v34, %v4693_v42  ;;  %v8757_v0 = vadd.f32 %v5016_v49, %v4864_v27  ;;  %v9520_v34 = vld [vmem:[#allocation35_spill] sm:$0xff] }
 0x549   : > { %v4696_v40 = vpop.f32.mrf.mxu0 }
 0x54a   : > { %5214 = vmatmul.f32.gmra.mxu1 %v9516_v62  ;;  %v5524_v9 = vmul.f32 %v8755_v45, %v4773_v7  ;;  %v4697_v26 = vadd.f32 %v4696_v40, %v8667_v19  ;;  %v9519_v40 = vld [vmem:[#allocation37_spill] sm:$0xff] }
 0x54b   : > { %5410 = vmatmul.f32.gmra.mxu3 %v9498_v47 }
 0x54c   : > { %5120 = vmatmul.f32.gmra.mxu0 %v9515_v63  ;;  %v5687_v41 = vadd.f32 %v5686_v35, %v5524_v9  ;;  %5330 = vmatmul.f32.gmra.mxu2 %v9498_v47 }
 0x54e   : > { %v5020_v20 = vpop.f32.mrf.mxu3 }
 0x54f   : > { %v4776_v32 = vpop.f32.mrf.mxu1  ;;  %v4872_v8 = vpop.f32.mrf.mxu2 }
 0x550   : > { %v4777_v3 = vadd.f32 %v4776_v32, %v4697_v26  ;;  %v8769_v12 = vadd.f32 %v5020_v20, %v4872_v8  ;;  %v9522_v32 = vld [vmem:[#allocation39_spill] sm:$0xff] }
 0x551   : > { %v4700_v14 = vpop.f32.mrf.mxu0  ;;  %v8799_v8 = vld [vmem:[%s6526_s10 + $0x1b0] sm:$0xff] }
 0x552   : > { %v4701_v28 = vadd.f32 %v4700_v14, %v8673_v48  ;;  %5220 = vmatmul.f32.gmra.mxu1 %v9518_v51  ;;  %v5532_v47 = vmul.f32 %v8766_v31, %v4777_v3  ;;  %v8777_v48 = vld [vmem:[%s6526_s10 + $0x130] sm:$0xff]  ;;  %v9521_v14 = vld [vmem:[#allocation41_spill] sm:$0xff] }
 0x553   : > { %5414 = vmatmul.f32.gmra.mxu3 %v9500_v38 }
 0x554   : > { %5125 = vmatmul.f32.gmra.mxu0 %v9517_v61  ;;  %v5688_v19 = vadd.f32 %v5687_v41, %v5532_v47  ;;  %5334 = vmatmul.f32.gmra.mxu2 %v9500_v38 }
 0x556   : > { %v5024_v4 = vpop.f32.mrf.mxu3 }
 0x557   : > { %v4780_v2 = vpop.f32.mrf.mxu1  ;;  %v4880_v24 = vpop.f32.mrf.mxu2 }
 0x558   : > { %v4781_v17 = vadd.f32 %v4780_v2, %v4701_v28  ;;  %v8780_v35 = vadd.f32 %v5024_v4, %v4880_v24  ;;  %v9524_v2 = vld [vmem:[#allocation43_spill] sm:$0xff] }
 0x559   : > { %v4704_v21 = vpop.f32.mrf.mxu0 }
 0x55a   : > { %v4705_v6 = vadd.f32 %v4704_v21, %v8679_v11  ;;  %v5540_v42 = vmul.f32 %v8777_v48, %v4781_v17  ;;  %5226 = vmatmul.f32.gmra.mxu1 %v9520_v34  ;;  %v8788_v11 = vld [vmem:[%s6526_s10 + $0x170] sm:$0xff]  ;;  %v9523_v21 = vld [vmem:[#allocation45_spill] sm:$0xff] }
 0x55b   : > { %5418 = vmatmul.f32.gmra.mxu3 %v9502_v10  ;;  %v9525_v34 = vld [vmem:[#allocation47_spill] sm:$0xff] }
 0x55c   : > { %5130 = vmatmul.f32.gmra.mxu0 %v9519_v40  ;;  %v5689_v38 = vadd.f32 %v5688_v19, %v5540_v42  ;;  %5338 = vmatmul.f32.gmra.mxu2 %v9502_v10 }
 0x55e   : > { %v5028_v9 = vpop.f32.mrf.mxu3 }
 0x55f   : > { %v4784_v27 = vpop.f32.mrf.mxu1  ;;  %v4888_v62 = vpop.f32.mrf.mxu2 }
 0x560   : > { %v4785_v63 = vadd.f32 %v4784_v27, %v4705_v6  ;;  %v8791_v41 = vadd.f32 %v5028_v9, %v4888_v62 }
 0x561   : > { %v4708_v7 = vpop.f32.mrf.mxu0 }
 0x562   : > { %v4709_v49 = vadd.f32 %v4708_v7, %v8685_v50  ;;  %v5548_v26 = vmul.f32 %v8788_v11, %v4785_v63  ;;  %5232 = vmatmul.f32.gmra.mxu1 %v9522_v32 }
 0x563   : > { %5422 = vmatmul.f32.gmra.mxu3 %v9415_v15 }
 0x564   : > { %5135 = vmatmul.f32.gmra.mxu0 %v9521_v14  ;;  %v5690_v10 = vadd.f32 %v5689_v38, %v5548_v26  ;;  %5342 = vmatmul.f32.gmra.mxu2 %v9415_v15 }
 0x566   : > { %v5032_v51 = vpop.f32.mrf.mxu3 }
 0x567   : > { %v4788_v3 = vpop.f32.mrf.mxu1  ;;  %v4896_v61 = vpop.f32.mrf.mxu2 }
 0x568   : > { %v4789_v20 = vadd.f32 %v4788_v3, %v4709_v49  ;;  %v8802_v47 = vadd.f32 %v5032_v51, %v4896_v61 }
 0x569   : > { %v4712_v28 = vpop.f32.mrf.mxu0 }
 0x56a   : > { %v4713_v50 = vadd.f32 %v4712_v28, %v8691_v55  ;;  %v5556_v19 = vmul.f32 %v8799_v8, %v4789_v20  ;;  %5238 = vmatmul.f32.gmra.mxu1 %v9524_v2 }
 0x56b   : > { %5426 = vmatmul.f32.gmra.mxu3 %v9486_v16 }
 0x56c   : > { %5140 = vmatmul.f32.gmra.mxu0 %v9523_v21  ;;  %v8808_v15 = vadd.f32 %v5690_v10, %v5556_v19  ;;  %5346 = vmatmul.f32.gmra.mxu2 %v9486_v16 }
 0x56e   : > { %v5036_v42 = vpop.f32.mrf.mxu3 }
 0x56f   : > { %v4792_v17 = vpop.f32.mrf.mxu1  ;;  %v4904_v4 = vpop.f32.mrf.mxu2 }
 0x570   : > { %v4793_v24 = vadd.f32 %v4792_v17, %v4713_v50  ;;  %v8812_v40 = vadd.f32 %v5036_v42, %v4904_v4 }
 0x571   : > { %v4716_v6 = vpop.f32.mrf.mxu0 }
 0x572   : > { %v4717_v55 = vadd.f32 %v4716_v6, %v8697_v52  ;;  %5244 = vmatmul.f32.gmra.mxu1 %v9525_v34  ;;  %v5564_v62 = vmul.f32 %v8740_v56, %v4793_v24 }
 0x573   : > { %5430 = vmatmul.f32.gmra.mxu3 %v6911_v5 }
 0x574   : > { %5145 = vmatmul.f32.gmra.mxu0 %v6921_v59  ;;  %5350 = vmatmul.f32.gmra.mxu2 %v6911_v5 }
 0x576   : > { %v5040_v52 = vpop.f32.mrf.mxu3 }
 0x577   : > { %v4796_v7 = vpop.f32.mrf.mxu1  ;;  %v4912_v49 = vpop.f32.mrf.mxu2 }
 0x578   : > { %v4797_v27 = vadd.f32 %v4796_v7, %v4717_v55  ;;  %v8819_v63 = vadd.f32 %v5040_v52, %v4912_v49 }
 0x579   : > { %v4720_v38 = vpop.f32.mrf.mxu0 }
 0x57a   : > { %v4721_v16 = vadd.f32 %v4720_v38, %v8703_v44  ;;  %v5572_v9 = vmul.f32 %v8743_v30, %v4797_v27  ;;  %5250 = vmatmul.f32.gmra.mxu1 %v6930_v36 }
 0x57b   : > { %5434 = vmatmul.f32.gmra.mxu3 %v6932_v29 }
 0x57c   : > { %5150 = vmatmul.f32.gmra.mxu0 %v6944_v54  ;;  %v5782_v59 = vadd.f32 %v5572_v9, %v5564_v62  ;;  %5354 = vmatmul.f32.gmra.mxu2 %v6932_v29 }
 0x57e   : > { %v5044_v10 = vpop.f32.mrf.mxu3 }
 0x57f   : > { %v4800_v44 = vpop.f32.mrf.mxu1  ;;  %v4920_v32 = vpop.f32.mrf.mxu2 }
 0x580   : > { %v4801_v14 = vadd.f32 %v4800_v44, %v4721_v16  ;;  %v8828_v28 = vadd.f32 %v5044_v10, %v4920_v32 }
 0x581   : > { %v4724_v5 = vpop.f32.mrf.mxu0 }
 0x582   : > { %v4725_v26 = vadd.f32 %v4724_v5, %v8709_v43  ;;  %v5580_v56 = vmul.f32 %v8755_v45, %v4801_v14  ;;  %5256 = vmatmul.f32.gmra.mxu1 %v6954_v37 }
 0x583   : > { %5438 = vmatmul.f32.gmra.mxu3 %v6956_v1 }
 0x584   : > { %5155 = vmatmul.f32.gmra.mxu0 %v6971_v23  ;;  %v5783_v36 = vadd.f32 %v5782_v59, %v5580_v56  ;;  %5358 = vmatmul.f32.gmra.mxu2 %v6956_v1 }
 0x586   : > { %v5048_v50 = vpop.f32.mrf.mxu3 }
 0x587   : > { %v4804_v54 = vpop.f32.mrf.mxu1  ;;  %v4928_v3 = vpop.f32.mrf.mxu2 }
 0x588   : > { %v4805_v30 = vadd.f32 %v4804_v54, %v4725_v26  ;;  %v8836_v20 = vadd.f32 %v5048_v50, %v4928_v3 }
 0x589   : > { %v4728_v29 = vpop.f32.mrf.mxu0 }
 0x58a   : > { %v4729_v43 = vadd.f32 %v4728_v29, %v8715_v18  ;;  %v5588_v45 = vmul.f32 %v8766_v31, %v4805_v30  ;;  %5262 = vmatmul.f32.gmra.mxu1 %v9266_v58  ;;  %v8864_v29 = vld [vmem:[%s6526_s10 + $0x78] sm:$0xff] }
 0x58b   : > { %5442 = vmatmul.f32.gmra.mxu3 %v6985_v39 }
 0x58c   : > { %5160 = vmatmul.f32.gmra.mxu0 %v6994_v33  ;;  %v5784_v37 = vadd.f32 %v5783_v36, %v5588_v45  ;;  %5362 = vmatmul.f32.gmra.mxu2 %v6985_v39  ;;  %v8861_v36 = vld [vmem:[%s6526_s10 + $0x38] sm:$0xff] }
 0x58e   : > { %v5052_v19 = vpop.f32.mrf.mxu3 }
 0x58f   : > { %v4808_v23 = vpop.f32.mrf.mxu1  ;;  %v4936_v51 = vpop.f32.mrf.mxu2 }
 0x590   : > { %v4809_v61 = vadd.f32 %v4808_v23, %v4729_v43  ;;  %v8844_v21 = vadd.f32 %v5052_v19, %v4936_v51 }
 0x591   : > { %v4732_v1 = vpop.f32.mrf.mxu0 }
 0x592   : > { %v4733_v18 = vadd.f32 %v4732_v1, %v8721_v13  ;;  %v5596_v31 = vmul.f32 %v8777_v48, %v4809_v61  ;;  %5268 = vmatmul.f32.gmra.mxu1 %v9267_v46 }
 0x594   : > { %v5785_v33 = vadd.f32 %v5784_v37, %v5596_v31 }
 0x596   : > { %v5056_v55 = vpop.f32.mrf.mxu3 }
 0x597   : > { %v4812_v2 = vpop.f32.mrf.mxu1  ;;  %v4944_v39 = vpop.f32.mrf.mxu2 }
 0x598   : > { %v4813_v17 = vadd.f32 %v4812_v2, %v4733_v18  ;;  %v8849_v24 = vadd.f32 %v5056_v55, %v4944_v39  ;;  %v8870_v18 = vld [vmem:[%s6526_s10 + $0xb8] sm:$0xff] }
 0x599   : > { %v4736_v58 = vpop.f32.mrf.mxu0  ;;  %v8875_v39 = vld [vmem:[%s6526_s10 + $0xf8] sm:$0xff] }
 0x59a   : > { %v4737_v6 = vadd.f32 %v4736_v58, %v8727_v60  ;;  %v5604_v13 = vmul.f32 %v8788_v11, %v4813_v17 }
 0x59c   : > { %v5786_v4 = vadd.f32 %v5785_v33, %v5604_v13 }
 0x59e   : > { %v5060_v46 = vpop.f32.mrf.mxu3 }
 0x59f   : > { %v4816_v42 = vpop.f32.mrf.mxu1  ;;  %v4952_v7 = vpop.f32.mrf.mxu2 }
 0x5a0   : > { %v4817_v38 = vadd.f32 %v4816_v42, %v4737_v6  ;;  %v8853_v16 = vadd.f32 %v5060_v46, %v4952_v7 }
 0x5a1   : > { %v5096_v34 = vpop.f32.mrf.mxu0 }
 0x5a2   : > { %v5097_v48 = vadd.f32 %v5096_v34, %v8731_v22  ;;  %v5612_v27 = vmul.f32 %v8799_v8, %v4817_v38 }
 0x5a4   : > { %v8856_v60 = vadd.f32 %v5786_v4, %v5612_v27  ;;  %v8880_v27 = vld [vmem:[%s6526_s10 + $0x138] sm:$0xff] }
 0x5a6   : > { %v5391_v59 = vpop.f32.mrf.mxu3 }
 0x5a7   : > { %v5191_v52 = vpop.f32.mrf.mxu1  ;;  %v5311_v9 = vpop.f32.mrf.mxu2 }
 0x5a8   : > { %v5192_v62 = vadd.f32 %v5191_v52, %v5097_v48 }
 0x5a9   : > { %v5101_v49 = vpop.f32.mrf.mxu0 }
 0x5aa   : > { %v5102_v11 = vadd.f32 %v5101_v49, %v8745_v57  ;;  %v5312_v5 = vadd.f32 %v5311_v9, %v5192_v62 }
 0x5ac   : > { %v5392_v44 = vadd.f32 %v5391_v59, %v5312_v5 }
 0x5ae   : > { %v5395_v8 = vpop.f32.mrf.mxu3  ;;  %v5509_v57 = vmul.f32 %v8861_v36, %v5392_v44 }
 0x5af   : > { %v5197_v26 = vpop.f32.mrf.mxu1  ;;  %v5315_v10 = vpop.f32.mrf.mxu2 }
 0x5b0   : > { %v5198_v32 = vadd.f32 %v5197_v26, %v5102_v11  ;;  %v8884_v26 = vld [vmem:[%s6526_s10 + $0x178] sm:$0xff] }
 0x5b1   : > { %v5106_v22 = vpop.f32.mrf.mxu0 }
 0x5b2   : > { %v5107_v14 = vadd.f32 %v5106_v22, %v8757_v0  ;;  %v5316_v56 = vadd.f32 %v5315_v10, %v5198_v32 }
 0x5b4   : > { %v5396_v54 = vadd.f32 %v5395_v8, %v5316_v56 }
 0x5b6   : > { %v5517_v43 = vmul.f32 %v8864_v29, %v5396_v54  ;;  %v5399_v1 = vpop.f32.mrf.mxu3 }
 0x5b7   : > { %v5203_v3 = vpop.f32.mrf.mxu1  ;;  %v5319_v37 = vpop.f32.mrf.mxu2 }
 0x5b8   : > { %v5698_v50 = vadd.f32 %v5517_v43, %v5509_v57  ;;  %v5204_v0 = vadd.f32 %v5203_v3, %v5107_v14  ;;  %v5692_v14 = vrot.slane %v8808_v15, 4 }
 0x5b9   : > { %v5111_v30 = vpop.f32.mrf.mxu0 }
 0x5ba   : > { %v5112_v45 = vadd.f32 %v5111_v30, %v8769_v12  ;;  %v5320_v23 = vadd.f32 %v5319_v37, %v5204_v0  ;;  %v5693_v3 = vadd.f32 %v5692_v14, %v8808_v15 }
 0x5bc   : > { %v5400_v61 = vadd.f32 %v5399_v1, %v5320_v23  ;;  %v5694_v37 = vrot.slane %v5693_v3, 2 }
 0x5be   : > { %v5525_v51 = vmul.f32 %v8870_v18, %v5400_v61  ;;  %v5403_v17 = vpop.f32.mrf.mxu3 }
 0x5bf   : > { %v5209_v31 = vpop.f32.mrf.mxu1  ;;  %v5323_v6 = vpop.f32.mrf.mxu2 }
 0x5c0   : > { %v5699_v33 = vadd.f32 %v5698_v50, %v5525_v51  ;;  %v5210_v2 = vadd.f32 %v5209_v31, %v5112_v45  ;;  %v8891_v45 = vld [vmem:[%s6526_s10 + $0x1b8] sm:$0xff] }
 0x5c1   : > { %v5116_v19 = vpop.f32.mrf.mxu0 }
 0x5c2   : > { %v5117_v58 = vadd.f32 %v5116_v19, %v8780_v35  ;;  %v5324_v12 = vadd.f32 %v5323_v6, %v5210_v2 }
 0x5c4   : > { %v5404_v55 = vadd.f32 %v5403_v17, %v5324_v12 }
 0x5c6   : > { %v5533_v13 = vmul.f32 %v8875_v39, %v5404_v55  ;;  %v5407_v46 = vpop.f32.mrf.mxu3 }
 0x5c7   : > { %v5215_v42 = vpop.f32.mrf.mxu1  ;;  %v5327_v7 = vpop.f32.mrf.mxu2 }
 0x5c8   : > { %v5700_v34 = vadd.f32 %v5699_v33, %v5533_v13  ;;  %v5216_v48 = vadd.f32 %v5215_v42, %v5117_v58  ;;  %v5695_v33 = vadd.f32 %v5694_v37, %v5693_v3 }
 0x5c9   : > { %v5121_v4 = vpop.f32.mrf.mxu0 }
 0x5ca   : > { %v5122_v38 = vadd.f32 %v5121_v4, %v8791_v41  ;;  %v5328_v35 = vadd.f32 %v5327_v7, %v5216_v48  ;;  %v5696_v17 = vrot.slane %v5695_v33, 1 }
 0x5cc   : > { %v5408_v49 = vadd.f32 %v5407_v46, %v5328_v35  ;;  %v5697_v7 = vadd.f32 %v5696_v17, %v5695_v33 }
 0x5ce   : > { %v5541_v52 = vmul.f32 %v8880_v27, %v5408_v49  ;;  %v5411_v44 = vpop.f32.mrf.mxu3 }
 0x5cf   : > { %v5221_v62 = vpop.f32.mrf.mxu1  ;;  %v5331_v5 = vpop.f32.mrf.mxu2 }
 0x5d0   : > { %v5701_v9 = vadd.f32 %v5700_v34, %v5541_v52  ;;  %v5222_v59 = vadd.f32 %v5221_v62, %v5122_v38 }
 0x5d1   : > { %v5126_v11 = vpop.f32.mrf.mxu0 }
 0x5d2   : > { %v5332_v22 = vadd.f32 %v5331_v5, %v5222_v59  ;;  %v5127_v32 = vadd.f32 %v5126_v11, %v8802_v47  ;;  %v5826_v11 = vrot.slane %v5697_v7, 4 }
 0x5d4   : > { %v5412_v41 = vadd.f32 %v5411_v44, %v5332_v22 }
 0x5d6   : > { %v5549_v10 = vmul.f32 %v8884_v26, %v5412_v41  ;;  %v5415_v30 = vpop.f32.mrf.mxu3 }
 0x5d7   : > { %v5227_v56 = vpop.f32.mrf.mxu1  ;;  %v5335_v43 = vpop.f32.mrf.mxu2 }
 0x5d8   : > { %v5702_v54 = vadd.f32 %v5701_v9, %v5549_v10  ;;  %v5228_v57 = vadd.f32 %v5227_v56, %v5127_v32 }
 0x5d9   : > { %v5131_v8 = vpop.f32.mrf.mxu0 }
 0x5da   : > { %v5336_v50 = vadd.f32 %v5335_v43, %v5228_v57  ;;  %v5132_v47 = vadd.f32 %v5131_v8, %v8812_v40 }
 0x5dc   : > { %v5416_v0 = vadd.f32 %v5415_v30, %v5336_v50 }
 0x5de   : > { %v5557_v1 = vmul.f32 %v8891_v45, %v5416_v0  ;;  %v5419_v31 = vpop.f32.mrf.mxu3 }
 0x5df   : > { %v5233_v61 = vpop.f32.mrf.mxu1  ;;  %v5339_v19 = vpop.f32.mrf.mxu2 }
 0x5e0   : > { %v5703_v51 = vadd.f32 %v5702_v54, %v5557_v1  ;;  %v5234_v2 = vadd.f32 %v5233_v61, %v5132_v47 }
 0x5e1   : > { %v5136_v23 = vpop.f32.mrf.mxu0 }
 0x5e2   : > { %v5704_v58 = vrot.slane %v5703_v51, 4  ;;  %v5137_v12 = vadd.f32 %v5136_v23, %v8819_v63  ;;  %v5340_v55 = vadd.f32 %v5339_v19, %v5234_v2 }
 0x5e4   : > { %v5705_v6 = vadd.f32 %v5704_v58, %v5703_v51  ;;  %v5420_v46 = vadd.f32 %v5419_v31, %v5340_v55 }
 0x5e6   : > { %v5706_v15 = vrot.slane %v5705_v6, 2  ;;  %v5423_v48 = vpop.f32.mrf.mxu3  ;;  %v5565_v9 = vmul.f32 %v8861_v36, %v5420_v46 }
 0x5e7   : > { %v5239_v4 = vpop.f32.mrf.mxu1  ;;  %v5343_v38 = vpop.f32.mrf.mxu2 }
 0x5e8   : > { %v5707_v42 = vadd.f32 %v5706_v15, %v5705_v6  ;;  %v5240_v34 = vadd.f32 %v5239_v4, %v5137_v12 }
 0x5e9   : > { %v5141_v13 = vpop.f32.mrf.mxu0 }
 0x5ea   : > { %v5708_v40 = vrot.slane %v5707_v42, 1  ;;  %v5344_v35 = vadd.f32 %v5343_v38, %v5240_v34  ;;  %v5142_v59 = vadd.f32 %v5141_v13, %v8828_v28  ;;  %v5788_v13 = vrot.slane %v8856_v60, 4 }
 0x5ec   : > { %v5709_v49 = vadd.f32 %v5708_v40, %v5707_v42  ;;  %v5424_v52 = vadd.f32 %v5423_v48, %v5344_v35 }
 0x5ee   : > { %v5827_v62 = vrot.slane %v5709_v49, 2  ;;  %v5573_v63 = vmul.f32 %v8864_v29, %v5424_v52  ;;  %v5427_v10 = vpop.f32.mrf.mxu3 }
 0x5ef   : > { %v5245_v44 = vpop.f32.mrf.mxu1  ;;  %v5347_v32 = vpop.f32.mrf.mxu2 }
 0x5f0   : > { %v5841_v22 = vsel %vm5836_vm2, %v5826_v11, %v5827_v62  ;;  %v5794_v41 = vadd.f32 %v5573_v63, %v5565_v9  ;;  %v5246_v14 = vadd.f32 %v5245_v44, %v5142_v59 }
 0x5f1   : > { %v5146_v5 = vpop.f32.mrf.mxu0  ;;  %v5842_v8 = vsel %vm5838_vm3, %v8610_v25, %v5841_v22 }
 0x5f2   : > { %v5348_v56 = vadd.f32 %v5347_v32, %v5246_v14  ;;  %v5147_v57 = vadd.f32 %v5146_v5, %v8836_v20 }
 0x5f4   : > { %v5428_v54 = vadd.f32 %v5427_v10, %v5348_v56 }
 0x5f6   : > { %v5581_v36 = vmul.f32 %v8870_v18, %v5428_v54  ;;  %v5431_v50 = vpop.f32.mrf.mxu3 }
 0x5f7   : > { %v5251_v43 = vpop.f32.mrf.mxu1  ;;  %v5351_v3 = vpop.f32.mrf.mxu2 }
 0x5f8   : > { %v5795_v29 = vadd.f32 %v5794_v41, %v5581_v36  ;;  %v5252_v30 = vadd.f32 %v5251_v43, %v5147_v57 }
 0x5f9   : > { %v5151_v28 = vpop.f32.mrf.mxu0 }
 0x5fa   : > { %v5352_v0 = vadd.f32 %v5351_v3, %v5252_v30  ;;  %v5152_v1 = vadd.f32 %v5151_v28, %v8844_v21 }
 0x5fc   : > { %v5432_v37 = vadd.f32 %v5431_v50, %v5352_v0 }
 0x5fe   : > { %v5589_v23 = vmul.f32 %v8875_v39, %v5432_v37  ;;  %v5435_v19 = vpop.f32.mrf.mxu3 }
 0x5ff   : > { %v5257_v61 = vpop.f32.mrf.mxu1  ;;  %v5355_v51 = vpop.f32.mrf.mxu2 }
 0x600   : > { %v5796_v25 = vadd.f32 %v5795_v29, %v5589_v23  ;;  %v5258_v47 = vadd.f32 %v5257_v61, %v5152_v1 }
 0x601   : > { %v5156_v20 = vpop.f32.mrf.mxu0 }
 0x602   : > { %v5356_v31 = vadd.f32 %v5355_v51, %v5258_v47  ;;  %v5157_v33 = vadd.f32 %v5156_v20, %v8849_v24 }
 0x604   : > { %v5436_v18 = vadd.f32 %v5435_v19, %v5356_v31 }
 0x606   : > { %v5597_v58 = vmul.f32 %v8880_v27, %v5436_v18  ;;  %v5439_v12 = vpop.f32.mrf.mxu3  ;;  %v5789_v27 = vadd.f32 %v5788_v13, %v8856_v60 }
 0x607   : > { %v5263_v2 = vpop.f32.mrf.mxu1  ;;  %v5359_v15 = vpop.f32.mrf.mxu2 }
 0x608   : > { %v5797_v6 = vadd.f32 %v5796_v25, %v5597_v58  ;;  %v5264_v17 = vadd.f32 %v5263_v2, %v5157_v33  ;;  %v5790_v35 = vrot.slane %v5789_v27, 2 }
 0x609   : > { %v5161_v55 = vpop.f32.mrf.mxu0 }
 0x60a   : > { %v5360_v21 = vadd.f32 %v5359_v15, %v5264_v17  ;;  %v5162_v4 = vadd.f32 %v5161_v55, %v8853_v16  ;;  %v5791_v11 = vadd.f32 %v5790_v35, %v5789_v27 }
 0x60c   : > { %v5440_v39 = vadd.f32 %v5439_v12, %v5360_v21  ;;  %v5792_v16 = vrot.slane %v5791_v11, 1 }
 0x60e   : > { %v5605_v42 = vmul.f32 %v8884_v26, %v5440_v39  ;;  %v5443_v7 = vpop.f32.mrf.mxu3  ;;  %v5793_v63 = vadd.f32 %v5792_v16, %v5791_v11 }
 0x60f   : > { %v5269_v34 = vpop.f32.mrf.mxu1  ;;  %v5363_v24 = vpop.f32.mrf.mxu2 }
 0x610   : > { %v5798_v38 = vadd.f32 %v5797_v6, %v5605_v42  ;;  %v5270_v48 = vadd.f32 %v5269_v34, %v5162_v4  ;;  %v5832_v22 = vrot.slane %v5793_v63, 4 }
 0x612   : > { %v5364_v40 = vadd.f32 %v5363_v24, %v5270_v48 }
 0x614   : > { %v5444_v46 = vadd.f32 %v5443_v7, %v5364_v40 }
 0x616   : > { %v5613_v49 = vmul.f32 %v8891_v45, %v5444_v46 }
 0x618   : > { %v5799_v52 = vadd.f32 %v5798_v38, %v5613_v49 }
 0x61a   : > { %v5800_v62 = vrot.slane %v5799_v52, 4 }
 0x61c   : > { %v5801_v9 = vadd.f32 %v5800_v62, %v5799_v52 }
 0x61e   : > { %v5802_v59 = vrot.slane %v5801_v9, 2 }
 0x620   : > { %v5803_v26 = vadd.f32 %v5802_v59, %v5801_v9 }
 0x622   : > { %v5804_v5 = vrot.slane %v5803_v26, 1 }
 0x624   : > { %v5805_v44 = vadd.f32 %v5804_v5, %v5803_v26 }
 0x626   : > { %v5833_v41 = vrot.slane %v5805_v44, 2 }
 0x628   : > { %v5847_v60 = vsel %vm5836_vm2, %v5832_v22, %v5833_v41 }
 0x629   : > { %v5848_v14 = vsel %vm5838_vm3, %v8657_v53, %v5847_v60 }
 0x62a   : > { %v5864_v32 = vrot.slane %v5848_v14, 7 }
 0x62c   : > { %v5865_v45 = vsel %vm5854_vm4, %v5864_v32, %v5842_v8  ;;  %5876 = sbr.rel (%p6225_p8) target bundleno = 1753 (0x6d9), region = 52 }
 0x62d   : > { %v5866_v10 = vsel %vm5856_vm5, %v5864_v32, %v5865_v45 }
 0x62e   : > { %v5867_v56 = vsel %vm5858_vm6, %v5864_v32, %v5866_v10 }
 0x62f   : > { %v5868_v54 = vsel %vm5860_vm7, %v5864_v32, %v5867_v56 }
 0x630   : > { %5872 = vst [vmem:[%s8120_s9 + $0x8] sm:$0xff] %v5868_v54 }
 0x631   : > { %v5884_v57 = vld [vmem:[%s9022_s1 + $0x30] sm:$0x1]  ;;  %vm5889_vm8 = vcmask 1040384   ;;  %v5883_v53 = vld [vmem:[%s9022_s1 + $0x28] sm:$0xff]  ;;  %v5882_v8 = vld [vmem:[%s9022_s1 + $0x20] sm:$0xff]  ;;  %vm5885_vm9 = vcmask 400384  }
 0x632   : > { %v5891_v36 = vsel %vm5889_vm8, %v5884_v57, 0  ;;  %v8931_v28 = vand.u32 4294901760, %v5883_v53  ;;  %v8933_v43 = vand.u32 4294901760, %v5882_v8  ;;  %v5881_v29 = vld [vmem:[%s9022_s1 + $0x18] sm:$0xff]  ;;  %v5880_v30 = vld [vmem:[%s9022_s1 + $0x10] sm:$0xff]  ;;  %v5879_v3 = vld [vmem:[%s9022_s1 + $0x8] sm:$0xff] }
 0x633   : > { %v8944_v50 = vand.u32 4294901760, %v5891_v36  ;;  %v8946_v0 = vand.u32 4294901760, %v5881_v29  ;;  %v8948_v37 = vand.u32 4294901760, %v5880_v30  ;;  %v8950_v1 = vand.u32 4294901760, %v5879_v3  ;;  %v5878_v23 = vld [vmem:[%s9022_s1] sm:$0xff] }
 0x634   : > { %v5877_v61 = vld [vmem:[%s9021_s0] sm:$0xff]  ;;  %v5941_v25 = vsub.f32 %v5883_v53, %v8931_v28  ;;  %v8960_v47 = vsub.f32 %v5882_v8, %v8933_v43  ;;  %v8962_v51 = vand.u32 4294901760, %v5878_v23 }
 0x635   : > { %v5887_v19 = vsel %vm5885_vm9, %v5877_v61, 0  ;;  %5903 = vmatpush.msra.mxu0 %v8944_v50  ;;  %v5935_v20 = vsub.f32 %v5891_v36, %v8944_v50  ;;  %6027 = vmatpush.msra.mxu3 %v8944_v50  ;;  %v5953_v31 = vsub.f32 %v5881_v29, %v8946_v0  ;;  %v8970_v18 = vsub.f32 %v5880_v30, %v8948_v37 }
 0x636   : > { %v8972_v33 = vand.u32 4294901760, %v5887_v19  ;;  %v5942_v58 = vand.u32 4294901760, %v5941_v25  ;;  %v5948_v2 = vand.u32 4294901760, %v8960_v47  ;;  %v5965_v6 = vsub.f32 %v5879_v3, %v8950_v1 }
 0x637   : > { %5905 = vmatpush.msra.mxu0 %v8931_v28  ;;  %5992 = vmatpush.msra.mxu2 %v5935_v20  ;;  %v5936_v17 = vand.u32 4294901760, %v5935_v20  ;;  %v5954_v15 = vand.u32 4294901760, %v5953_v31  ;;  %v5960_v13 = vand.u32 4294901760, %v8970_v18  ;;  %v5971_v4 = vsub.f32 %v5878_v23, %v8962_v51 }
 0x638   : > { %v5917_v12 = vsub.f32 %v5887_v19, %v8972_v33  ;;  %v5943_v21 = vsub.f32 %v5941_v25, %v5942_v58  ;;  %6029 = vmatpush.msra.mxu3 %v8931_v28  ;;  %v5949_v39 = vsub.f32 %v8960_v47, %v5948_v2  ;;  %v5966_v42 = vand.u32 4294901760, %v5965_v6 }
 0x639   : > { %5907 = vmatpush.msra.mxu0 %v8933_v43  ;;  %v5937_v55 = vsub.f32 %v5935_v20, %v5936_v17  ;;  %5995 = vmatpush.msra.mxu2 %v5941_v25  ;;  %v5955_v48 = vsub.f32 %v5953_v31, %v5954_v15  ;;  %v5961_v27 = vsub.f32 %v8970_v18, %v5960_v13  ;;  %v5972_v40 = vand.u32 4294901760, %v5971_v4 }
 0x63a   : > { %6031 = vmatpush.msra.mxu3 %v8933_v43  ;;  %v5944_v38 = vand.u32 4294901760, %v5943_v21  ;;  %v5918_v24 = vand.u32 4294901760, %v5917_v12  ;;  %v5950_v7 = vand.u32 4294901760, %v5949_v39  ;;  %v5967_v35 = vsub.f32 %v5965_v6, %v5966_v42 }
 0x63b   : > { %v5938_v34 = vand.u32 4294901760, %v5937_v55  ;;  %5909 = vmatpush.msra.mxu0 %v8946_v0  ;;  %5998 = vmatpush.msra.mxu2 %v8960_v47  ;;  %v5956_v46 = vand.u32 4294901760, %v5955_v48  ;;  %v5962_v52 = vand.u32 4294901760, %v5961_v27  ;;  %v5973_v11 = vsub.f32 %v5971_v4, %v5972_v40 }
 0x63c   : > { %6033 = vmatpush.msra.mxu3 %v8946_v0  ;;  %v5919_v49 = vsub.f32 %v5917_v12, %v5918_v24  ;;  %v5968_v62 = vand.u32 4294901760, %v5967_v35 }
 0x63d   : > { %5939 = vmatpush.msra.mxu1 %v5938_v34  ;;  %5911 = vmatpush.msra.mxu0 %v8948_v37  ;;  %v5974_v16 = vand.u32 4294901760, %v5973_v11 }
 0x63e   : > { %6001 = vmatpush.msra.mxu2 %v5953_v31  ;;  %6035 = vmatpush.msra.mxu3 %v8948_v37  ;;  %v5920_v9 = vand.u32 4294901760, %v5919_v49 }
 0x63f   : > { %5945 = vmatpush.msra.mxu1 %v5944_v38  ;;  %5913 = vmatpush.msra.mxu0 %v8950_v1 }
 0x640   : > { %6004 = vmatpush.msra.mxu2 %v8970_v18  ;;  %6037 = vmatpush.msra.mxu3 %v8950_v1 }
 0x641   : > { %5951 = vmatpush.msra.mxu1 %v5950_v7  ;;  %5915 = vmatpush.msra.mxu0 %v8962_v51 }
 0x642   : > { %6007 = vmatpush.msra.mxu2 %v5965_v6  ;;  %6039 = vmatpush.msra.mxu3 %v8962_v51 }
 0x643   : > { %6059 = vmatpush.msrb.mxu0 %v5936_v17  ;;  %5957 = vmatpush.msra.mxu1 %v5956_v46 }
 0x644   : > { %6010 = vmatpush.msra.mxu2 %v5971_v4  ;;  %6043 = vmatmul.f32.vlgmr.msra.gmra.mxu3 %v5918_v24 }
 0x645   : > { %6063 = vmatpush.msrb.mxu0 %v5942_v58  ;;  %5963 = vmatpush.msra.mxu1 %v5962_v52 }
 0x646   : > { %6013 = vmatmul.f32.vlgmr.msra.gmra.mxu2 %v5917_v12  ;;  %5921 = vmatmul.f32.vlgmr.msra.gmra.mxu0 %v5920_v9 }
 0x647   : > { %6067 = vmatpush.msrb.mxu0 %v5948_v2  ;;  %5969 = vmatpush.msra.mxu1 %v5968_v62 }
 0x649   : > { %6071 = vmatpush.msrb.mxu0 %v5954_v15  ;;  %5975 = vmatpush.msra.mxu1 %v5974_v16 }
 0x64a   : > { %5977 = vmatmul.f32.vlgmr.msra.gmra.mxu1 %v8972_v33 }
 0x64b   : > { %6099 = vmatpush.msrb.mxu1 %v8944_v50  ;;  %6075 = vmatpush.msrb.mxu0 %v5960_v13 }
 0x64d   : > { %6101 = vmatpush.msrb.mxu1 %v8931_v28  ;;  %6079 = vmatpush.msrb.mxu0 %v5966_v42 }
 0x64f   : > { %6103 = vmatpush.msrb.mxu1 %v8933_v43  ;;  %6083 = vmatpush.msrb.mxu0 %v5972_v40 }
 0x650   : > { %6085 = vmatmul.f32.vlgmr.msrb.gmra.mxu0 %v8972_v33 }
 0x651   : > { %6105 = vmatpush.msrb.mxu1 %v8946_v0 }
 0x653   : > { %6107 = vmatpush.msrb.mxu1 %v8948_v37 }
 0x655   : > { %6109 = vmatpush.msrb.mxu1 %v8950_v1 }
 0x657   : > { %6111 = vmatpush.msrb.mxu1 %v8962_v51 }
 0x658   : > { %6113 = vmatmul.f32.vlgmr.msrb.gmra.mxu1 %v8972_v33 }
 0x6c3   : > { %v5922_v59 = vpop.f32.mrf.mxu0 }
 0x6c7   : > { %v5978_v26 = vpop.f32.mrf.mxu1  ;;  %v6044_v22 = vpop.f32.mrf.mxu3 }
 0x6c8   : > { %v5979_v5 = vadd.f32 %v5978_v26, %v5922_v59 }
 0x6c9   : > { %v6014_v63 = vpop.f32.mrf.mxu2 }
 0x6ca   : > { %v6015_v44 = vadd.f32 %v6014_v63, %v5979_v5 }
 0x6cc   : > { %v6045_v41 = vadd.f32 %v6044_v22, %v6015_v44 }
 0x6cd   : > { %v6086_v60 = vpop.f32.mrf.mxu0 }
 0x6ce   : > { %v6087_v14 = vadd.f32 %v6086_v60, %v6045_v41 }
 0x6d5   : > { %v6114_v32 = vpop.f32.mrf.mxu1 }
 0x6d6   : > { %v6115_v45 = vadd.f32 %v6114_v32, %v6087_v14 }
 0x6d8   : > { %6117 = vst [vmem:[%s9026_s5] sm:$0xff] %v6115_v45 }
 0x6d9 PF: > { %s9526_s24 = sld [smem:[#allocation8_spill]]  ;;  %p20_p10 = scmp.ge.s32.totalorder %s6440_s26, 6  }
 0x6da   : > { %s9527_s21 = smov %s6370_s22  ;;  %s9528_s22 = smov %s6374_s23 }
 0x6db   :  { %22 = sbr.rel (!%p20_p10) target bundleno = 7 (0x7), region = 105 }
 0x6df   : > { %s9529_s23 = smov %s9526_s24  ;;  %s9530_s24 = smov %s6440_s26 }
 0x6e0   :  { %6146 = vsyncpa [#allocation3], 1 }
 0x6e1   :  { %6148 = vsyncpa [#allocation3 + $0x1], 1 }
 0x6e2   :  { %6149 = vsyncpa [#allocation5], 1 }
 0x6e3   :  { %6151 = vsyncpa [#allocation5 + $0x1], 1 }

</bundles_post_ra>
